<compile_context>
chip_gen: v5e
topology: v5e:2x2
jax: 0.10.0
libtpu: 0.0.40
codegen_flags: <defaults>
</compile_context>

<pallas_src>
import math

import jax
import jax.numpy as jnp
from jax.experimental import pallas as pl
from jax.experimental.pallas import tpu as pltpu


# ----------------------------------------------------------------------------
# Model dimensions (synthetic minimal UNet2DConditionModel)
# ----------------------------------------------------------------------------
IN_CH = 4          # latent channels
IN_CH_PAD = 8      # conv_in input channels padded to a sublane multiple
BLOCK_CH = 32      # hidden channels
TIME_EMB = 64      # time embedding dim
CROSS_DIM = 32     # encoder_hidden_states feature dim
SEQ = 8            # encoder_hidden_states sequence length (example)
GROUPS = 8
H = W = 16
HW = H * W
GN_EPS = 1e-5
GCOUNT = float(HW * (BLOCK_CH // GROUPS))   # elements per GroupNorm group

# chvec column indices (per-channel bias / gamma / beta, packed lane-wise)
CV_CIN_B, CV_GN1_G, CV_GN1_B, CV_C1_B, CV_GN2_G, CV_GN2_B, CV_C2_B = range(7)
CV_BQ, CV_BO, CV_BV, CV_GNO_G, CV_GNO_B, CV_COUT_B = range(7, 13)
CV_COLS = 13


# ----------------------------------------------------------------------------
# The fused UNet kernel (one grid step == one image)
# ----------------------------------------------------------------------------
def _unet_fused_kernel(
    # per-image inputs
    x_ref, ehs_ref, ehsT_ref, tproj_ref,
    # packed weights (identical for every grid step)
    cin_wT_ref, wconv12_ref, cout_wT_ref, wattn_ref, gmbc_ref, chvec_ref, bk_ref,
    # output
    o_ref,
    # scratch
    col_ref,
):
    f32 = jnp.float32
    bf16 = jnp.bfloat16
    C = BLOCK_CH

    # ---- hoisted loads / constants (computed once per kernel invocation) ----
    cvec = chvec_ref[...]                                   # (C, 13) f32
    gmbc = gmbc_ref[...]                                    # (C, C)  f32 group bcast
    wattn = wattn_ref[...]                                  # (4C, C) bf16
    wconv12 = wconv12_ref[...]                              # (2C, 9C) bf16
    bk = bk_ref[...]                                        # (1, C)  f32

    def cv(i):
        return cvec[:, i:i + 1]                             # (C, 1) column param

    # left/right border masks, hoisted once (lane index -> image column)
    wcol = jax.lax.broadcasted_iota(jnp.int32, (1, HW), 1) % W
    left_ok = wcol >= 1
    right_ok = wcol <= W - 2

    def shift_lanes(h, d):
        # s[:, l] = h[:, l + d] for 0 <= l + d < HW else 0  (static d).
        # Top/bottom zero padding of the 3x3 conv falls out of the zero-concat.
        if d == 0:
            return h
        rows = h.shape[0]
        if d > 0:
            return jnp.concatenate(
                [h[:, d:], jnp.zeros((rows, d), h.dtype)], axis=1)
        return jnp.concatenate(
            [jnp.zeros((rows, -d), h.dtype), h[:, :HW + d]], axis=1)

    def conv3x3(h, cin, wT, b):
        """Zero-padded 3x3 'same' conv, channels-first, ONE im2col MXU matmul:
        (Cout, 9*cin) @ (9*cin, HW) -> (Cout, HW).  Each tap store is an
        unmasked lane-dense (cin, 256) store into the col scratch."""
        for t in range(9):
            ky, kx = divmod(t, 3)
            d = W * (ky - 1) + (kx - 1)
            patch = shift_lanes(h, d)
            if kx == 0:
                patch = jnp.where(left_ok, patch, 0.0)
            elif kx == 2:
                patch = jnp.where(right_ok, patch, 0.0)
            col_ref[t * cin:(t + 1) * cin, :] = patch
        col = col_ref[0:9 * cin, :].astype(bf16)
        return jnp.dot(wT, col, preferred_element_type=f32) + b

    def group_norm_silu(x, gamma, beta):
        # single-pass GroupNorm (E[x^2] - E[x]^2) + SiLU on a (C, HW) slab.
        s = jnp.sum(x, axis=1, keepdims=True)               # (C, 1) lane reduce
        ss = jnp.sum(x * x, axis=1, keepdims=True)          # (C, 1)
        st = jnp.concatenate([s, ss], axis=1)               # (C, 2)
        g = jnp.dot(gmbc, st, preferred_element_type=f32)   # (C, 2) group sums
        mean = g[:, 0:1] * (1.0 / GCOUNT)
        var = g[:, 1:2] * (1.0 / GCOUNT) - mean * mean
        y = (x - mean) * jax.lax.rsqrt(var + GN_EPS)
        y = y * gamma + beta
        return y * jax.nn.sigmoid(y)

    # ---- 1. conv_in ----------------------------------------------------------
    x = x_ref[0].astype(f32)                                # (8, HW), ch 4..7 == 0
    h = conv3x3(x, IN_CH_PAD, cin_wT_ref[...], cv(CV_CIN_B))          # (C, HW)

    # ---- 2. ResNet block with time injection ---------------------------------
    res = h
    h = group_norm_silu(h, cv(CV_GN1_G), cv(CV_GN1_B))
    h = conv3x3(h, C, wconv12[0:C, :], cv(CV_C1_B))
    h = h + tproj_ref[0].astype(f32)                        # (C, 1) lane broadcast
    h = group_norm_silu(h, cv(CV_GN2_G), cv(CV_GN2_B))
    h = conv3x3(h, C, wconv12[C:2 * C, :], cv(CV_C2_B))
    h = h + res

    # ---- 3. single-head cross attention (transposed: lane-dense scores) ------
    res = h
    q = jnp.dot(wattn[0:C, :], h.astype(bf16),
                preferred_element_type=f32) + cv(CV_BQ)     # (C, HW)
    ehs = ehs_ref[0].astype(bf16)                           # (S, D)
    ehsT = ehsT_ref[0].astype(bf16)                         # (D, S)
    k = jnp.dot(ehs, wattn[3 * C:4 * C, :],
                preferred_element_type=f32) + bk            # (S, C)
    vT = jnp.dot(wattn[2 * C:3 * C, :], ehsT,
                 preferred_element_type=f32) + cv(CV_BV)    # (C, S)
    scale = 1.0 / math.sqrt(float(C))                       # static
    scores = jnp.dot(k.astype(bf16), q.astype(bf16),
                     preferred_element_type=f32) * scale    # (S, HW) lane-dense
    m = jnp.max(scores, axis=0, keepdims=True)              # sublane reduce
    p = jnp.exp(scores - m)
    denom = jnp.sum(p, axis=0, keepdims=True)
    p = p * pl.reciprocal(denom, approx=True)               # EUP recip
    attn = jnp.dot(vT.astype(bf16), p.astype(bf16),
                   preferred_element_type=f32)              # (C, HW)
    h = res + jnp.dot(wattn[C:2 * C, :], attn.astype(bf16),
                      preferred_element_type=f32) + cv(CV_BO)

    # ---- 4. out block: GroupNorm + SiLU + conv_out ----------------------------
    h = group_norm_silu(h, cv(CV_GNO_G), cv(CV_GNO_B))
    y = conv3x3(h, C, cout_wT_ref[...], cv(CV_COUT_B)[0:IN_CH, :])    # (Ci, HW)

    # output is already channels-first (Ci, 256): lane-dense store, no transpose
    o_ref[0] = y.astype(o_ref.dtype)


# ----------------------------------------------------------------------------
# BlockSpec helpers
# ----------------------------------------------------------------------------
def _full_spec(a):
    nd = a.ndim
    return pl.BlockSpec(tuple(a.shape), lambda n: (0,) * nd)


def _batch_spec(a):
    nd = a.ndim
    return pl.BlockSpec((1,) + tuple(a.shape[1:]),
                        lambda n: (n,) + (0,) * (nd - 1))


# ----------------------------------------------------------------------------
# Parameters + host-side glue
# ----------------------------------------------------------------------------
def _randn(key, shape, scale=0.05):
    return scale * jax.random.normal(key, shape, jnp.float32)


def init_unet_params(key):
    ks = jax.random.split(key, 12)
    C, TE, Ci, D = BLOCK_CH, TIME_EMB, IN_CH, CROSS_DIM
    bf16 = jnp.bfloat16

    def conv_wT(k, cin, cout, cin_pad=None):
        # (3,3,cin,cout) -> (cout, 9*cin) in (ky,kx,ci) column order — the same
        # order the in-kernel im2col slab rows are built in.
        w = _randn(k, (3, 3, cin, cout))
        if cin_pad is not None and cin_pad > cin:
            w = jnp.pad(w, ((0, 0), (0, 0), (0, cin_pad - cin), (0, 0)))
            cin = cin_pad
        return jnp.transpose(w.reshape(9 * cin, cout)).astype(bf16)

    zeros = jnp.zeros((C,), jnp.float32)
    ones = jnp.ones((C,), jnp.float32)
    # per-channel params packed lane-wise; column order == CV_* constants
    chvec = jnp.stack(
        [zeros, ones, zeros, zeros, ones, zeros, zeros,     # cin_b gn1 c1_b gn2 c2_b
         zeros, zeros, zeros, ones, zeros, zeros],          # bq bo bv gno cout_b
        axis=1)

    gid = jnp.arange(C) // (C // GROUPS)
    gmbc = (gid[:, None] == gid[None, :]).astype(jnp.float32)   # group bcast matrix

    wq = _randn(ks[6], (C, C))
    wk = _randn(ks[7], (D, C))
    wv = _randn(ks[8], (D, C))
    wo = _randn(ks[9], (C, C))

    return {
        # host-side (batch-invariant) time-embedding MLP
        "time_w1": _randn(ks[0], (C, TE)), "time_b1": jnp.zeros((1, TE)),
        "time_w2": _randn(ks[1], (TE, TE)), "time_b2": jnp.zeros((1, TE)),
        "res_temb_w": _randn(ks[4], (TE, C)), "res_temb_b": jnp.zeros((1, C)),
        # packed kernel slabs (channels-first layouts, bf16 pre-cast)
        "cin_wT": conv_wT(ks[2], Ci, C, cin_pad=IN_CH_PAD),           # (C, 72)
        "wconv12": jnp.concatenate(
            [conv_wT(ks[3], C, C), conv_wT(ks[5], C, C)], axis=0),    # (2C, 288)
        "cout_wT": conv_wT(ks[10], C, Ci),                            # (Ci, 288)
        "wattn": jnp.concatenate(
            [wq.T, wo.T, wv.T, wk], axis=0).astype(bf16),             # (4C, C)
        "gmbc": gmbc,                                                 # (C, C)
        "chvec": chvec,                                               # (C, 13)
        "bk": jnp.zeros((1, C), jnp.float32),
    }


def timestep_embedding(timestep, batch, dim=BLOCK_CH):
    # sinusoidal embedding (synthetic simplification of diffusers Timesteps),
    # computed with XLA outside the kernel (no TPU-vector sin/cos needed inside).
    half = dim // 2
    freqs = jnp.exp(-jnp.log(10000.0) *
                    jnp.arange(half, dtype=jnp.float32) / half)
    t = jnp.asarray(timestep, jnp.float32).reshape(-1)
    if t.shape[0] == 1:
        t = jnp.broadcast_to(t, (batch,))
    args = t[:, None] * freqs[None, :]
    return jnp.concatenate([jnp.cos(args), jnp.sin(args)], axis=-1)   # (B, dim)


@jax.jit
def _forward_impl(params, sample_nchw, timestep, encoder_hidden_states):
    p = params
    B = sample_nchw.shape[0]
    assert sample_nchw.shape[1:] == (IN_CH, H, W)

    # channels-first lane-dense views (minor dim = H*W = 256); pure reshapes.
    x = sample_nchw.reshape(B, IN_CH, HW).astype(jnp.float32)
    x = jnp.pad(x, ((0, 0), (0, IN_CH_PAD - IN_CH), (0, 0)))          # (B, 8, HW)
    ehs = encoder_hidden_states.astype(jnp.float32)                   # (B, S, D)
    ehsT = jnp.transpose(ehs, (0, 2, 1))                              # (B, D, S)

    # batch-invariant time-embedding MLP hoisted out of the kernel (plain XLA).
    tsin = timestep_embedding(timestep, B, BLOCK_CH)                  # (B, C)
    temb = jax.nn.silu(tsin @ p["time_w1"] + p["time_b1"])
    temb = jax.nn.silu(temb @ p["time_w2"] + p["time_b2"])
    tproj = (temb @ p["res_temb_w"] + p["res_temb_b"]).reshape(B, BLOCK_CH, 1)

    weights = (p["cin_wT"], p["wconv12"], p["cout_wT"], p["wattn"],
               p["gmbc"], p["chvec"], p["bk"])
    in_specs = ([_batch_spec(x), _batch_spec(ehs), _batch_spec(ehsT),
                 _batch_spec(tproj)] + [_full_spec(w) for w in weights])

    out = pl.pallas_call(
        _unet_fused_kernel,
        out_shape=jax.ShapeDtypeStruct((B, IN_CH, HW), jnp.float32),
        grid=(B,),
        in_specs=in_specs,
        out_specs=pl.BlockSpec((1, IN_CH, HW), lambda n: (n, 0, 0)),
        scratch_shapes=[
            pltpu.VMEM((9 * BLOCK_CH, HW), jnp.float32),   # im2col slab (reused)
        ],
        compiler_params=pltpu.CompilerParams(
            dimension_semantics=("parallel",),   # batch images -> 2 TCs on v7x
        ),
    )(x, ehs, ehsT, tproj, *weights)

    return out.reshape(B, IN_CH, H, W)          # NCHW (metadata-only reshape)


def synthetic_unet_forward(params, sample_nchw, timestep, encoder_hidden_states,
                           **unused_kwargs):
    # return_dict=False -> tuple
    return (_forward_impl(params, sample_nchw, timestep, encoder_hidden_states),)


# ----------------------------------------------------------------------------
# UnetWrapper equivalent
# ----------------------------------------------------------------------------
class UnetWrapperPallas:
    """JAX/Pallas port of sdserve UnetWrapper (wraps a synthetic UNet)."""

    def __init__(self, params, is_cnext=False):
        self.params = params
        self.is_cnext = is_cnext

    def __call__(self, sample, timestep, encoder_hidden_states,
                 class_labels=None, timestep_cond=None, attention_mask=None,
                 add_image_embeds=None, add_text_embeds=None, add_time_ids=None,
                 add_hint=None, down_block_additional_residuals=None,
                 mid_block_additional_residual=None,
                 down_intrablock_additional_residuals=None,
                 encoder_attention_mask=None, scale=None):
        controls = {}
        # (original uses tensor truthiness; `is not None` is the JAX-safe form)
        if mid_block_additional_residual is not None and scale is not None:
            controls = {"out": mid_block_additional_residual, "scale": scale}

        added_cond_kwargs = {}
        if add_text_embeds is not None and add_time_ids is not None:
            added_cond_kwargs = {"time_ids": add_time_ids,
                                 "text_embeds": add_text_embeds}
        elif add_image_embeds is not None and add_text_embeds is not None:
            # NOTE: mirrors the original PyTorch code, which passes add_time_ids
            # under the 'image_embeds' key.
            added_cond_kwargs = {"image_embeds": add_time_ids,
                                 "text_embeds": add_text_embeds}
        elif add_hint is not None and add_image_embeds is not None:
            added_cond_kwargs = {"image_embeds": add_time_ids, "hint": add_hint}
        elif add_image_embeds is not None:
            added_cond_kwargs = {"image_embeds": add_time_ids}

        # TODO(synk): is_cnext / controls / added_cond_kwargs routing kept for
        # interface parity; the synthetic UNet ignores them.
        sample = synthetic_unet_forward(
            self.params, sample, timestep, encoder_hidden_states,
            class_labels=class_labels, timestep_cond=timestep_cond,
            attention_mask=attention_mask, added_cond_kwargs=added_cond_kwargs,
            down_block_additional_residuals=down_block_additional_residuals,
            mid_block_additional_residual=mid_block_additional_residual,
            down_intrablock_additional_residuals=down_intrablock_additional_residuals,
            encoder_attention_mask=encoder_attention_mask, controls=controls)
        return sample


# ----------------------------------------------------------------------------
# Main
# ----------------------------------------------------------------------------
if __name__ == "__main__":
    key = jax.random.PRNGKey(0)
    k_param, k_sample, k_ehs = jax.random.split(key, 3)

    params = init_unet_params(k_param)
    sample = jax.random.normal(k_sample, (2, IN_CH, H, W), jnp.float32)   # NCHW
    encoder_hidden_states = jax.random.normal(k_ehs, (2, SEQ, CROSS_DIM),
                                              jnp.float32)
    timestep = jnp.asarray(10.0, jnp.float32)

    wrapper = UnetWrapperPallas(params, is_cnext=False)
    out = wrapper(sample, timestep, encoder_hidden_states)
    out = jax.block_until_ready(out)

    assert isinstance(out, tuple) and out[0].shape == sample.shape, out[0].shape
    assert bool(jnp.all(jnp.isfinite(out[0])))
    print("KERNEL_OK")
</pallas_src>

<mosaic_0001>
module attributes {stable_mosaic.version = 11 : i64} {
  func.func @_unet_fused_kernel(%arg0: i32, %arg1: memref<1x8x256xf32, #tpu.memory_space<vmem>>, %arg2: memref<1x8x32xf32, #tpu.memory_space<vmem>>, %arg3: memref<1x32x8xf32, #tpu.memory_space<vmem>>, %arg4: memref<1x32x1xf32, #tpu.memory_space<vmem>>, %arg5: memref<32x72xbf16, #tpu.memory_space<vmem>>, %arg6: memref<64x288xbf16, #tpu.memory_space<vmem>>, %arg7: memref<4x288xbf16, #tpu.memory_space<vmem>>, %arg8: memref<128x32xbf16, #tpu.memory_space<vmem>>, %arg9: memref<32x32xf32, #tpu.memory_space<vmem>>, %arg10: memref<32x13xf32, #tpu.memory_space<vmem>>, %arg11: memref<1x32xf32, #tpu.memory_space<vmem>>, %arg12: memref<1x4x256xf32, #tpu.memory_space<vmem>>, %arg13: memref<288x256xf32, #tpu.memory_space<vmem>>) attributes {dimension_semantics = [#tpu.dimension_semantics<parallel>], iteration_bounds = array<i64: 2>, scalar_prefetch = 0 : i64, scratch_operands = 1 : i64, tpu.core_type = #tpu.core_type<tc>, window_params = [{transform_indices = @transform_0, window_bounds = array<i64: 1, 8, 256>}, {transform_indices = @transform_1, window_bounds = array<i64: 1, 8, 32>}, {transform_indices = @transform_2, window_bounds = array<i64: 1, 32, 8>}, {transform_indices = @transform_3, window_bounds = array<i64: 1, 32, 1>}, {pipeline_mode = #tpu.pipeline_mode<synchronous>, transform_indices = @transform_4, window_bounds = array<i64: 32, 72>}, {pipeline_mode = #tpu.pipeline_mode<synchronous>, transform_indices = @transform_5, window_bounds = array<i64: 64, 288>}, {pipeline_mode = #tpu.pipeline_mode<synchronous>, transform_indices = @transform_6, window_bounds = array<i64: 4, 288>}, {pipeline_mode = #tpu.pipeline_mode<synchronous>, transform_indices = @transform_7, window_bounds = array<i64: 128, 32>}, {pipeline_mode = #tpu.pipeline_mode<synchronous>, transform_indices = @transform_8, window_bounds = array<i64: 32, 32>}, {pipeline_mode = #tpu.pipeline_mode<synchronous>, transform_indices = @transform_9, window_bounds = array<i64: 32, 13>}, {pipeline_mode = #tpu.pipeline_mode<synchronous>, transform_indices = @transform_10, window_bounds = array<i64: 1, 32>}, {transform_indices = @transform_11, window_bounds = array<i64: 1, 4, 256>}]} {
    %c0 = arith.constant 0 : index
    %c0_0 = arith.constant 0 : index
    %0 = vector.load %arg10[%c0, %c0_0] : memref<32x13xf32, #tpu.memory_space<vmem>>, vector<32x13xf32>
    %c0_1 = arith.constant 0 : index
    %c0_2 = arith.constant 0 : index
    %1 = vector.load %arg9[%c0_1, %c0_2] : memref<32x32xf32, #tpu.memory_space<vmem>>, vector<32x32xf32>
    %c0_3 = arith.constant 0 : index
    %c0_4 = arith.constant 0 : index
    %2 = vector.load %arg8[%c0_3, %c0_4] : memref<128x32xbf16, #tpu.memory_space<vmem>>, vector<128x32xbf16>
    %c0_5 = arith.constant 0 : index
    %c0_6 = arith.constant 0 : index
    %3 = vector.load %arg6[%c0_5, %c0_6] : memref<64x288xbf16, #tpu.memory_space<vmem>>, vector<64x288xbf16>
    %c0_7 = arith.constant 0 : index
    %c0_8 = arith.constant 0 : index
    %4 = vector.load %arg11[%c0_7, %c0_8] : memref<1x32xf32, #tpu.memory_space<vmem>>, vector<1x32xf32>
    %5 = tpu.iota {dimensions = array<i32: 1>} : vector<1x256xi32>
    %c16_i32 = arith.constant 16 : i32
    %c0_i32 = arith.constant 0 : i32
    %6 = arith.cmpi eq, %c16_i32, %c0_i32 : i32
    %c1_i32 = arith.constant 1 : i32
    %7 = arith.select %6, %c1_i32, %c16_i32 : i32
    %8 = vector.broadcast %7 : i32 to vector<1x256xi32>
    %9 = arith.remsi %5, %8 : vector<1x256xi32>
    %c0_i32_9 = arith.constant 0 : i32
    %10 = vector.broadcast %c0_i32_9 : i32 to vector<1x256xi32>
    %11 = arith.cmpi ne, %9, %10 : vector<1x256xi32>
    %c0_i32_10 = arith.constant 0 : i32
    %12 = vector.broadcast %c0_i32_10 : i32 to vector<1x256xi32>
    %13 = arith.cmpi slt, %9, %12 : vector<1x256xi32>
    %c0_i32_11 = arith.constant 0 : i32
    %14 = arith.cmpi slt, %7, %c0_i32_11 : i32
    %15 = vector.broadcast %14 : i1 to vector<1x256xi1>
    %16 = vector.broadcast %15 : vector<1x256xi1> to vector<1x256xi1>
    %17 = arith.xori %13, %16 : vector<1x256xi1>
    %18 = arith.andi %17, %11 : vector<1x256xi1>
    %19 = vector.broadcast %7 : i32 to vector<1x256xi32>
    %20 = arith.addi %9, %19 : vector<1x256xi32>
    %21 = arith.select %18, %20, %9 : vector<1x256xi1>, vector<1x256xi32>
    %c1_i32_12 = arith.constant 1 : i32
    %22 = vector.broadcast %c1_i32_12 : i32 to vector<1x256xi32>
    %23 = arith.cmpi sge, %21, %22 : vector<1x256xi32>
    %c14_i32 = arith.constant 14 : i32
    %24 = vector.broadcast %c14_i32 : i32 to vector<1x256xi32>
    %25 = arith.cmpi sle, %21, %24 : vector<1x256xi32>
    %c0_13 = arith.constant 0 : index
    %c0_14 = arith.constant 0 : index
    %c0_15 = arith.constant 0 : index
    %26 = vector.load %arg1[%c0_13, %c0_14, %c0_15] : memref<1x8x256xf32, #tpu.memory_space<vmem>>, vector<1x8x256xf32>
    %27 = vector.shape_cast %26 : vector<1x8x256xf32> to vector<8x256xf32>
    %c0_16 = arith.constant 0 : index
    %c0_17 = arith.constant 0 : index
    %28 = vector.load %arg5[%c0_16, %c0_17] : memref<32x72xbf16, #tpu.memory_space<vmem>>, vector<32x72xbf16>
    %29 = vector.extract_strided_slice %0 {offsets = [0, 0], sizes = [32, 1], strides = [1, 1]} : vector<32x13xf32> to vector<32x1xf32>
    %cst = arith.constant 0.000000e+00 : f32
    %30 = vector.broadcast %cst : f32 to vector<8x17xf32>
    %31 = vector.extract_strided_slice %27 {offsets = [0, 0], sizes = [8, 239], strides = [1, 1]} : vector<8x256xf32> to vector<8x239xf32>
    %32 = tpu.concatenate %30, %31 in 1 : vector<8x17xf32>, vector<8x239xf32> -> vector<8x256xf32>
    %cst_18 = arith.constant 0.000000e+00 : f32
    %33 = vector.shape_cast %23 : vector<1x256xi1> to vector<1x256xi1>
    %34 = vector.broadcast %33 : vector<1x256xi1> to vector<8x256xi1>
    %35 = vector.broadcast %cst_18 : f32 to vector<8x256xf32>
    %36 = arith.select %34, %32, %35 : vector<8x256xi1>, vector<8x256xf32>
    %c0_19 = arith.constant 0 : index
    %c0_20 = arith.constant 0 : index
    %37 = vector.load %arg13[%c0_19, %c0_20] : memref<288x256xf32, #tpu.memory_space<vmem>>, vector<8x256xf32>
    tpu.vector_store %arg13[%c0_19, %c0_20], %36 {strides = array<i32>} : memref<288x256xf32, #tpu.memory_space<vmem>>, vector<8x256xf32>,
    %cst_21 = arith.constant 0.000000e+00 : f32
    %38 = vector.broadcast %cst_21 : f32 to vector<8x16xf32>
    %39 = vector.extract_strided_slice %27 {offsets = [0, 0], sizes = [8, 240], strides = [1, 1]} : vector<8x256xf32> to vector<8x240xf32>
    %40 = tpu.concatenate %38, %39 in 1 : vector<8x16xf32>, vector<8x240xf32> -> vector<8x256xf32>
    %c8 = arith.constant 8 : index
    %c0_22 = arith.constant 0 : index
    %41 = vector.load %arg13[%c8, %c0_22] : memref<288x256xf32, #tpu.memory_space<vmem>>, vector<8x256xf32>
    tpu.vector_store %arg13[%c8, %c0_22], %40 {strides = array<i32>} : memref<288x256xf32, #tpu.memory_space<vmem>>, vector<8x256xf32>,
    %cst_23 = arith.constant 0.000000e+00 : f32
    %42 = vector.broadcast %cst_23 : f32 to vector<8x15xf32>
    %43 = vector.extract_strided_slice %27 {offsets = [0, 0], sizes = [8, 241], strides = [1, 1]} : vector<8x256xf32> to vector<8x241xf32>
    %44 = tpu.concatenate %42, %43 in 1 : vector<8x15xf32>, vector<8x241xf32> -> vector<8x256xf32>
    %cst_24 = arith.constant 0.000000e+00 : f32
    %45 = vector.shape_cast %25 : vector<1x256xi1> to vector<1x256xi1>
    %46 = vector.broadcast %45 : vector<1x256xi1> to vector<8x256xi1>
    %47 = vector.broadcast %cst_24 : f32 to vector<8x256xf32>
    %48 = arith.select %46, %44, %47 : vector<8x256xi1>, vector<8x256xf32>
    %c16 = arith.constant 16 : index
    %c0_25 = arith.constant 0 : index
    %49 = vector.load %arg13[%c16, %c0_25] : memref<288x256xf32, #tpu.memory_space<vmem>>, vector<8x256xf32>
    tpu.vector_store %arg13[%c16, %c0_25], %48 {strides = array<i32>} : memref<288x256xf32, #tpu.memory_space<vmem>>, vector<8x256xf32>,
    %cst_26 = arith.constant 0.000000e+00 : f32
    %50 = vector.broadcast %cst_26 : f32 to vector<8x1xf32>
    %51 = vector.extract_strided_slice %27 {offsets = [0, 0], sizes = [8, 255], strides = [1, 1]} : vector<8x256xf32> to vector<8x255xf32>
    %52 = tpu.concatenate %50, %51 in 1 : vector<8x1xf32>, vector<8x255xf32> -> vector<8x256xf32>
    %cst_27 = arith.constant 0.000000e+00 : f32
    %53 = vector.shape_cast %23 : vector<1x256xi1> to vector<1x256xi1>
    %54 = vector.broadcast %53 : vector<1x256xi1> to vector<8x256xi1>
    %55 = vector.broadcast %cst_27 : f32 to vector<8x256xf32>
    %56 = arith.select %54, %52, %55 : vector<8x256xi1>, vector<8x256xf32>
    %c24 = arith.constant 24 : index
    %c0_28 = arith.constant 0 : index
    %57 = vector.load %arg13[%c24, %c0_28] : memref<288x256xf32, #tpu.memory_space<vmem>>, vector<8x256xf32>
    tpu.vector_store %arg13[%c24, %c0_28], %56 {strides = array<i32>} : memref<288x256xf32, #tpu.memory_space<vmem>>, vector<8x256xf32>,
    %c32 = arith.constant 32 : index
    %c0_29 = arith.constant 0 : index
    %58 = vector.load %arg13[%c32, %c0_29] : memref<288x256xf32, #tpu.memory_space<vmem>>, vector<8x256xf32>
    tpu.vector_store %arg13[%c32, %c0_29], %27 {strides = array<i32>} : memref<288x256xf32, #tpu.memory_space<vmem>>, vector<8x256xf32>,
    %59 = vector.extract_strided_slice %27 {offsets = [0, 1], sizes = [8, 255], strides = [1, 1]} : vector<8x256xf32> to vector<8x255xf32>
    %cst_30 = arith.constant 0.000000e+00 : f32
    %60 = vector.broadcast %cst_30 : f32 to vector<8x1xf32>
    %61 = tpu.concatenate %59, %60 in 1 : vector<8x255xf32>, vector<8x1xf32> -> vector<8x256xf32>
    %cst_31 = arith.constant 0.000000e+00 : f32
    %62 = vector.shape_cast %25 : vector<1x256xi1> to vector<1x256xi1>
    %63 = vector.broadcast %62 : vector<1x256xi1> to vector<8x256xi1>
    %64 = vector.broadcast %cst_31 : f32 to vector<8x256xf32>
    %65 = arith.select %63, %61, %64 : vector<8x256xi1>, vector<8x256xf32>
    %c40 = arith.constant 40 : index
    %c0_32 = arith.constant 0 : index
    %66 = vector.load %arg13[%c40, %c0_32] : memref<288x256xf32, #tpu.memory_space<vmem>>, vector<8x256xf32>
    tpu.vector_store %arg13[%c40, %c0_32], %65 {strides = array<i32>} : memref<288x256xf32, #tpu.memory_space<vmem>>, vector<8x256xf32>,
    %67 = vector.extract_strided_slice %27 {offsets = [0, 15], sizes = [8, 241], strides = [1, 1]} : vector<8x256xf32> to vector<8x241xf32>
    %cst_33 = arith.constant 0.000000e+00 : f32
    %68 = vector.broadcast %cst_33 : f32 to vector<8x15xf32>
    %69 = tpu.concatenate %67, %68 in 1 : vector<8x241xf32>, vector<8x15xf32> -> vector<8x256xf32>
    %cst_34 = arith.constant 0.000000e+00 : f32
    %70 = vector.shape_cast %23 : vector<1x256xi1> to vector<1x256xi1>
    %71 = vector.broadcast %70 : vector<1x256xi1> to vector<8x256xi1>
    %72 = vector.broadcast %cst_34 : f32 to vector<8x256xf32>
    %73 = arith.select %71, %69, %72 : vector<8x256xi1>, vector<8x256xf32>
    %c48 = arith.constant 48 : index
    %c0_35 = arith.constant 0 : index
    %74 = vector.load %arg13[%c48, %c0_35] : memref<288x256xf32, #tpu.memory_space<vmem>>, vector<8x256xf32>
    tpu.vector_store %arg13[%c48, %c0_35], %73 {strides = array<i32>} : memref<288x256xf32, #tpu.memory_space<vmem>>, vector<8x256xf32>,
    %75 = vector.extract_strided_slice %27 {offsets = [0, 16], sizes = [8, 240], strides = [1, 1]} : vector<8x256xf32> to vector<8x240xf32>
    %cst_36 = arith.constant 0.000000e+00 : f32
    %76 = vector.broadcast %cst_36 : f32 to vector<8x16xf32>
    %77 = tpu.concatenate %75, %76 in 1 : vector<8x240xf32>, vector<8x16xf32> -> vector<8x256xf32>
    %c56 = arith.constant 56 : index
    %c0_37 = arith.constant 0 : index
    %78 = vector.load %arg13[%c56, %c0_37] : memref<288x256xf32, #tpu.memory_space<vmem>>, vector<8x256xf32>
    tpu.vector_store %arg13[%c56, %c0_37], %77 {strides = array<i32>} : memref<288x256xf32, #tpu.memory_space<vmem>>, vector<8x256xf32>,
    %79 = vector.extract_strided_slice %27 {offsets = [0, 17], sizes = [8, 239], strides = [1, 1]} : vector<8x256xf32> to vector<8x239xf32>
    %cst_38 = arith.constant 0.000000e+00 : f32
    %80 = vector.broadcast %cst_38 : f32 to vector<8x17xf32>
    %81 = tpu.concatenate %79, %80 in 1 : vector<8x239xf32>, vector<8x17xf32> -> vector<8x256xf32>
    %cst_39 = arith.constant 0.000000e+00 : f32
    %82 = vector.shape_cast %25 : vector<1x256xi1> to vector<1x256xi1>
    %83 = vector.broadcast %82 : vector<1x256xi1> to vector<8x256xi1>
    %84 = vector.broadcast %cst_39 : f32 to vector<8x256xf32>
    %85 = arith.select %83, %81, %84 : vector<8x256xi1>, vector<8x256xf32>
    %c64 = arith.constant 64 : index
    %c0_40 = arith.constant 0 : index
    %86 = vector.load %arg13[%c64, %c0_40] : memref<288x256xf32, #tpu.memory_space<vmem>>, vector<8x256xf32>
    tpu.vector_store %arg13[%c64, %c0_40], %85 {strides = array<i32>} : memref<288x256xf32, #tpu.memory_space<vmem>>, vector<8x256xf32>,
    %c0_41 = arith.constant 0 : index
    %c0_42 = arith.constant 0 : index
    %87 = vector.load %arg13[%c0_41, %c0_42] : memref<288x256xf32, #tpu.memory_space<vmem>>, vector<72x256xf32>
    %88 = arith.truncf %87 : vector<72x256xf32> to vector<72x256xbf16>
    %cst_43 = arith.constant dense<0.000000e+00> : vector<32x256xf32>
    %89 = tpu.matmul %28, %88, %cst_43 {dimension_numbers = #tpu.dot_dimension_numbers<[1], [0], [0], [1], [0, 0, 1, 1], [], []>} : vector<32x72xbf16>, vector<72x256xbf16>, vector<32x256xf32> -> vector<32x256xf32>
    %90 = vector.broadcast %29 : vector<32x1xf32> to vector<32x256xf32>
    %91 = arith.addf %89, %90 : vector<32x256xf32>
    %92 = vector.extract_strided_slice %0 {offsets = [0, 1], sizes = [32, 1], strides = [1, 1]} : vector<32x13xf32> to vector<32x1xf32>
    %93 = vector.extract_strided_slice %0 {offsets = [0, 2], sizes = [32, 1], strides = [1, 1]} : vector<32x13xf32> to vector<32x1xf32>
    %cst_44 = arith.constant dense<0.000000e+00> : vector<32xf32>
    %94 = vector.multi_reduction <add>, %91, %cst_44 [1] : vector<32x256xf32> to vector<32xf32>
    %95 = vector.shape_cast %94 : vector<32xf32> to vector<32x1xf32>
    %96 = arith.mulf %91, %91 : vector<32x256xf32>
    %cst_45 = arith.constant dense<0.000000e+00> : vector<32xf32>
    %97 = vector.multi_reduction <add>, %96, %cst_45 [1] : vector<32x256xf32> to vector<32xf32>
    %98 = vector.shape_cast %97 : vector<32xf32> to vector<32x1xf32>
    %99 = tpu.concatenate %95, %98 in 1 : vector<32x1xf32>, vector<32x1xf32> -> vector<32x2xf32>
    %cst_46 = arith.constant dense<0.000000e+00> : vector<32x2xf32>
    %100 = tpu.matmul %1, %99, %cst_46 {dimension_numbers = #tpu.dot_dimension_numbers<[1], [0], [0], [1], [0, 0, 1, 1], [], []>} : vector<32x32xf32>, vector<32x2xf32>, vector<32x2xf32> -> vector<32x2xf32>
    %101 = vector.extract_strided_slice %100 {offsets = [0, 0], sizes = [32, 1], strides = [1, 1]} : vector<32x2xf32> to vector<32x1xf32>
    %cst_47 = arith.constant 9.765625E-4 : f32
    %102 = vector.broadcast %cst_47 : f32 to vector<32x1xf32>
    %103 = arith.mulf %101, %102 : vector<32x1xf32>
    %104 = vector.extract_strided_slice %100 {offsets = [0, 1], sizes = [32, 1], strides = [1, 1]} : vector<32x2xf32> to vector<32x1xf32>
    %cst_48 = arith.constant 9.765625E-4 : f32
    %105 = vector.broadcast %cst_48 : f32 to vector<32x1xf32>
    %106 = arith.mulf %104, %105 : vector<32x1xf32>
    %107 = arith.mulf %103, %103 : vector<32x1xf32>
    %108 = arith.subf %106, %107 : vector<32x1xf32>
    %109 = vector.broadcast %103 : vector<32x1xf32> to vector<32x256xf32>
    %110 = arith.subf %91, %109 : vector<32x256xf32>
    %cst_49 = arith.constant 9.99999974E-6 : f32
    %111 = vector.broadcast %cst_49 : f32 to vector<32x1xf32>
    %112 = arith.addf %108, %111 : vector<32x1xf32>
    %113 = math.rsqrt %112 : vector<32x1xf32>
    %114 = vector.broadcast %113 : vector<32x1xf32> to vector<32x256xf32>
    %115 = arith.mulf %110, %114 : vector<32x256xf32>
    %116 = vector.broadcast %92 : vector<32x1xf32> to vector<32x256xf32>
    %117 = arith.mulf %115, %116 : vector<32x256xf32>
    %118 = vector.broadcast %93 : vector<32x1xf32> to vector<32x256xf32>
    %119 = arith.addf %117, %118 : vector<32x256xf32>
    %120 = arith.negf %119 : vector<32x256xf32>
    %121 = math.exp %120 : vector<32x256xf32>
    %cst_50 = arith.constant 1.000000e+00 : f32
    %122 = vector.broadcast %cst_50 : f32 to vector<32x256xf32>
    %123 = arith.addf %122, %121 : vector<32x256xf32>
    %124 = arith.divf %122, %123 : vector<32x256xf32>
    %125 = arith.mulf %119, %124 : vector<32x256xf32>
    %126 = vector.extract_strided_slice %3 {offsets = [0, 0], sizes = [32, 288], strides = [1, 1]} : vector<64x288xbf16> to vector<32x288xbf16>
    %127 = vector.extract_strided_slice %0 {offsets = [0, 3], sizes = [32, 1], strides = [1, 1]} : vector<32x13xf32> to vector<32x1xf32>
    %cst_51 = arith.constant 0.000000e+00 : f32
    %128 = vector.broadcast %cst_51 : f32 to vector<32x17xf32>
    %129 = vector.extract_strided_slice %125 {offsets = [0, 0], sizes = [32, 239], strides = [1, 1]} : vector<32x256xf32> to vector<32x239xf32>
    %130 = tpu.concatenate %128, %129 in 1 : vector<32x17xf32>, vector<32x239xf32> -> vector<32x256xf32>
    %cst_52 = arith.constant 0.000000e+00 : f32
    %131 = vector.shape_cast %23 : vector<1x256xi1> to vector<1x256xi1>
    %132 = vector.broadcast %131 : vector<1x256xi1> to vector<32x256xi1>
    %133 = vector.broadcast %cst_52 : f32 to vector<32x256xf32>
    %134 = arith.select %132, %130, %133 : vector<32x256xi1>, vector<32x256xf32>
    %c0_53 = arith.constant 0 : index
    %c0_54 = arith.constant 0 : index
    %135 = vector.load %arg13[%c0_53, %c0_54] : memref<288x256xf32, #tpu.memory_space<vmem>>, vector<32x256xf32>
    tpu.vector_store %arg13[%c0_53, %c0_54], %134 {strides = array<i32>} : memref<288x256xf32, #tpu.memory_space<vmem>>, vector<32x256xf32>,
    %cst_55 = arith.constant 0.000000e+00 : f32
    %136 = vector.broadcast %cst_55 : f32 to vector<32x16xf32>
    %137 = vector.extract_strided_slice %125 {offsets = [0, 0], sizes = [32, 240], strides = [1, 1]} : vector<32x256xf32> to vector<32x240xf32>
    %138 = tpu.concatenate %136, %137 in 1 : vector<32x16xf32>, vector<32x240xf32> -> vector<32x256xf32>
    %c32_56 = arith.constant 32 : index
    %c0_57 = arith.constant 0 : index
    %139 = vector.load %arg13[%c32_56, %c0_57] : memref<288x256xf32, #tpu.memory_space<vmem>>, vector<32x256xf32>
    tpu.vector_store %arg13[%c32_56, %c0_57], %138 {strides = array<i32>} : memref<288x256xf32, #tpu.memory_space<vmem>>, vector<32x256xf32>,
    %cst_58 = arith.constant 0.000000e+00 : f32
    %140 = vector.broadcast %cst_58 : f32 to vector<32x15xf32>
    %141 = vector.extract_strided_slice %125 {offsets = [0, 0], sizes = [32, 241], strides = [1, 1]} : vector<32x256xf32> to vector<32x241xf32>
    %142 = tpu.concatenate %140, %141 in 1 : vector<32x15xf32>, vector<32x241xf32> -> vector<32x256xf32>
    %cst_59 = arith.constant 0.000000e+00 : f32
    %143 = vector.shape_cast %25 : vector<1x256xi1> to vector<1x256xi1>
    %144 = vector.broadcast %143 : vector<1x256xi1> to vector<32x256xi1>
    %145 = vector.broadcast %cst_59 : f32 to vector<32x256xf32>
    %146 = arith.select %144, %142, %145 : vector<32x256xi1>, vector<32x256xf32>
    %c64_60 = arith.constant 64 : index
    %c0_61 = arith.constant 0 : index
    %147 = vector.load %arg13[%c64_60, %c0_61] : memref<288x256xf32, #tpu.memory_space<vmem>>, vector<32x256xf32>
    tpu.vector_store %arg13[%c64_60, %c0_61], %146 {strides = array<i32>} : memref<288x256xf32, #tpu.memory_space<vmem>>, vector<32x256xf32>,
    %cst_62 = arith.constant 0.000000e+00 : f32
    %148 = vector.broadcast %cst_62 : f32 to vector<32x1xf32>
    %149 = vector.extract_strided_slice %125 {offsets = [0, 0], sizes = [32, 255], strides = [1, 1]} : vector<32x256xf32> to vector<32x255xf32>
    %150 = tpu.concatenate %148, %149 in 1 : vector<32x1xf32>, vector<32x255xf32> -> vector<32x256xf32>
    %cst_63 = arith.constant 0.000000e+00 : f32
    %151 = vector.shape_cast %23 : vector<1x256xi1> to vector<1x256xi1>
    %152 = vector.broadcast %151 : vector<1x256xi1> to vector<32x256xi1>
    %153 = vector.broadcast %cst_63 : f32 to vector<32x256xf32>
    %154 = arith.select %152, %150, %153 : vector<32x256xi1>, vector<32x256xf32>
    %c96 = arith.constant 96 : index
    %c0_64 = arith.constant 0 : index
    %155 = vector.load %arg13[%c96, %c0_64] : memref<288x256xf32, #tpu.memory_space<vmem>>, vector<32x256xf32>
    tpu.vector_store %arg13[%c96, %c0_64], %154 {strides = array<i32>} : memref<288x256xf32, #tpu.memory_space<vmem>>, vector<32x256xf32>,
    %c128 = arith.constant 128 : index
    %c0_65 = arith.constant 0 : index
    %156 = vector.load %arg13[%c128, %c0_65] : memref<288x256xf32, #tpu.memory_space<vmem>>, vector<32x256xf32>
    tpu.vector_store %arg13[%c128, %c0_65], %125 {strides = array<i32>} : memref<288x256xf32, #tpu.memory_space<vmem>>, vector<32x256xf32>,
    %157 = vector.extract_strided_slice %125 {offsets = [0, 1], sizes = [32, 255], strides = [1, 1]} : vector<32x256xf32> to vector<32x255xf32>
    %cst_66 = arith.constant 0.000000e+00 : f32
    %158 = vector.broadcast %cst_66 : f32 to vector<32x1xf32>
    %159 = tpu.concatenate %157, %158 in 1 : vector<32x255xf32>, vector<32x1xf32> -> vector<32x256xf32>
    %cst_67 = arith.constant 0.000000e+00 : f32
    %160 = vector.shape_cast %25 : vector<1x256xi1> to vector<1x256xi1>
    %161 = vector.broadcast %160 : vector<1x256xi1> to vector<32x256xi1>
    %162 = vector.broadcast %cst_67 : f32 to vector<32x256xf32>
    %163 = arith.select %161, %159, %162 : vector<32x256xi1>, vector<32x256xf32>
    %c160 = arith.constant 160 : index
    %c0_68 = arith.constant 0 : index
    %164 = vector.load %arg13[%c160, %c0_68] : memref<288x256xf32, #tpu.memory_space<vmem>>, vector<32x256xf32>
    tpu.vector_store %arg13[%c160, %c0_68], %163 {strides = array<i32>} : memref<288x256xf32, #tpu.memory_space<vmem>>, vector<32x256xf32>,
    %165 = vector.extract_strided_slice %125 {offsets = [0, 15], sizes = [32, 241], strides = [1, 1]} : vector<32x256xf32> to vector<32x241xf32>
    %cst_69 = arith.constant 0.000000e+00 : f32
    %166 = vector.broadcast %cst_69 : f32 to vector<32x15xf32>
    %167 = tpu.concatenate %165, %166 in 1 : vector<32x241xf32>, vector<32x15xf32> -> vector<32x256xf32>
    %cst_70 = arith.constant 0.000000e+00 : f32
    %168 = vector.shape_cast %23 : vector<1x256xi1> to vector<1x256xi1>
    %169 = vector.broadcast %168 : vector<1x256xi1> to vector<32x256xi1>
    %170 = vector.broadcast %cst_70 : f32 to vector<32x256xf32>
    %171 = arith.select %169, %167, %170 : vector<32x256xi1>, vector<32x256xf32>
    %c192 = arith.constant 192 : index
    %c0_71 = arith.constant 0 : index
    %172 = vector.load %arg13[%c192, %c0_71] : memref<288x256xf32, #tpu.memory_space<vmem>>, vector<32x256xf32>
    tpu.vector_store %arg13[%c192, %c0_71], %171 {strides = array<i32>} : memref<288x256xf32, #tpu.memory_space<vmem>>, vector<32x256xf32>,
    %173 = vector.extract_strided_slice %125 {offsets = [0, 16], sizes = [32, 240], strides = [1, 1]} : vector<32x256xf32> to vector<32x240xf32>
    %cst_72 = arith.constant 0.000000e+00 : f32
    %174 = vector.broadcast %cst_72 : f32 to vector<32x16xf32>
    %175 = tpu.concatenate %173, %174 in 1 : vector<32x240xf32>, vector<32x16xf32> -> vector<32x256xf32>
    %c224 = arith.constant 224 : index
    %c0_73 = arith.constant 0 : index
    %176 = vector.load %arg13[%c224, %c0_73] : memref<288x256xf32, #tpu.memory_space<vmem>>, vector<32x256xf32>
    tpu.vector_store %arg13[%c224, %c0_73], %175 {strides = array<i32>} : memref<288x256xf32, #tpu.memory_space<vmem>>, vector<32x256xf32>,
    %177 = vector.extract_strided_slice %125 {offsets = [0, 17], sizes = [32, 239], strides = [1, 1]} : vector<32x256xf32> to vector<32x239xf32>
    %cst_74 = arith.constant 0.000000e+00 : f32
    %178 = vector.broadcast %cst_74 : f32 to vector<32x17xf32>
    %179 = tpu.concatenate %177, %178 in 1 : vector<32x239xf32>, vector<32x17xf32> -> vector<32x256xf32>
    %cst_75 = arith.constant 0.000000e+00 : f32
    %180 = vector.shape_cast %25 : vector<1x256xi1> to vector<1x256xi1>
    %181 = vector.broadcast %180 : vector<1x256xi1> to vector<32x256xi1>
    %182 = vector.broadcast %cst_75 : f32 to vector<32x256xf32>
    %183 = arith.select %181, %179, %182 : vector<32x256xi1>, vector<32x256xf32>
    %c256 = arith.constant 256 : index
    %c0_76 = arith.constant 0 : index
    %184 = vector.load %arg13[%c256, %c0_76] : memref<288x256xf32, #tpu.memory_space<vmem>>, vector<32x256xf32>
    tpu.vector_store %arg13[%c256, %c0_76], %183 {strides = array<i32>} : memref<288x256xf32, #tpu.memory_space<vmem>>, vector<32x256xf32>,
    %c0_77 = arith.constant 0 : index
    %c0_78 = arith.constant 0 : index
    %185 = vector.load %arg13[%c0_77, %c0_78] : memref<288x256xf32, #tpu.memory_space<vmem>>, vector<288x256xf32>
    %186 = arith.truncf %185 : vector<288x256xf32> to vector<288x256xbf16>
    %cst_79 = arith.constant dense<0.000000e+00> : vector<32x256xf32>
    %187 = tpu.matmul %126, %186, %cst_79 {dimension_numbers = #tpu.dot_dimension_numbers<[1], [0], [0], [1], [0, 0, 1, 1], [], []>} : vector<32x288xbf16>, vector<288x256xbf16>, vector<32x256xf32> -> vector<32x256xf32>
    %188 = vector.broadcast %127 : vector<32x1xf32> to vector<32x256xf32>
    %189 = arith.addf %187, %188 : vector<32x256xf32>
    %c0_80 = arith.constant 0 : index
    %c0_81 = arith.constant 0 : index
    %c0_82 = arith.constant 0 : index
    %190 = vector.load %arg4[%c0_80, %c0_81, %c0_82] : memref<1x32x1xf32, #tpu.memory_space<vmem>>, vector<1x32x1xf32>
    %191 = vector.shape_cast %190 : vector<1x32x1xf32> to vector<32x1xf32>
    %192 = vector.broadcast %191 : vector<32x1xf32> to vector<32x256xf32>
    %193 = arith.addf %189, %192 : vector<32x256xf32>
    %194 = vector.extract_strided_slice %0 {offsets = [0, 4], sizes = [32, 1], strides = [1, 1]} : vector<32x13xf32> to vector<32x1xf32>
    %195 = vector.extract_strided_slice %0 {offsets = [0, 5], sizes = [32, 1], strides = [1, 1]} : vector<32x13xf32> to vector<32x1xf32>
    %cst_83 = arith.constant dense<0.000000e+00> : vector<32xf32>
    %196 = vector.multi_reduction <add>, %193, %cst_83 [1] : vector<32x256xf32> to vector<32xf32>
    %197 = vector.shape_cast %196 : vector<32xf32> to vector<32x1xf32>
    %198 = arith.mulf %193, %193 : vector<32x256xf32>
    %cst_84 = arith.constant dense<0.000000e+00> : vector<32xf32>
    %199 = vector.multi_reduction <add>, %198, %cst_84 [1] : vector<32x256xf32> to vector<32xf32>
    %200 = vector.shape_cast %199 : vector<32xf32> to vector<32x1xf32>
    %201 = tpu.concatenate %197, %200 in 1 : vector<32x1xf32>, vector<32x1xf32> -> vector<32x2xf32>
    %cst_85 = arith.constant dense<0.000000e+00> : vector<32x2xf32>
    %202 = tpu.matmul %1, %201, %cst_85 {dimension_numbers = #tpu.dot_dimension_numbers<[1], [0], [0], [1], [0, 0, 1, 1], [], []>} : vector<32x32xf32>, vector<32x2xf32>, vector<32x2xf32> -> vector<32x2xf32>
    %203 = vector.extract_strided_slice %202 {offsets = [0, 0], sizes = [32, 1], strides = [1, 1]} : vector<32x2xf32> to vector<32x1xf32>
    %cst_86 = arith.constant 9.765625E-4 : f32
    %204 = vector.broadcast %cst_86 : f32 to vector<32x1xf32>
    %205 = arith.mulf %203, %204 : vector<32x1xf32>
    %206 = vector.extract_strided_slice %202 {offsets = [0, 1], sizes = [32, 1], strides = [1, 1]} : vector<32x2xf32> to vector<32x1xf32>
    %cst_87 = arith.constant 9.765625E-4 : f32
    %207 = vector.broadcast %cst_87 : f32 to vector<32x1xf32>
    %208 = arith.mulf %206, %207 : vector<32x1xf32>
    %209 = arith.mulf %205, %205 : vector<32x1xf32>
    %210 = arith.subf %208, %209 : vector<32x1xf32>
    %211 = vector.broadcast %205 : vector<32x1xf32> to vector<32x256xf32>
    %212 = arith.subf %193, %211 : vector<32x256xf32>
    %cst_88 = arith.constant 9.99999974E-6 : f32
    %213 = vector.broadcast %cst_88 : f32 to vector<32x1xf32>
    %214 = arith.addf %210, %213 : vector<32x1xf32>
    %215 = math.rsqrt %214 : vector<32x1xf32>
    %216 = vector.broadcast %215 : vector<32x1xf32> to vector<32x256xf32>
    %217 = arith.mulf %212, %216 : vector<32x256xf32>
    %218 = vector.broadcast %194 : vector<32x1xf32> to vector<32x256xf32>
    %219 = arith.mulf %217, %218 : vector<32x256xf32>
    %220 = vector.broadcast %195 : vector<32x1xf32> to vector<32x256xf32>
    %221 = arith.addf %219, %220 : vector<32x256xf32>
    %222 = arith.negf %221 : vector<32x256xf32>
    %223 = math.exp %222 : vector<32x256xf32>
    %cst_89 = arith.constant 1.000000e+00 : f32
    %224 = vector.broadcast %cst_89 : f32 to vector<32x256xf32>
    %225 = arith.addf %224, %223 : vector<32x256xf32>
    %226 = arith.divf %224, %225 : vector<32x256xf32>
    %227 = arith.mulf %221, %226 : vector<32x256xf32>
    %228 = vector.extract_strided_slice %3 {offsets = [32, 0], sizes = [32, 288], strides = [1, 1]} : vector<64x288xbf16> to vector<32x288xbf16>
    %229 = vector.extract_strided_slice %0 {offsets = [0, 6], sizes = [32, 1], strides = [1, 1]} : vector<32x13xf32> to vector<32x1xf32>
    %cst_90 = arith.constant 0.000000e+00 : f32
    %230 = vector.broadcast %cst_90 : f32 to vector<32x17xf32>
    %231 = vector.extract_strided_slice %227 {offsets = [0, 0], sizes = [32, 239], strides = [1, 1]} : vector<32x256xf32> to vector<32x239xf32>
    %232 = tpu.concatenate %230, %231 in 1 : vector<32x17xf32>, vector<32x239xf32> -> vector<32x256xf32>
    %cst_91 = arith.constant 0.000000e+00 : f32
    %233 = vector.shape_cast %23 : vector<1x256xi1> to vector<1x256xi1>
    %234 = vector.broadcast %233 : vector<1x256xi1> to vector<32x256xi1>
    %235 = vector.broadcast %cst_91 : f32 to vector<32x256xf32>
    %236 = arith.select %234, %232, %235 : vector<32x256xi1>, vector<32x256xf32>
    %c0_92 = arith.constant 0 : index
    %c0_93 = arith.constant 0 : index
    %237 = vector.load %arg13[%c0_92, %c0_93] : memref<288x256xf32, #tpu.memory_space<vmem>>, vector<32x256xf32>
    tpu.vector_store %arg13[%c0_92, %c0_93], %236 {strides = array<i32>} : memref<288x256xf32, #tpu.memory_space<vmem>>, vector<32x256xf32>,
    %cst_94 = arith.constant 0.000000e+00 : f32
    %238 = vector.broadcast %cst_94 : f32 to vector<32x16xf32>
    %239 = vector.extract_strided_slice %227 {offsets = [0, 0], sizes = [32, 240], strides = [1, 1]} : vector<32x256xf32> to vector<32x240xf32>
    %240 = tpu.concatenate %238, %239 in 1 : vector<32x16xf32>, vector<32x240xf32> -> vector<32x256xf32>
    %c32_95 = arith.constant 32 : index
    %c0_96 = arith.constant 0 : index
    %241 = vector.load %arg13[%c32_95, %c0_96] : memref<288x256xf32, #tpu.memory_space<vmem>>, vector<32x256xf32>
    tpu.vector_store %arg13[%c32_95, %c0_96], %240 {strides = array<i32>} : memref<288x256xf32, #tpu.memory_space<vmem>>, vector<32x256xf32>,
    %cst_97 = arith.constant 0.000000e+00 : f32
    %242 = vector.broadcast %cst_97 : f32 to vector<32x15xf32>
    %243 = vector.extract_strided_slice %227 {offsets = [0, 0], sizes = [32, 241], strides = [1, 1]} : vector<32x256xf32> to vector<32x241xf32>
    %244 = tpu.concatenate %242, %243 in 1 : vector<32x15xf32>, vector<32x241xf32> -> vector<32x256xf32>
    %cst_98 = arith.constant 0.000000e+00 : f32
    %245 = vector.shape_cast %25 : vector<1x256xi1> to vector<1x256xi1>
    %246 = vector.broadcast %245 : vector<1x256xi1> to vector<32x256xi1>
    %247 = vector.broadcast %cst_98 : f32 to vector<32x256xf32>
    %248 = arith.select %246, %244, %247 : vector<32x256xi1>, vector<32x256xf32>
    %c64_99 = arith.constant 64 : index
    %c0_100 = arith.constant 0 : index
    %249 = vector.load %arg13[%c64_99, %c0_100] : memref<288x256xf32, #tpu.memory_space<vmem>>, vector<32x256xf32>
    tpu.vector_store %arg13[%c64_99, %c0_100], %248 {strides = array<i32>} : memref<288x256xf32, #tpu.memory_space<vmem>>, vector<32x256xf32>,
    %cst_101 = arith.constant 0.000000e+00 : f32
    %250 = vector.broadcast %cst_101 : f32 to vector<32x1xf32>
    %251 = vector.extract_strided_slice %227 {offsets = [0, 0], sizes = [32, 255], strides = [1, 1]} : vector<32x256xf32> to vector<32x255xf32>
    %252 = tpu.concatenate %250, %251 in 1 : vector<32x1xf32>, vector<32x255xf32> -> vector<32x256xf32>
    %cst_102 = arith.constant 0.000000e+00 : f32
    %253 = vector.shape_cast %23 : vector<1x256xi1> to vector<1x256xi1>
    %254 = vector.broadcast %253 : vector<1x256xi1> to vector<32x256xi1>
    %255 = vector.broadcast %cst_102 : f32 to vector<32x256xf32>
    %256 = arith.select %254, %252, %255 : vector<32x256xi1>, vector<32x256xf32>
    %c96_103 = arith.constant 96 : index
    %c0_104 = arith.constant 0 : index
    %257 = vector.load %arg13[%c96_103, %c0_104] : memref<288x256xf32, #tpu.memory_space<vmem>>, vector<32x256xf32>
    tpu.vector_store %arg13[%c96_103, %c0_104], %256 {strides = array<i32>} : memref<288x256xf32, #tpu.memory_space<vmem>>, vector<32x256xf32>,
    %c128_105 = arith.constant 128 : index
    %c0_106 = arith.constant 0 : index
    %258 = vector.load %arg13[%c128_105, %c0_106] : memref<288x256xf32, #tpu.memory_space<vmem>>, vector<32x256xf32>
    tpu.vector_store %arg13[%c128_105, %c0_106], %227 {strides = array<i32>} : memref<288x256xf32, #tpu.memory_space<vmem>>, vector<32x256xf32>,
    %259 = vector.extract_strided_slice %227 {offsets = [0, 1], sizes = [32, 255], strides = [1, 1]} : vector<32x256xf32> to vector<32x255xf32>
    %cst_107 = arith.constant 0.000000e+00 : f32
    %260 = vector.broadcast %cst_107 : f32 to vector<32x1xf32>
    %261 = tpu.concatenate %259, %260 in 1 : vector<32x255xf32>, vector<32x1xf32> -> vector<32x256xf32>
    %cst_108 = arith.constant 0.000000e+00 : f32
    %262 = vector.shape_cast %25 : vector<1x256xi1> to vector<1x256xi1>
    %263 = vector.broadcast %262 : vector<1x256xi1> to vector<32x256xi1>
    %264 = vector.broadcast %cst_108 : f32 to vector<32x256xf32>
    %265 = arith.select %263, %261, %264 : vector<32x256xi1>, vector<32x256xf32>
    %c160_109 = arith.constant 160 : index
    %c0_110 = arith.constant 0 : index
    %266 = vector.load %arg13[%c160_109, %c0_110] : memref<288x256xf32, #tpu.memory_space<vmem>>, vector<32x256xf32>
    tpu.vector_store %arg13[%c160_109, %c0_110], %265 {strides = array<i32>} : memref<288x256xf32, #tpu.memory_space<vmem>>, vector<32x256xf32>,
    %267 = vector.extract_strided_slice %227 {offsets = [0, 15], sizes = [32, 241], strides = [1, 1]} : vector<32x256xf32> to vector<32x241xf32>
    %cst_111 = arith.constant 0.000000e+00 : f32
    %268 = vector.broadcast %cst_111 : f32 to vector<32x15xf32>
    %269 = tpu.concatenate %267, %268 in 1 : vector<32x241xf32>, vector<32x15xf32> -> vector<32x256xf32>
    %cst_112 = arith.constant 0.000000e+00 : f32
    %270 = vector.shape_cast %23 : vector<1x256xi1> to vector<1x256xi1>
    %271 = vector.broadcast %270 : vector<1x256xi1> to vector<32x256xi1>
    %272 = vector.broadcast %cst_112 : f32 to vector<32x256xf32>
    %273 = arith.select %271, %269, %272 : vector<32x256xi1>, vector<32x256xf32>
    %c192_113 = arith.constant 192 : index
    %c0_114 = arith.constant 0 : index
    %274 = vector.load %arg13[%c192_113, %c0_114] : memref<288x256xf32, #tpu.memory_space<vmem>>, vector<32x256xf32>
    tpu.vector_store %arg13[%c192_113, %c0_114], %273 {strides = array<i32>} : memref<288x256xf32, #tpu.memory_space<vmem>>, vector<32x256xf32>,
    %275 = vector.extract_strided_slice %227 {offsets = [0, 16], sizes = [32, 240], strides = [1, 1]} : vector<32x256xf32> to vector<32x240xf32>
    %cst_115 = arith.constant 0.000000e+00 : f32
    %276 = vector.broadcast %cst_115 : f32 to vector<32x16xf32>
    %277 = tpu.concatenate %275, %276 in 1 : vector<32x240xf32>, vector<32x16xf32> -> vector<32x256xf32>
    %c224_116 = arith.constant 224 : index
    %c0_117 = arith.constant 0 : index
    %278 = vector.load %arg13[%c224_116, %c0_117] : memref<288x256xf32, #tpu.memory_space<vmem>>, vector<32x256xf32>
    tpu.vector_store %arg13[%c224_116, %c0_117], %277 {strides = array<i32>} : memref<288x256xf32, #tpu.memory_space<vmem>>, vector<32x256xf32>,
    %279 = vector.extract_strided_slice %227 {offsets = [0, 17], sizes = [32, 239], strides = [1, 1]} : vector<32x256xf32> to vector<32x239xf32>
    %cst_118 = arith.constant 0.000000e+00 : f32
    %280 = vector.broadcast %cst_118 : f32 to vector<32x17xf32>
    %281 = tpu.concatenate %279, %280 in 1 : vector<32x239xf32>, vector<32x17xf32> -> vector<32x256xf32>
    %cst_119 = arith.constant 0.000000e+00 : f32
    %282 = vector.shape_cast %25 : vector<1x256xi1> to vector<1x256xi1>
    %283 = vector.broadcast %282 : vector<1x256xi1> to vector<32x256xi1>
    %284 = vector.broadcast %cst_119 : f32 to vector<32x256xf32>
    %285 = arith.select %283, %281, %284 : vector<32x256xi1>, vector<32x256xf32>
    %c256_120 = arith.constant 256 : index
    %c0_121 = arith.constant 0 : index
    %286 = vector.load %arg13[%c256_120, %c0_121] : memref<288x256xf32, #tpu.memory_space<vmem>>, vector<32x256xf32>
    tpu.vector_store %arg13[%c256_120, %c0_121], %285 {strides = array<i32>} : memref<288x256xf32, #tpu.memory_space<vmem>>, vector<32x256xf32>,
    %c0_122 = arith.constant 0 : index
    %c0_123 = arith.constant 0 : index
    %287 = vector.load %arg13[%c0_122, %c0_123] : memref<288x256xf32, #tpu.memory_space<vmem>>, vector<288x256xf32>
    %288 = arith.truncf %287 : vector<288x256xf32> to vector<288x256xbf16>
    %cst_124 = arith.constant dense<0.000000e+00> : vector<32x256xf32>
    %289 = tpu.matmul %228, %288, %cst_124 {dimension_numbers = #tpu.dot_dimension_numbers<[1], [0], [0], [1], [0, 0, 1, 1], [], []>} : vector<32x288xbf16>, vector<288x256xbf16>, vector<32x256xf32> -> vector<32x256xf32>
    %290 = vector.broadcast %229 : vector<32x1xf32> to vector<32x256xf32>
    %291 = arith.addf %289, %290 : vector<32x256xf32>
    %292 = arith.addf %291, %91 : vector<32x256xf32>
    %293 = vector.extract_strided_slice %2 {offsets = [0, 0], sizes = [32, 32], strides = [1, 1]} : vector<128x32xbf16> to vector<32x32xbf16>
    %294 = arith.truncf %292 : vector<32x256xf32> to vector<32x256xbf16>
    %cst_125 = arith.constant dense<0.000000e+00> : vector<32x256xf32>
    %295 = tpu.matmul %293, %294, %cst_125 {dimension_numbers = #tpu.dot_dimension_numbers<[1], [0], [0], [1], [0, 0, 1, 1], [], []>} : vector<32x32xbf16>, vector<32x256xbf16>, vector<32x256xf32> -> vector<32x256xf32>
    %296 = vector.extract_strided_slice %0 {offsets = [0, 7], sizes = [32, 1], strides = [1, 1]} : vector<32x13xf32> to vector<32x1xf32>
    %297 = vector.broadcast %296 : vector<32x1xf32> to vector<32x256xf32>
    %298 = arith.addf %295, %297 : vector<32x256xf32>
    %c0_126 = arith.constant 0 : index
    %c0_127 = arith.constant 0 : index
    %c0_128 = arith.constant 0 : index
    %299 = vector.load %arg2[%c0_126, %c0_127, %c0_128] : memref<1x8x32xf32, #tpu.memory_space<vmem>>, vector<1x8x32xf32>
    %300 = vector.shape_cast %299 : vector<1x8x32xf32> to vector<8x32xf32>
    %301 = arith.truncf %300 : vector<8x32xf32> to vector<8x32xbf16>
    %c0_129 = arith.constant 0 : index
    %c0_130 = arith.constant 0 : index
    %c0_131 = arith.constant 0 : index
    %302 = vector.load %arg3[%c0_129, %c0_130, %c0_131] : memref<1x32x8xf32, #tpu.memory_space<vmem>>, vector<1x32x8xf32>
    %303 = vector.shape_cast %302 : vector<1x32x8xf32> to vector<32x8xf32>
    %304 = arith.truncf %303 : vector<32x8xf32> to vector<32x8xbf16>
    %305 = vector.extract_strided_slice %2 {offsets = [96, 0], sizes = [32, 32], strides = [1, 1]} : vector<128x32xbf16> to vector<32x32xbf16>
    %cst_132 = arith.constant dense<0.000000e+00> : vector<8x32xf32>
    %306 = tpu.matmul %301, %305, %cst_132 {dimension_numbers = #tpu.dot_dimension_numbers<[1], [0], [0], [1], [0, 0, 1, 1], [], []>} : vector<8x32xbf16>, vector<32x32xbf16>, vector<8x32xf32> -> vector<8x32xf32>
    %307 = vector.broadcast %4 : vector<1x32xf32> to vector<8x32xf32>
    %308 = arith.addf %306, %307 : vector<8x32xf32>
    %309 = vector.extract_strided_slice %2 {offsets = [64, 0], sizes = [32, 32], strides = [1, 1]} : vector<128x32xbf16> to vector<32x32xbf16>
    %cst_133 = arith.constant dense<0.000000e+00> : vector<32x8xf32>
    %310 = tpu.matmul %309, %304, %cst_133 {dimension_numbers = #tpu.dot_dimension_numbers<[1], [0], [0], [1], [0, 0, 1, 1], [], []>} : vector<32x32xbf16>, vector<32x8xbf16>, vector<32x8xf32> -> vector<32x8xf32>
    %311 = vector.extract_strided_slice %0 {offsets = [0, 9], sizes = [32, 1], strides = [1, 1]} : vector<32x13xf32> to vector<32x1xf32>
    %312 = vector.broadcast %311 : vector<32x1xf32> to vector<32x8xf32>
    %313 = arith.addf %310, %312 : vector<32x8xf32>
    %314 = arith.truncf %308 : vector<8x32xf32> to vector<8x32xbf16>
    %315 = arith.truncf %298 : vector<32x256xf32> to vector<32x256xbf16>
    %cst_134 = arith.constant dense<0.000000e+00> : vector<8x256xf32>
    %316 = tpu.matmul %314, %315, %cst_134 {dimension_numbers = #tpu.dot_dimension_numbers<[1], [0], [0], [1], [0, 0, 1, 1], [], []>} : vector<8x32xbf16>, vector<32x256xbf16>, vector<8x256xf32> -> vector<8x256xf32>
    %cst_135 = arith.constant 0.176776692 : f32
    %317 = vector.broadcast %cst_135 : f32 to vector<8x256xf32>
    %318 = arith.mulf %316, %317 : vector<8x256xf32>
    %cst_136 = arith.constant dense<0xFF800000> : vector<256xf32>
    %319 = vector.multi_reduction <maximumf>, %318, %cst_136 [0] : vector<8x256xf32> to vector<256xf32>
    %320 = vector.shape_cast %319 : vector<256xf32> to vector<1x256xf32>
    %321 = vector.broadcast %320 : vector<1x256xf32> to vector<8x256xf32>
    %322 = arith.subf %318, %321 : vector<8x256xf32>
    %323 = math.exp %322 : vector<8x256xf32>
    %cst_137 = arith.constant dense<0.000000e+00> : vector<256xf32>
    %324 = vector.multi_reduction <add>, %323, %cst_137 [0] : vector<8x256xf32> to vector<256xf32>
    %325 = vector.shape_cast %324 : vector<256xf32> to vector<1x256xf32>
    %326 = tpu.reciprocal %325 {approx = true} : vector<1x256xf32> -> vector<1x256xf32>
    %327 = vector.broadcast %326 : vector<1x256xf32> to vector<8x256xf32>
    %328 = arith.mulf %323, %327 : vector<8x256xf32>
    %329 = arith.truncf %313 : vector<32x8xf32> to vector<32x8xbf16>
    %330 = arith.truncf %328 : vector<8x256xf32> to vector<8x256xbf16>
    %cst_138 = arith.constant dense<0.000000e+00> : vector<32x256xf32>
    %331 = tpu.matmul %329, %330, %cst_138 {dimension_numbers = #tpu.dot_dimension_numbers<[1], [0], [0], [1], [0, 0, 1, 1], [], []>} : vector<32x8xbf16>, vector<8x256xbf16>, vector<32x256xf32> -> vector<32x256xf32>
    %332 = vector.extract_strided_slice %2 {offsets = [32, 0], sizes = [32, 32], strides = [1, 1]} : vector<128x32xbf16> to vector<32x32xbf16>
    %333 = arith.truncf %331 : vector<32x256xf32> to vector<32x256xbf16>
    %cst_139 = arith.constant dense<0.000000e+00> : vector<32x256xf32>
    %334 = tpu.matmul %332, %333, %cst_139 {dimension_numbers = #tpu.dot_dimension_numbers<[1], [0], [0], [1], [0, 0, 1, 1], [], []>} : vector<32x32xbf16>, vector<32x256xbf16>, vector<32x256xf32> -> vector<32x256xf32>
    %335 = arith.addf %292, %334 : vector<32x256xf32>
    %336 = vector.extract_strided_slice %0 {offsets = [0, 8], sizes = [32, 1], strides = [1, 1]} : vector<32x13xf32> to vector<32x1xf32>
    %337 = vector.broadcast %336 : vector<32x1xf32> to vector<32x256xf32>
    %338 = arith.addf %335, %337 : vector<32x256xf32>
    %339 = vector.extract_strided_slice %0 {offsets = [0, 10], sizes = [32, 1], strides = [1, 1]} : vector<32x13xf32> to vector<32x1xf32>
    %340 = vector.extract_strided_slice %0 {offsets = [0, 11], sizes = [32, 1], strides = [1, 1]} : vector<32x13xf32> to vector<32x1xf32>
    %cst_140 = arith.constant dense<0.000000e+00> : vector<32xf32>
    %341 = vector.multi_reduction <add>, %338, %cst_140 [1] : vector<32x256xf32> to vector<32xf32>
    %342 = vector.shape_cast %341 : vector<32xf32> to vector<32x1xf32>
    %343 = arith.mulf %338, %338 : vector<32x256xf32>
    %cst_141 = arith.constant dense<0.000000e+00> : vector<32xf32>
    %344 = vector.multi_reduction <add>, %343, %cst_141 [1] : vector<32x256xf32> to vector<32xf32>
    %345 = vector.shape_cast %344 : vector<32xf32> to vector<32x1xf32>
    %346 = tpu.concatenate %342, %345 in 1 : vector<32x1xf32>, vector<32x1xf32> -> vector<32x2xf32>
    %cst_142 = arith.constant dense<0.000000e+00> : vector<32x2xf32>
    %347 = tpu.matmul %1, %346, %cst_142 {dimension_numbers = #tpu.dot_dimension_numbers<[1], [0], [0], [1], [0, 0, 1, 1], [], []>} : vector<32x32xf32>, vector<32x2xf32>, vector<32x2xf32> -> vector<32x2xf32>
    %348 = vector.extract_strided_slice %347 {offsets = [0, 0], sizes = [32, 1], strides = [1, 1]} : vector<32x2xf32> to vector<32x1xf32>
    %cst_143 = arith.constant 9.765625E-4 : f32
    %349 = vector.broadcast %cst_143 : f32 to vector<32x1xf32>
    %350 = arith.mulf %348, %349 : vector<32x1xf32>
    %351 = vector.extract_strided_slice %347 {offsets = [0, 1], sizes = [32, 1], strides = [1, 1]} : vector<32x2xf32> to vector<32x1xf32>
    %cst_144 = arith.constant 9.765625E-4 : f32
    %352 = vector.broadcast %cst_144 : f32 to vector<32x1xf32>
    %353 = arith.mulf %351, %352 : vector<32x1xf32>
    %354 = arith.mulf %350, %350 : vector<32x1xf32>
    %355 = arith.subf %353, %354 : vector<32x1xf32>
    %356 = vector.broadcast %350 : vector<32x1xf32> to vector<32x256xf32>
    %357 = arith.subf %338, %356 : vector<32x256xf32>
    %cst_145 = arith.constant 9.99999974E-6 : f32
    %358 = vector.broadcast %cst_145 : f32 to vector<32x1xf32>
    %359 = arith.addf %355, %358 : vector<32x1xf32>
    %360 = math.rsqrt %359 : vector<32x1xf32>
    %361 = vector.broadcast %360 : vector<32x1xf32> to vector<32x256xf32>
    %362 = arith.mulf %357, %361 : vector<32x256xf32>
    %363 = vector.broadcast %339 : vector<32x1xf32> to vector<32x256xf32>
    %364 = arith.mulf %362, %363 : vector<32x256xf32>
    %365 = vector.broadcast %340 : vector<32x1xf32> to vector<32x256xf32>
    %366 = arith.addf %364, %365 : vector<32x256xf32>
    %367 = arith.negf %366 : vector<32x256xf32>
    %368 = math.exp %367 : vector<32x256xf32>
    %cst_146 = arith.constant 1.000000e+00 : f32
    %369 = vector.broadcast %cst_146 : f32 to vector<32x256xf32>
    %370 = arith.addf %369, %368 : vector<32x256xf32>
    %371 = arith.divf %369, %370 : vector<32x256xf32>
    %372 = arith.mulf %366, %371 : vector<32x256xf32>
    %c0_147 = arith.constant 0 : index
    %c0_148 = arith.constant 0 : index
    %373 = vector.load %arg7[%c0_147, %c0_148] : memref<4x288xbf16, #tpu.memory_space<vmem>>, vector<4x288xbf16>
    %374 = vector.extract_strided_slice %0 {offsets = [0, 12], sizes = [32, 1], strides = [1, 1]} : vector<32x13xf32> to vector<32x1xf32>
    %375 = vector.extract_strided_slice %374 {offsets = [0, 0], sizes = [4, 1], strides = [1, 1]} : vector<32x1xf32> to vector<4x1xf32>
    %cst_149 = arith.constant 0.000000e+00 : f32
    %376 = vector.broadcast %cst_149 : f32 to vector<32x17xf32>
    %377 = vector.extract_strided_slice %372 {offsets = [0, 0], sizes = [32, 239], strides = [1, 1]} : vector<32x256xf32> to vector<32x239xf32>
    %378 = tpu.concatenate %376, %377 in 1 : vector<32x17xf32>, vector<32x239xf32> -> vector<32x256xf32>
    %cst_150 = arith.constant 0.000000e+00 : f32
    %379 = vector.shape_cast %23 : vector<1x256xi1> to vector<1x256xi1>
    %380 = vector.broadcast %379 : vector<1x256xi1> to vector<32x256xi1>
    %381 = vector.broadcast %cst_150 : f32 to vector<32x256xf32>
    %382 = arith.select %380, %378, %381 : vector<32x256xi1>, vector<32x256xf32>
    %c0_151 = arith.constant 0 : index
    %c0_152 = arith.constant 0 : index
    %383 = vector.load %arg13[%c0_151, %c0_152] : memref<288x256xf32, #tpu.memory_space<vmem>>, vector<32x256xf32>
    tpu.vector_store %arg13[%c0_151, %c0_152], %382 {strides = array<i32>} : memref<288x256xf32, #tpu.memory_space<vmem>>, vector<32x256xf32>,
    %cst_153 = arith.constant 0.000000e+00 : f32
    %384 = vector.broadcast %cst_153 : f32 to vector<32x16xf32>
    %385 = vector.extract_strided_slice %372 {offsets = [0, 0], sizes = [32, 240], strides = [1, 1]} : vector<32x256xf32> to vector<32x240xf32>
    %386 = tpu.concatenate %384, %385 in 1 : vector<32x16xf32>, vector<32x240xf32> -> vector<32x256xf32>
    %c32_154 = arith.constant 32 : index
    %c0_155 = arith.constant 0 : index
    %387 = vector.load %arg13[%c32_154, %c0_155] : memref<288x256xf32, #tpu.memory_space<vmem>>, vector<32x256xf32>
    tpu.vector_store %arg13[%c32_154, %c0_155], %386 {strides = array<i32>} : memref<288x256xf32, #tpu.memory_space<vmem>>, vector<32x256xf32>,
    %cst_156 = arith.constant 0.000000e+00 : f32
    %388 = vector.broadcast %cst_156 : f32 to vector<32x15xf32>
    %389 = vector.extract_strided_slice %372 {offsets = [0, 0], sizes = [32, 241], strides = [1, 1]} : vector<32x256xf32> to vector<32x241xf32>
    %390 = tpu.concatenate %388, %389 in 1 : vector<32x15xf32>, vector<32x241xf32> -> vector<32x256xf32>
    %cst_157 = arith.constant 0.000000e+00 : f32
    %391 = vector.shape_cast %25 : vector<1x256xi1> to vector<1x256xi1>
    %392 = vector.broadcast %391 : vector<1x256xi1> to vector<32x256xi1>
    %393 = vector.broadcast %cst_157 : f32 to vector<32x256xf32>
    %394 = arith.select %392, %390, %393 : vector<32x256xi1>, vector<32x256xf32>
    %c64_158 = arith.constant 64 : index
    %c0_159 = arith.constant 0 : index
    %395 = vector.load %arg13[%c64_158, %c0_159] : memref<288x256xf32, #tpu.memory_space<vmem>>, vector<32x256xf32>
    tpu.vector_store %arg13[%c64_158, %c0_159], %394 {strides = array<i32>} : memref<288x256xf32, #tpu.memory_space<vmem>>, vector<32x256xf32>,
    %cst_160 = arith.constant 0.000000e+00 : f32
    %396 = vector.broadcast %cst_160 : f32 to vector<32x1xf32>
    %397 = vector.extract_strided_slice %372 {offsets = [0, 0], sizes = [32, 255], strides = [1, 1]} : vector<32x256xf32> to vector<32x255xf32>
    %398 = tpu.concatenate %396, %397 in 1 : vector<32x1xf32>, vector<32x255xf32> -> vector<32x256xf32>
    %cst_161 = arith.constant 0.000000e+00 : f32
    %399 = vector.shape_cast %23 : vector<1x256xi1> to vector<1x256xi1>
    %400 = vector.broadcast %399 : vector<1x256xi1> to vector<32x256xi1>
    %401 = vector.broadcast %cst_161 : f32 to vector<32x256xf32>
    %402 = arith.select %400, %398, %401 : vector<32x256xi1>, vector<32x256xf32>
    %c96_162 = arith.constant 96 : index
    %c0_163 = arith.constant 0 : index
    %403 = vector.load %arg13[%c96_162, %c0_163] : memref<288x256xf32, #tpu.memory_space<vmem>>, vector<32x256xf32>
    tpu.vector_store %arg13[%c96_162, %c0_163], %402 {strides = array<i32>} : memref<288x256xf32, #tpu.memory_space<vmem>>, vector<32x256xf32>,
    %c128_164 = arith.constant 128 : index
    %c0_165 = arith.constant 0 : index
    %404 = vector.load %arg13[%c128_164, %c0_165] : memref<288x256xf32, #tpu.memory_space<vmem>>, vector<32x256xf32>
    tpu.vector_store %arg13[%c128_164, %c0_165], %372 {strides = array<i32>} : memref<288x256xf32, #tpu.memory_space<vmem>>, vector<32x256xf32>,
    %405 = vector.extract_strided_slice %372 {offsets = [0, 1], sizes = [32, 255], strides = [1, 1]} : vector<32x256xf32> to vector<32x255xf32>
    %cst_166 = arith.constant 0.000000e+00 : f32
    %406 = vector.broadcast %cst_166 : f32 to vector<32x1xf32>
    %407 = tpu.concatenate %405, %406 in 1 : vector<32x255xf32>, vector<32x1xf32> -> vector<32x256xf32>
    %cst_167 = arith.constant 0.000000e+00 : f32
    %408 = vector.shape_cast %25 : vector<1x256xi1> to vector<1x256xi1>
    %409 = vector.broadcast %408 : vector<1x256xi1> to vector<32x256xi1>
    %410 = vector.broadcast %cst_167 : f32 to vector<32x256xf32>
    %411 = arith.select %409, %407, %410 : vector<32x256xi1>, vector<32x256xf32>
    %c160_168 = arith.constant 160 : index
    %c0_169 = arith.constant 0 : index
    %412 = vector.load %arg13[%c160_168, %c0_169] : memref<288x256xf32, #tpu.memory_space<vmem>>, vector<32x256xf32>
    tpu.vector_store %arg13[%c160_168, %c0_169], %411 {strides = array<i32>} : memref<288x256xf32, #tpu.memory_space<vmem>>, vector<32x256xf32>,
    %413 = vector.extract_strided_slice %372 {offsets = [0, 15], sizes = [32, 241], strides = [1, 1]} : vector<32x256xf32> to vector<32x241xf32>
    %cst_170 = arith.constant 0.000000e+00 : f32
    %414 = vector.broadcast %cst_170 : f32 to vector<32x15xf32>
    %415 = tpu.concatenate %413, %414 in 1 : vector<32x241xf32>, vector<32x15xf32> -> vector<32x256xf32>
    %cst_171 = arith.constant 0.000000e+00 : f32
    %416 = vector.shape_cast %23 : vector<1x256xi1> to vector<1x256xi1>
    %417 = vector.broadcast %416 : vector<1x256xi1> to vector<32x256xi1>
    %418 = vector.broadcast %cst_171 : f32 to vector<32x256xf32>
    %419 = arith.select %417, %415, %418 : vector<32x256xi1>, vector<32x256xf32>
    %c192_172 = arith.constant 192 : index
    %c0_173 = arith.constant 0 : index
    %420 = vector.load %arg13[%c192_172, %c0_173] : memref<288x256xf32, #tpu.memory_space<vmem>>, vector<32x256xf32>
    tpu.vector_store %arg13[%c192_172, %c0_173], %419 {strides = array<i32>} : memref<288x256xf32, #tpu.memory_space<vmem>>, vector<32x256xf32>,
    %421 = vector.extract_strided_slice %372 {offsets = [0, 16], sizes = [32, 240], strides = [1, 1]} : vector<32x256xf32> to vector<32x240xf32>
    %cst_174 = arith.constant 0.000000e+00 : f32
    %422 = vector.broadcast %cst_174 : f32 to vector<32x16xf32>
    %423 = tpu.concatenate %421, %422 in 1 : vector<32x240xf32>, vector<32x16xf32> -> vector<32x256xf32>
    %c224_175 = arith.constant 224 : index
    %c0_176 = arith.constant 0 : index
    %424 = vector.load %arg13[%c224_175, %c0_176] : memref<288x256xf32, #tpu.memory_space<vmem>>, vector<32x256xf32>
    tpu.vector_store %arg13[%c224_175, %c0_176], %423 {strides = array<i32>} : memref<288x256xf32, #tpu.memory_space<vmem>>, vector<32x256xf32>,
    %425 = vector.extract_strided_slice %372 {offsets = [0, 17], sizes = [32, 239], strides = [1, 1]} : vector<32x256xf32> to vector<32x239xf32>
    %cst_177 = arith.constant 0.000000e+00 : f32
    %426 = vector.broadcast %cst_177 : f32 to vector<32x17xf32>
    %427 = tpu.concatenate %425, %426 in 1 : vector<32x239xf32>, vector<32x17xf32> -> vector<32x256xf32>
    %cst_178 = arith.constant 0.000000e+00 : f32
    %428 = vector.shape_cast %25 : vector<1x256xi1> to vector<1x256xi1>
    %429 = vector.broadcast %428 : vector<1x256xi1> to vector<32x256xi1>
    %430 = vector.broadcast %cst_178 : f32 to vector<32x256xf32>
    %431 = arith.select %429, %427, %430 : vector<32x256xi1>, vector<32x256xf32>
    %c256_179 = arith.constant 256 : index
    %c0_180 = arith.constant 0 : index
    %432 = vector.load %arg13[%c256_179, %c0_180] : memref<288x256xf32, #tpu.memory_space<vmem>>, vector<32x256xf32>
    tpu.vector_store %arg13[%c256_179, %c0_180], %431 {strides = array<i32>} : memref<288x256xf32, #tpu.memory_space<vmem>>, vector<32x256xf32>,
    %c0_181 = arith.constant 0 : index
    %c0_182 = arith.constant 0 : index
    %433 = vector.load %arg13[%c0_181, %c0_182] : memref<288x256xf32, #tpu.memory_space<vmem>>, vector<288x256xf32>
    %434 = arith.truncf %433 : vector<288x256xf32> to vector<288x256xbf16>
    %cst_183 = arith.constant dense<0.000000e+00> : vector<4x256xf32>
    %435 = tpu.matmul %373, %434, %cst_183 {dimension_numbers = #tpu.dot_dimension_numbers<[1], [0], [0], [1], [0, 0, 1, 1], [], []>} : vector<4x288xbf16>, vector<288x256xbf16>, vector<4x256xf32> -> vector<4x256xf32>
    %436 = vector.broadcast %375 : vector<4x1xf32> to vector<4x256xf32>
    %437 = arith.addf %435, %436 : vector<4x256xf32>
    %c0_184 = arith.constant 0 : index
    %c0_185 = arith.constant 0 : index
    %c0_186 = arith.constant 0 : index
    %438 = vector.load %arg12[%c0_184, %c0_185, %c0_186] : memref<1x4x256xf32, #tpu.memory_space<vmem>>, vector<1x4x256xf32>
    %439 = vector.shape_cast %438 : vector<1x4x256xf32> to vector<4x256xf32>
    %440 = vector.shape_cast %437 : vector<4x256xf32> to vector<1x4x256xf32>
    tpu.vector_store %arg12[%c0_184, %c0_185, %c0_186], %440 {strides = array<i32>} : memref<1x4x256xf32, #tpu.memory_space<vmem>>, vector<1x4x256xf32>,
    return
  }
  func.func @transform_0(%arg0: i32) -> (i32, i32, i32) {
    %c0_i32 = arith.constant 0 : i32
    %c0_i32_0 = arith.constant 0 : i32
    %c0_i32_1 = arith.constant 0 : i32
    return %arg0, %c0_i32, %c0_i32_0 : i32, i32, i32
  }
  func.func @transform_1(%arg0: i32) -> (i32, i32, i32) {
    %c0_i32 = arith.constant 0 : i32
    %c0_i32_0 = arith.constant 0 : i32
    %c0_i32_1 = arith.constant 0 : i32
    return %arg0, %c0_i32, %c0_i32_0 : i32, i32, i32
  }
  func.func @transform_2(%arg0: i32) -> (i32, i32, i32) {
    %c0_i32 = arith.constant 0 : i32
    %c0_i32_0 = arith.constant 0 : i32
    %c0_i32_1 = arith.constant 0 : i32
    return %arg0, %c0_i32, %c0_i32_0 : i32, i32, i32
  }
  func.func @transform_3(%arg0: i32) -> (i32, i32, i32) {
    %c0_i32 = arith.constant 0 : i32
    %c0_i32_0 = arith.constant 0 : i32
    %c0_i32_1 = arith.constant 0 : i32
    return %arg0, %c0_i32, %c0_i32_0 : i32, i32, i32
  }
  func.func @transform_4(%arg0: i32) -> (i32, i32) {
    %c0_i32 = arith.constant 0 : i32
    %c0_i32_0 = arith.constant 0 : i32
    %c0_i32_1 = arith.constant 0 : i32
    return %c0_i32, %c0_i32_0 : i32, i32
  }
  func.func @transform_5(%arg0: i32) -> (i32, i32) {
    %c0_i32 = arith.constant 0 : i32
    %c0_i32_0 = arith.constant 0 : i32
    %c0_i32_1 = arith.constant 0 : i32
    return %c0_i32, %c0_i32_0 : i32, i32
  }
  func.func @transform_6(%arg0: i32) -> (i32, i32) {
    %c0_i32 = arith.constant 0 : i32
    %c0_i32_0 = arith.constant 0 : i32
    %c0_i32_1 = arith.constant 0 : i32
    return %c0_i32, %c0_i32_0 : i32, i32
  }
  func.func @transform_7(%arg0: i32) -> (i32, i32) {
    %c0_i32 = arith.constant 0 : i32
    %c0_i32_0 = arith.constant 0 : i32
    %c0_i32_1 = arith.constant 0 : i32
    return %c0_i32, %c0_i32_0 : i32, i32
  }
  func.func @transform_8(%arg0: i32) -> (i32, i32) {
    %c0_i32 = arith.constant 0 : i32
    %c0_i32_0 = arith.constant 0 : i32
    %c0_i32_1 = arith.constant 0 : i32
    return %c0_i32, %c0_i32_0 : i32, i32
  }
  func.func @transform_9(%arg0: i32) -> (i32, i32) {
    %c0_i32 = arith.constant 0 : i32
    %c0_i32_0 = arith.constant 0 : i32
    %c0_i32_1 = arith.constant 0 : i32
    return %c0_i32, %c0_i32_0 : i32, i32
  }
  func.func @transform_10(%arg0: i32) -> (i32, i32) {
    %c0_i32 = arith.constant 0 : i32
    %c0_i32_0 = arith.constant 0 : i32
    %c0_i32_1 = arith.constant 0 : i32
    return %c0_i32, %c0_i32_0 : i32, i32
  }
  func.func @transform_11(%arg0: i32) -> (i32, i32, i32) {
    %c0_i32 = arith.constant 0 : i32
    %c0_i32_0 = arith.constant 0 : i32
    %c0_i32_1 = arith.constant 0 : i32
    return %arg0, %c0_i32, %c0_i32_0 : i32, i32, i32
  }
}

</mosaic_0001>

<bundles_post_ra>
// kernel: _forward_impl.1
= control target key start
LH: loop header
LB: loop body
LE: loop exit
PB: predicated region body
PF: predicated region fallthrough
CT: control target
= control target key end

     0   :  { %s5709_s17 = smov 0   ;;  %s7937_s0 = inlined_call_operand.vmem [shape: f32[2,8,256], index: 0, kind: input, shape index: {}]   ;;  %s7938_s1 = inlined_call_operand.vmem [shape: f32[2,8,32], index: 1, kind: input, shape index: {}]   ;;  %s7939_s2 = inlined_call_operand.vmem [shape: f32[2,32,8], index: 2, kind: input, shape index: {}]   ;;  %s7940_s3 = inlined_call_operand.vmem [shape: f32[2,32,1], index: 3, kind: input, shape index: {}]   ;;  %s7941_s4 = inlined_call_operand.vmem [shape: bf16[32,72], index: 4, kind: input, shape index: {}]   ;;  %s7942_s5 = inlined_call_operand.vmem [shape: bf16[64,288], index: 5, kind: input, shape index: {}]   ;;  %s7943_s6 = inlined_call_operand.vmem [shape: bf16[4,288], index: 6, kind: input, shape index: {}]   ;;  %s7944_s7 = inlined_call_operand.vmem [shape: bf16[128,32], index: 7, kind: input, shape index: {}]   ;;  %s7945_s8 = inlined_call_operand.vmem [shape: f32[32,32], index: 8, kind: input, shape index: {}]   ;;  %s7946_s9 = inlined_call_operand.vmem [shape: f32[32,13], index: 9, kind: input, shape index: {}]   ;;  %s7947_s10 = inlined_call_operand.vmem [shape: f32[1,32], index: 10, kind: input, shape index: {}]   ;;  %s7948_s11 = inlined_call_operand.vmem [shape: f32[2,4,256], index: 11, kind: output, shape index: {}]  }
   0x1 LB: > { %s4377_s18 = sadd.s32 4294967295, %s5625_s17   ;;  %p4381_p0 = scmp.ge.s32.totalorder %s5625_s17, 1  ;;  %s5625_s17 = sphi %s5709_s17, %s21_s17  }
   0x2   : > { %p366_p1 = scmp.lt.s32.totalorder %s5625_s17, 3 }
   0x4   : > { %p367_p2 = pnand %p4381_p0, %p366_p1 }
   0x5   : > { %p420_p3 = scmp.lt.s32.totalorder (!%p367_p2), %s4377_s18, 1  ;;  %s5627_s23 = smov (!%p367_p2), 111  }
   0x6   : > { %370 = sbr.rel (%p367_p2) target bundleno = 3823 (0xeef), region = 64  ;;  %s5628_s24 = smov (!%p367_p2), 112  }
   0x7   : > { %s5629_s25 = smov (!%p367_p2), 15   ;;  %s5630_s26 = smov (!%p367_p2), 113  }
   0x8   : > { %s5631_s27 = smov (!%p367_p2), 127   ;;  %s5632_s28 = smov (!%p367_p2), 1  }
   0x9   : > { %s5633_s29 = smov (!%p367_p2), 17   ;;  %s5634_s30 = smov (!%p367_p2), 16  }
   0xb   : > { %s8326_s18 = smov (!%p420_p3, %s4377_s18), 1  ;;  %v486_v3 = vlaneseq  ;;  %vm7950_vm0 = vcmask 908288   ;;  %vm7949_vm3 = vcmask 1043456   ;;  %vm7956_vm4 = vcmask 916480   ;;  %v5775_v45 = vld [vmem:[%s7946_s9 + $0x8] sm:$0xff]  ;;  %v5789_v49 = vld [vmem:[%s7946_s9 + $0x18] sm:$0xff] }
   0xc   : > { %s4548_s19 = sshll.u32 %s8326_s18, 4  ;;  %vm7954_vm6 = vcmask 924672   ;;  %vm7951_vm8 = vcmask 1039360   ;;  %vm5635_vm9 = vmmov 1   ;;  %vm7957_vm11 = vcmask 121856   ;;  %v5794_v50 = vld [vmem:[%s7946_s9 + $0x10] sm:$0xff] }
   0xd   : > { %s424_s22 = scalar_lea.vmem %s7937_s0, %s4548_s19  ;;  %v487_v4 = vand.u32 127, %v486_v3  ;;  %vm7980_vm13 = vcmask 7168   ;;  %v7966_v54 = vmov 0   ;;  %s7979_s19 = sshll.u32 %s8326_s18, 5  ;;  %v8076_v14 = vmov 0  }
   0xe   : > { %v5723_v0 = vld [vmem:[%s424_s22] sm:$0xff]  ;;  %v5725_v1 = vld [vmem:[%s424_s22 + $0x8] sm:$0xff]  ;;  %4943 = vset.pattern.permute.xlu1 %v7966_v54  ;;  %4942 = vset.pattern.permute.xlu0 %v7966_v54  ;;  %s6414_s13 = scalar_lea.vmem %s7940_s3, %s7979_s19  ;;  %s4384_s20 = sshll.u32 %s8326_s18, 3 }
   0xf   : > { %v4901_v2 = vpack.i.bf16 %v5725_v1, %v5723_v0  ;;  %v488_v5 = vadd.s32 128, %v487_v4  ;;  %v493_v6 = vand.u32 15, %v487_v4  ;;  %4941 = vset.pattern.permute.xlu2 %v7966_v54  ;;  %s428_s12 = scalar_lea.vmem %s7938_s1, %s4384_s20  ;;  %s8215_s14 = sshll.u32 %s8326_s18, 5 }
  0x11   : > { %4902 = vrot.lane.b32.xlu0 %v4901_v2, %s5627_s23  ;;  %4912 = vrot.lane.b32.xlu1 %v4901_v2, %s5628_s24  ;;  %v500_v7 = vand.u32 15, %v488_v5  ;;  %vm5737_vm1 = vcmp.le.s32.totalorder %v493_v6, 14  ;;  %vm5753_vm5 = vcmp.ge.s32.totalorder %v493_v6, 1 }
  0x12   : > { %4922 = vrot.lane.b32.xlu2 %v4901_v2, %s5629_s25  ;;  %vm4574_vm10 = vmpackc.low %vm5635_vm9, %vm5753_vm5 }
  0x13   : > { %vm5741_vm2 = vcmp.le.s32.totalorder %v500_v7, 14  ;;  %vm5757_vm7 = vcmp.ge.s32.totalorder %v500_v7, 1  ;;  %vm5780_vm14 = vmpackc.low %vm5737_vm1, %vm5635_vm9  ;;  %v5840_v7 = vld [vmem:[%s7946_s9] sm:$0xff] }
  0x14   : > { %vm4587_vm12 = vmpackc.low %vm7956_vm4, %vm5757_vm7 }
  0x15   : > { %vm5799_vm15 = vmpackc.low %vm5741_vm2, %vm5635_vm9 }
  0x19   : > { %4907 = vrot.lane.b32.xlu0 %v4901_v2, %s5630_s26  ;;  %4917 = vrot.lane.b32.xlu1 %v4901_v2, %s5631_s27 }
  0x1a   : > { %4927 = vrot.lane.b32.xlu2 %v4901_v2, %s5632_s28 }
  0x21   : > { %4932 = vrot.lane.b32.xlu0 %v4901_v2, %s5633_s29  ;;  %4937 = vrot.lane.b32.xlu1 %v4901_v2, %s5634_s30 }
  0x22   : > { %680 = vperm.xlu2 %4941, %v5789_v49  }
  0x29   : > { %670 = vperm.xlu1 %4943, %v5775_v45   ;;  %675 = vperm.xlu0 %4942, %v5794_v50  }
  0x2a   : > { %665 = vperm.xlu2 %4941, %v5840_v7  }
  0x6c   : > { %v4923_v8 = vpop.permute.xlu2 %4922 }
  0x6d   : > { %v4925_v34 = vunpack.i.h.bf16 %v4923_v8  ;;  %v4924_v35 = vunpack.i.l.bf16 %v4923_v8  ;;  %v4572_v8 = vld [vmem:[%s7941_s4] sm:$0xff] }
  0x6f   : > { %v561_v52 = vsel %vm7957_vm11, 0.0, %v4924_v35  ;;  %v558_v53 = vsel %vm7957_vm11, %v4924_v35, %v4925_v34 }
  0x74   : > { %v4928_v29 = vpop.permute.xlu2 %4927 }
  0x75   : > { %v4930_v41 = vunpack.i.h.bf16 %v4928_v29  ;;  %v4929_v42 = vunpack.i.l.bf16 %v4928_v29 }
  0x77   : > { %v578_v57 = vsel %vm7980_vm13, 0.0, %v4929_v42  ;;  %v575_v58 = vsel %vm7980_vm13, %v4929_v42, %v4930_v41 }
  0x78   : > { %v4581_v3 = vpack.c.bf16 %v578_v57, %v561_v52  ;;  %v4594_v4 = vpack.c.bf16 %v575_v58, %v558_v53 }
  0x83   : > { %v4903_v9 = vpop.permute.xlu0 %4902  ;;  %v4913_v10 = vpop.permute.xlu1 %4912 }
  0x84   : > { %v4905_v11 = vunpack.i.h.bf16 %v4903_v9  ;;  %v4904_v12 = vunpack.i.l.bf16 %v4903_v9  ;;  %v4915_v21 = vunpack.i.h.bf16 %v4913_v10  ;;  %v4914_v22 = vunpack.i.l.bf16 %v4913_v10  ;;  %v4573_v9 = vld [vmem:[%s7941_s4 + $0x8] sm:$0xff] }
  0x86   : > { %v627_v15 = vsel %vm7950_vm0, %v4904_v12, %v4905_v11  ;;  %v630_v16 = vsel %vm7950_vm0, %v4905_v11, 0.0  ;;  %v616_v36 = vsel %vm7956_vm4, %v4914_v22, %v4915_v21  ;;  %vm4593_vm0 = vmpackc.low %vm5757_vm7, %vm5741_vm2 }
  0x87   : > { %v631_v17 = vsel %vm5737_vm1, %v627_v15, 0.0  ;;  %v632_v18 = vsel %vm5741_vm2, %v630_v16, 0.0 }
  0x88   : > { %v661_v19 = vpack.c.bf16 %v631_v17, %v631_v17  ;;  %v662_v20 = vpack.c.bf16 %v632_v18, %v632_v18 }
  0x8a   : > { %v702_v23 = vsel %vm7949_vm3, %v661_v19, 0  ;;  %v705_v24 = vsel %vm7949_vm3, %v662_v20, 0  ;;  %vm4580_vm3 = vmpackc.low %vm5753_vm5, %vm5737_vm1  ;;  %v681_v19 = vpop.permute.xlu2 %680 }
  0x8b   : > { %v4908_v26 = vpop.permute.xlu0 %4907  ;;  %710 = vmatpush.bf16.msra.mxu0 %v702_v23  ;;  %729 = vmatpush.bf16.msra.mxu1 %v705_v24  ;;  %v4918_v27 = vpop.permute.xlu1 %4917 }
  0x8c   : > { %v4910_v30 = vunpack.i.h.bf16 %v4908_v26  ;;  %v4909_v31 = vunpack.i.l.bf16 %v4908_v26  ;;  %v4920_v32 = vunpack.i.h.bf16 %v4918_v27  ;;  %v4919_v33 = vunpack.i.l.bf16 %v4918_v27 }
  0x8e   : > { %v603_v37 = vsel %vm7954_vm6, %v4909_v31, %v4910_v30  ;;  %v606_v38 = vsel %vm7954_vm6, %v4910_v30, 0.0  ;;  %v590_v39 = vsel %vm7951_vm8, %v4919_v33, %v4920_v32  ;;  %v593_v40 = vsel %vm7951_vm8, %v4920_v32, 0.0 }
  0x8f   : > { %v4575_v43 = vpack.c.bf16 %v616_v36, %v603_v37  ;;  %v4588_v44 = vpack.c.bf16 %v4915_v21, %v606_v38  ;;  %v4578_v47 = vpack.c.bf16 %v590_v39, %v5723_v0  ;;  %v4591_v48 = vpack.c.bf16 %v593_v40, %v5725_v1 }
  0x91   : > { %4576 = vmatpush.bf16.msk.msra.mxu0 %vm4574_vm10, %v4575_v43  ;;  %4589 = vmatpush.bf16.msk.msra.mxu1 %vm4587_vm12, %v4588_v44  ;;  %vm7955_vm10 = vcmask 138240   ;;  %vm7953_vm12 = vcmask 130048  }
  0x92   : > { %vm5827_vm8 = vmneg %vm7953_vm12  ;;  %v666_v31 = vpop.permute.xlu2 %665 }
  0x93   : > { %v4933_v55 = vpop.permute.xlu0 %4932  ;;  %v4938_v56 = vpop.permute.xlu1 %4937 }
  0x94   : > { %v4935_v59 = vunpack.i.h.bf16 %v4933_v55  ;;  %v4934_v60 = vunpack.i.l.bf16 %v4933_v55  ;;  %v4940_v61 = vunpack.i.h.bf16 %v4938_v56  ;;  %v4939_v62 = vunpack.i.l.bf16 %v4938_v56 }
  0x95   : > { %4579 = vmatpush.bf16.msk.msra.mxu0 %vm5780_vm14, %v4578_v47  ;;  %4592 = vmatpush.bf16.msk.msra.mxu1 %vm5799_vm15, %v4591_v48  ;;  %vm4584_vm14 = vmpackc.low %vm5827_vm8, %vm5753_vm5 }
  0x96   : > { %v533_v63 = vsel %vm7955_vm10, 0.0, %v4934_v60  ;;  %v530_v1 = vsel %vm7955_vm10, %v4934_v60, %v4935_v59  ;;  %v547_v2 = vsel %vm7953_vm12, %v4939_v62, %v4940_v61  ;;  %vm4596_vm15 = vmpackc.low %vm5635_vm9, %vm5757_vm7 }
  0x97   : > { %v4585_v5 = vpack.c.bf16 %v4939_v62, %v533_v63  ;;  %v4597_v6 = vpack.c.bf16 %v547_v2, %v530_v1  ;;  %v449_v2 = vld [vmem:[%s7945_s8] sm:$0xff] }
  0x99   : > { %4582 = vmatpush.bf16.msk.msra.mxu0 %vm4580_vm3, %v4581_v3  ;;  %4595 = vmatpush.bf16.msk.msra.mxu1 %vm4593_vm0, %v4594_v4  ;;  %vm693_vm0 = vcmask 588800   ;;  %vm7952_vm3 = vcmask 261120   ;;  %v450_v4 = vld [vmem:[%s7945_s8 + $0x8] sm:$0xff] }
  0x9b   : > { %v671_v12 = vpop.permute.xlu1 %670  ;;  %v676_v21 = vpop.permute.xlu0 %675 }
  0x9d   : > { %4586 = vmatpush.bf16.msk.msra.mxu0 %vm4584_vm14, %v4585_v5  ;;  %4598 = vmatpush.bf16.msk.msra.mxu1 %vm4596_vm15, %v4597_v6  ;;  %v451_v5 = vld [vmem:[%s7945_s8 + $0x10] sm:$0xff]  ;;  %v452_v6 = vld [vmem:[%s7945_s8 + $0x18] sm:$0xff] }
  0xa0   : > { %4399 = vmatmul.msk.bf16.vlgmr.msra.gmra.mxu0 %vm693_vm0, %v4572_v8  ;;  %4401 = vmatmul.msk.bf16.vlgmr.msra.gmra.mxu1 %vm693_vm0, %v4572_v8 }
  0xb0   : > { %4400 = vmatmul.msk.bf16.gmra.mxu0 %vm693_vm0, %v4573_v9  ;;  %4402 = vmatmul.msk.bf16.gmra.mxu1 %vm693_vm0, %v4573_v9 }
 0x11d   : > { %v716_v10 = vpop.f32.mrf.mxu0  ;;  %v735_v11 = vpop.f32.mrf.mxu1 }
 0x11e   : > { %v5868_v33 = vadd.f32 %v716_v10, %v666_v31  ;;  %v5870_v34 = vadd.f32 %v735_v11, %v666_v31 }
 0x120   : > { %v745_v40 = vadd.f32 %v5870_v34, %v5868_v33  ;;  %v757_v44 = vmul.f32 %v5868_v33, %v5868_v33  ;;  %v758_v46 = vmul.f32 %v5870_v34, %v5870_v34 }
 0x122   : > { %v765_v51 = vadd.f32 %v758_v46, %v757_v44 }
 0x125   : > { %v718_v15 = vpop.f32.mrf.mxu0  ;;  %v737_v16 = vpop.f32.mrf.mxu1 }
 0x126   : > { %v5852_v17 = vadd.f32 %v718_v15, %v671_v12  ;;  %v5854_v18 = vadd.f32 %v737_v16, %v671_v12 }
 0x128   : > { %v748_v20 = vadd.f32 %v5854_v18, %v5852_v17  ;;  %v759_v47 = vmul.f32 %v5852_v17, %v5852_v17  ;;  %v760_v48 = vmul.f32 %v5854_v18, %v5854_v18 }
 0x12a   : > { %749 = vadd.xlane.f32.xlu1 %v748_v20  ;;  %v768_v52 = vadd.f32 %v760_v48, %v759_v47 }
 0x12d   : > { %v721_v22 = vpop.f32.mrf.mxu0  ;;  %v740_v23 = vpop.f32.mrf.mxu1 }
 0x12e   : > { %v5858_v24 = vadd.f32 %v721_v22, %v676_v21  ;;  %v5860_v26 = vadd.f32 %v740_v23, %v676_v21 }
 0x130   : > { %v751_v27 = vadd.f32 %v5860_v26, %v5858_v24  ;;  %v761_v29 = vmul.f32 %v5858_v24, %v5858_v24  ;;  %v762_v30 = vmul.f32 %v5860_v26, %v5860_v26 }
 0x132   : > { %752 = vadd.xlane.f32.xlu0 %v751_v27  ;;  %v771_v32 = vadd.f32 %v762_v30, %v761_v29  ;;  %v7958_v27 = vmov 1   ;;  %v5638_v29 = vmov 2  }
 0x133   : > { %4945 = vset.pattern.permute.xlu0 %v5638_v29 }
 0x134   : > { %772 = vadd.xlane.f32.xlu2 %v771_v32 }
 0x135   : > { %v723_v35 = vpop.f32.mrf.mxu0  ;;  %v742_v36 = vpop.f32.mrf.mxu1 }
 0x136   : > { %v5872_v37 = vadd.f32 %v723_v35, %v681_v19  ;;  %v5874_v38 = vadd.f32 %v742_v36, %v681_v19 }
 0x138   : > { %v754_v39 = vadd.f32 %v5874_v38, %v5872_v37  ;;  %v763_v41 = vmul.f32 %v5872_v37, %v5872_v37  ;;  %v764_v42 = vmul.f32 %v5874_v38, %v5874_v38 }
 0x13a   : > { %755 = vadd.xlane.f32.xlu1 %v754_v39  ;;  %746 = vadd.xlane.f32.xlu0 %v745_v40  ;;  %v774_v43 = vadd.f32 %v764_v42, %v763_v41 }
 0x13c   : > { %775 = vadd.xlane.f32.xlu2 %v774_v43 }
 0x142   : > { %766 = vadd.xlane.f32.xlu1 %v765_v51 }
 0x144   : > { %769 = vadd.xlane.f32.xlu2 %v768_v52 }
 0x19d   : > { %v750_v53 = vpop.xlane.xlu1 %749 }
 0x1a5   : > { %v753_v57 = vpop.xlane.xlu0 %752 }
 0x1a7   : > { %v773_v55 = vpop.xlane.xlu2 %772 }
 0x1a8   : > { %v779_v60 = vsel %vm7980_vm13, %v753_v57, %v773_v55 }
 0x1ad   : > { %v756_v56 = vpop.xlane.xlu1 %755  ;;  %v747_v1 = vpop.xlane.xlu0 %746 }
 0x1af   : > { %v776_v58 = vpop.xlane.xlu2 %775 }
 0x1b0   : > { %v780_v59 = vsel %vm7980_vm13, %v756_v56, %v776_v58 }
 0x1b1   : > { %806 = vmatpush.msra.mxu2 %v780_v59 }
 0x1b3   : > { %807 = vmatpush.msra.mxu2 %v779_v60 }
 0x1b5   : > { %v767_v61 = vpop.xlane.xlu1 %766 }
 0x1b6   : > { %v777_v3 = vsel %vm7980_vm13, %v747_v1, %v767_v61 }
 0x1b7   : > { %v770_v62 = vpop.xlane.xlu2 %769 }
 0x1b8   : > { %v778_v63 = vsel %vm7980_vm13, %v750_v53, %v770_v62 }
 0x1b9   : > { %808 = vmatpush.msra.mxu2 %v778_v63 }
 0x1bb   : > { %809 = vmatpush.msra.mxu2 %v777_v3 }
 0x1bc   : > { %4403 = vmatmul.msk.f32.vlgmr.msra.gmra.mxu2 %vm7952_vm3, %v449_v2 }
 0x1c4   : > { %4404 = vmatmul.msk.f32.gmra.mxu2 %vm7952_vm3, %v450_v4 }
 0x1cc   : > { %4405 = vmatmul.msk.f32.gmra.mxu2 %vm7952_vm3, %v451_v5 }
 0x1d4   : > { %4406 = vmatmul.msk.f32.gmra.mxu2 %vm7952_vm3, %v452_v6 }
 0x23f   : > { %v811_v8 = vpop.f32.mrf.mxu2 }
 0x240   : > { %v823_v9 = vmul.f32 0.0009765625, %v811_v8 }
 0x242   : > { %v827_v10 = vmul.f32 %v823_v9, %v823_v9 }
 0x244   : > { %835 = vrot.lane.b32.xlu1 %v827_v10, %s5632_s28 }
 0x247   : > { %v814_v11 = vpop.f32.mrf.mxu2 }
 0x248   : > { %v824_v22 = vmul.f32 0.0009765625, %v814_v11 }
 0x24a   : > { %v828_v23 = vmul.f32 %v824_v22, %v824_v22 }
 0x24f   : > { %v817_v12 = vpop.f32.mrf.mxu2 }
 0x250   : > { %v825_v15 = vmul.f32 0.0009765625, %v817_v12 }
 0x252   : > { %v829_v16 = vmul.f32 %v825_v15, %v825_v15 }
 0x254   : > { %839 = vrot.lane.b32.xlu2 %v829_v16, %s5632_s28 }
 0x257   : > { %v820_v19 = vpop.f32.mrf.mxu2 }
 0x258   : > { %v826_v20 = vmul.f32 0.0009765625, %v820_v19 }
 0x25a   : > { %868 = vperm.xlu1 %4943, %v826_v20   ;;  %v830_v21 = vmul.f32 %v826_v20, %v826_v20 }
 0x25c   : > { %863 = vperm.xlu2 %4941, %v825_v15   ;;  %841 = vrot.lane.b32.xlu0 %v830_v21, %s5632_s28 }
 0x262   : > { %853 = vperm.xlu1 %4943, %v823_v9  }
 0x264   : > { %858 = vperm.xlu2 %4941, %v824_v22   ;;  %837 = vrot.lane.b32.xlu0 %v828_v23, %s5632_s28 }
 0x26a   : > { %4944 = vset.pattern.permute.xlu1 %v7958_v27 }
 0x26b   : > { %960 = vperm.xlu1 %4944, %v5794_v50  }
 0x26c   : > { %4947 = vset.pattern.permute.xlu2 %v5638_v29  ;;  %984 = vperm.xlu0 %4945, %v5794_v50  }
 0x26d   : > { %988 = vperm.xlu2 %4947, %v5789_v49  }
 0x273   : > { %952 = vperm.xlu1 %4944, %v5840_v7  }
 0x274   : > { %4946 = vset.pattern.permute.xlu0 %v7958_v27 }
 0x275   : > { %4948 = vset.pattern.permute.xlu2 %v7958_v27  ;;  %964 = vperm.xlu0 %4946, %v5789_v49  }
 0x2ae   : > { %v840_v30 = vpop.permute.xlu2 %839 }
 0x2af   : > { %v849_v31 = vsub.f32 %v825_v15, %v840_v30 }
 0x2b1   : > { %v881_v32 = vadd.f32 1e-05, %v849_v31 }
 0x2b3   : > { %5473 = vrsqrt.f32 %v881_v32  ;;  %vm909_vm14 = vweird.f32 %v881_v32 }
 0x2b6   : > { %v836_v35 = vpop.permute.xlu1 %835  ;;  %v864_v16 = vpop.permute.xlu2 %863 }
 0x2b7   : > { %v847_v36 = vsub.f32 %v823_v9, %v836_v35  ;;  %v875_v31 = vsub.f32 %v5858_v24, %v864_v16 }
 0x2b9   : > { %v5474_v39 = vpop.eup %5473  ;;  %v879_v40 = vadd.f32 1e-05, %v847_v36 }
 0x2ba   : > { %v904_v41 = vmul.f32 %v5474_v39, %v881_v32  ;;  %vm910_vm9 = vweird.f32 %v5474_v39  ;;  %v876_v32 = vsub.f32 %v5860_v26, %v864_v16 }
 0x2bb   : > { %5475 = vrsqrt.f32 %v879_v40  ;;  %vm911_vm15 = vmor %vm909_vm14, %vm910_vm9  ;;  %vm889_vm3 = vweird.f32 %v879_v40 }
 0x2bc   : > { %v905_v50 = vmul.f32 %v5474_v39, %v904_v41 }
 0x2be   : > { %v906_v42 = vmul.f32 0.5, %v905_v50 }
 0x2c0   : > { %v907_v43 = vsub.f32 1.5, %v906_v42 }
 0x2c1   : > { %v5476_v44 = vpop.eup %5475 }
 0x2c2   : > { %v884_v46 = vmul.f32 %v5476_v44, %v879_v40  ;;  %v908_v47 = vmul.f32 %v5474_v39, %v907_v43  ;;  %vm890_vm0 = vweird.f32 %v5476_v44 }
 0x2c3   : > { %vm891_vm12 = vmor %vm889_vm3, %vm890_vm0 }
 0x2c4   : > { %v885_v49 = vmul.f32 %v5476_v44, %v884_v46  ;;  %v912_v48 = vsel %vm911_vm15, %v5474_v39, %v908_v47 }
 0x2c5   : > { %935 = vperm.xlu0 %4946, %v912_v48  }
 0x2c6   : > { %v886_v51 = vmul.f32 0.5, %v885_v49 }
 0x2c8   : > { %v887_v52 = vsub.f32 1.5, %v886_v51 }
 0x2ca   : > { %v888_v53 = vmul.f32 %v5476_v44, %v887_v52 }
 0x2cc   : > { %v892_v55 = vsel %vm891_vm12, %v5476_v44, %v888_v53  ;;  %v869_v21 = vpop.permute.xlu1 %868 }
 0x2cd   : > { %925 = vperm.xlu2 %4948, %v892_v55   ;;  %4950 = vset.pattern.permute.xlu0 %v5638_v29  ;;  %v877_v42 = vsub.f32 %v5872_v37, %v869_v21  ;;  %v878_v43 = vsub.f32 %v5874_v38, %v869_v21 }
 0x2ce   : > { %v842_v56 = vpop.permute.xlu0 %841  ;;  %980 = vperm.xlu0 %4950, %v5775_v45  }
 0x2cf   : > { %v850_v57 = vsub.f32 %v826_v20, %v842_v56  ;;  %v5931_v20 = vpop.permute.xlu2 %858 }
 0x2d0   : > { %v874_v16 = vsub.f32 %v5854_v18, %v5931_v20 }
 0x2d1   : > { %v882_v58 = vadd.f32 1e-05, %v850_v57 }
 0x2d3   : > { %5477 = vrsqrt.f32 %v882_v58  ;;  %vm919_vm12 = vweird.f32 %v882_v58 }
 0x2d4   : > { %v854_v30 = vpop.permute.xlu1 %853 }
 0x2d6   : > { %v838_v59 = vpop.permute.xlu0 %837 }
 0x2d7   : > { %v848_v60 = vsub.f32 %v824_v22, %v838_v59  ;;  %v989_v22 = vpop.permute.xlu2 %988 }
 0x2d9   : > { %v5478_v61 = vpop.eup %5477  ;;  %v880_v62 = vadd.f32 1e-05, %v848_v60 }
 0x2da   : > { %v914_v63 = vmul.f32 %v5478_v61, %v882_v58  ;;  %vm920_vm3 = vweird.f32 %v5478_v61 }
 0x2db   : > { %5479 = vrsqrt.f32 %v880_v62  ;;  %vm921_vm9 = vmor %vm919_vm12, %vm920_vm3  ;;  %vm899_vm15 = vweird.f32 %v880_v62 }
 0x2dc   : > { %v915_v1 = vmul.f32 %v5478_v61, %v914_v63 }
 0x2dd   : > { %v961_v40 = vpop.permute.xlu1 %960 }
 0x2de   : > { %v916_v2 = vmul.f32 0.5, %v915_v1  ;;  %v985_v19 = vpop.permute.xlu0 %984 }
 0x2e0   : > { %v917_v3 = vsub.f32 1.5, %v916_v2 }
 0x2e1   : > { %v5480_v4 = vpop.eup %5479 }
 0x2e2   : > { %v894_v5 = vmul.f32 %v5480_v4, %v880_v62  ;;  %v918_v6 = vmul.f32 %v5478_v61, %v917_v3  ;;  %vm900_vm14 = vweird.f32 %v5480_v4 }
 0x2e3   : > { %vm901_vm0 = vmor %vm899_vm15, %vm900_vm14 }
 0x2e4   : > { %v895_v8 = vmul.f32 %v5480_v4, %v894_v5  ;;  %v922_v9 = vsel %vm921_vm9, %v5478_v61, %v918_v6 }
 0x2e5   : > { %940 = vperm.xlu2 %4948, %v922_v9   ;;  %v871_v9 = vsub.f32 %v5868_v33, %v854_v30  ;;  %v5965_v21 = vpop.permute.xlu1 %952 }
 0x2e6   : > { %v896_v10 = vmul.f32 0.5, %v895_v8 }
 0x2e7   : > { %v965_v23 = vpop.permute.xlu0 %964 }
 0x2e8   : > { %v897_v11 = vsub.f32 1.5, %v896_v10 }
 0x2ea   : > { %v898_v12 = vmul.f32 %v5480_v4, %v897_v11 }
 0x2ec   : > { %v902_v15 = vsel %vm901_vm0, %v5480_v4, %v898_v12 }
 0x2ed   : > { %930 = vperm.xlu1 %4944, %v902_v15   ;;  %956 = vperm.xlu2 %4948, %v5775_v45   ;;  %v873_v15 = vsub.f32 %v5852_v17, %v5931_v20 }
 0x2f5   : > { %4949 = vset.pattern.permute.xlu1 %v5638_v29 }
 0x2f6   : > { %976 = vperm.xlu1 %4949, %v5840_v7  }
 0x327   : > { %v926_v35 = vpop.permute.xlu2 %925 }
 0x337   : > { %v936_v36 = vpop.permute.xlu0 %935 }
 0x338   : > { %v947_v39 = vmul.f32 %v936_v36, %v875_v31  ;;  %v948_v45 = vmul.f32 %v936_v36, %v876_v32 }
 0x33a   : > { %v971_v29 = vmul.f32 %v961_v40, %v947_v39  ;;  %v972_v41 = vmul.f32 %v961_v40, %v948_v45 }
 0x33c   : > { %v5935_v7 = vadd.f32 %v985_v19, %v971_v29  ;;  %v5937_v50 = vadd.f32 %v985_v19, %v972_v41  ;;  %v872_v19 = vsub.f32 %v5870_v34, %v854_v30 }
 0x33e   : > { %v4411_v44 = vmul.f32 -1.442695, %v5935_v7  ;;  %v4412_v46 = vmul.f32 -1.442695, %v5937_v50  ;;  %v5969_v36 = vmul.f32 %v926_v35, %v872_v19 }
 0x33f   : > { %v941_v47 = vpop.permute.xlu2 %940 }
 0x340   : > { %5481 = vpow2.f32 %v4411_v44  ;;  %v949_v49 = vmul.f32 %v941_v47, %v877_v42  ;;  %v950_v48 = vmul.f32 %v941_v47, %v878_v43 }
 0x341   : > { %5483 = vpow2.f32 %v4412_v46 }
 0x342   : > { %v973_v51 = vmul.f32 %v965_v23, %v949_v49  ;;  %v974_v52 = vmul.f32 %v965_v23, %v950_v48 }
 0x344   : > { %v5943_v53 = vadd.f32 %v989_v22, %v973_v51  ;;  %v5945_v55 = vadd.f32 %v989_v22, %v974_v52  ;;  %v5967_v22 = vmul.f32 %v926_v35, %v871_v9 }
 0x346   : > { %v5482_v56 = vpop.eup %5481  ;;  %v4413_v57 = vmul.f32 -1.442695, %v5943_v53  ;;  %v4414_v60 = vmul.f32 -1.442695, %v5945_v55 }
 0x347   : > { %v5484_v58 = vpop.eup %5483  ;;  %v1027_v59 = vadd.f32 1.0, %v5482_v56 }
 0x348   : > { %v5949_v61 = vadd.f32 1.0, %v5484_v58  ;;  %5485 = vpow2.f32 %v4413_v57 }
 0x349   : > { %5487 = vrcp.f32 %v1027_v59  ;;  %v1100_v23 = vand.u32 2147483647, %v1027_v59  ;;  %v1102_v31 = vand.u32 2147483648, %v1027_v59  ;;  %vm1096_vm3 = vweird.f32 %v1027_v59 }
 0x34a   : > { %5489 = vrcp.f32 %v5949_v61  ;;  %vm1111_vm9 = vweird.f32 %v5949_v61  ;;  %v1115_v30 = vand.u32 2147483647, %v5949_v61  ;;  %v1117_v41 = vand.u32 2147483648, %v5949_v61 }
 0x34b   : > { %5491 = vpow2.f32 %v4414_v60  ;;  %vm5976_vm14 = vcmp.eq.f32.partialorder %v1100_v23, 8.507059e+37  ;;  %v1103_v44 = vor.u32 1.1754944e-38, %v1102_v31 }
 0x34e   : > { %v5486_v62 = vpop.eup %5485 }
 0x34f   : > { %v5488_v63 = vpop.eup %5487  ;;  %v1029_v1 = vadd.f32 1.0, %v5486_v62 }
 0x350   : > { %v5952_v2 = vpop.eup %5489  ;;  %v1092_v3 = vmul.f32 %v5488_v63, %v1027_v59  ;;  %vm1097_vm12 = vweird.f32 %v5488_v63 }
 0x351   : > { %v5492_v4 = vpop.eup %5491  ;;  %5493 = vrcp.f32 %v1029_v1  ;;  %v1107_v6 = vmul.f32 %v5952_v2, %v5949_v61  ;;  %v1130_v29 = vand.u32 2147483647, %v1029_v1  ;;  %v1132_v42 = vand.u32 2147483648, %v1029_v1  ;;  %vm5982_vm0 = vmor %vm1096_vm3, %vm1097_vm12 }
 0x352   : > { %v1093_v5 = vsub.f32 1.0, %v1092_v3  ;;  %v5956_v8 = vadd.f32 1.0, %v5492_v4  ;;  %vm1112_vm6 = vweird.f32 %v5952_v2  ;;  %vm1126_vm10 = vweird.f32 %v1029_v1 }
 0x353   : > { %v1108_v11 = vsub.f32 1.0, %v1107_v6  ;;  %vm1131_vm4 = vcmp.eq.f32.partialorder %v1130_v29, 8.507059e+37  ;;  %v1133_v57 = vor.u32 1.1754944e-38, %v1132_v42  ;;  %v967_v29 = vmul.f32 %v5965_v21, %v5967_v22 }
 0x354   : > { %5495 = vrcp.f32 %v5956_v8  ;;  %v1094_v10 = vmul.f32 %v5488_v63, %v1093_v5  ;;  %v1147_v48 = vand.u32 2147483648, %v5956_v8  ;;  %v1145_v59 = vand.u32 2147483647, %v5956_v8 }
 0x355   : > { %v1109_v40 = vmul.f32 %v5952_v2, %v1108_v11  ;;  %vm1141_vm12 = vweird.f32 %v5956_v8  ;;  %v981_v11 = vpop.permute.xlu0 %980 }
 0x356   : > { %v1095_v45 = vadd.f32 %v5488_v63, %v1094_v10  ;;  %v1148_v9 = vor.u32 1.1754944e-38, %v1147_v48  ;;  %v957_v10 = vpop.permute.xlu2 %956 }
 0x357   : > { %v5494_v12 = vpop.eup %5493  ;;  %v1110_v52 = vadd.f32 %v5952_v2, %v1109_v40 }
 0x358   : > { %v1122_v32 = vmul.f32 %v5494_v12, %v1029_v1  ;;  %vm1127_vm15 = vweird.f32 %v5494_v12  ;;  %v1099_v51 = vsel %vm5982_vm0, %v5488_v63, %v1095_v45  ;;  %vm5999_vm0 = vmor %vm1111_vm9, %vm1112_vm6  ;;  %vm1116_vm6 = vcmp.eq.f32.partialorder %v1115_v30, 8.507059e+37 }
 0x359   : > { %vm1128_vm11 = vmor %vm1126_vm10, %vm1127_vm15  ;;  %v1104_v4 = vsel %vm5976_vm14, %v1103_v44, %v1099_v51  ;;  %vm1146_vm10 = vcmp.eq.f32.partialorder %v1145_v59, 8.507059e+37  ;;  %v968_v30 = vmul.f32 %v5965_v21, %v5969_v36 }
 0x35a   : > { %v5496_v39 = vpop.eup %5495  ;;  %v1123_v20 = vsub.f32 1.0, %v1122_v32  ;;  %v6011_v23 = vmul.f32 %v1104_v4, %v5935_v7 }
 0x35b   : > { %v1137_v43 = vmul.f32 %v5496_v39, %v5956_v8  ;;  %vm1142_vm3 = vweird.f32 %v5496_v39  ;;  %v1114_v8 = vsel %vm5999_vm0, %v5952_v2, %v1110_v52 }
 0x35c   : > { %v1124_v46 = vmul.f32 %v5494_v12, %v1123_v20 }
 0x35d   : > { %v1138_v49 = vsub.f32 1.0, %v1137_v43 }
 0x35e   : > { %v1125_v56 = vadd.f32 %v5494_v12, %v1124_v46 }
 0x35f   : > { %v1139_v58 = vmul.f32 %v5496_v39, %v1138_v49  ;;  %v931_v60 = vpop.permute.xlu1 %930 }
 0x360   : > { %v1129_v62 = vsel %vm1128_vm11, %v5494_v12, %v1125_v56  ;;  %v945_v1 = vmul.f32 %v931_v60, %v873_v15  ;;  %v946_v3 = vmul.f32 %v931_v60, %v874_v16  ;;  %vm1143_vm11 = vmor %vm1141_vm12, %vm1142_vm3  ;;  %v1118_v16 = vor.u32 1.1754944e-38, %v1117_v41 }
 0x361   : > { %v1134_v5 = vsel %vm1131_vm4, %v1133_v57, %v1129_v62  ;;  %v1140_v6 = vadd.f32 %v5496_v39, %v1139_v58 }
 0x362   : > { %v6008_v12 = vmul.f32 %v1134_v5, %v5943_v53  ;;  %v969_v15 = vmul.f32 %v957_v10, %v945_v1  ;;  %v970_v61 = vmul.f32 %v957_v10, %v946_v3  ;;  %v1119_v2 = vsel %vm1116_vm6, %v1118_v16, %v1114_v8 }
 0x363   : > { %v1144_v19 = vsel %vm1143_vm11, %v5496_v39, %v1140_v6 }
 0x364   : > { %v1149_v31 = vsel %vm1146_vm10, %v1148_v9, %v1144_v19  ;;  %v6013_v32 = vadd.f32 %v981_v11, %v969_v15  ;;  %v6015_v45 = vadd.f32 %v981_v11, %v970_v61  ;;  %v6024_v39 = vpack.i.bf16 %v6008_v12, %v6011_v23 }
 0x365   : > { %v6018_v40 = vmul.f32 %v1149_v31, %v5945_v55  ;;  %v1633_v7 = vpack.c.bf16 %v6008_v12, %v6011_v23  ;;  %v6033_v55 = vmul.f32 %v1119_v2, %v5937_v50 }
 0x366   : > { %v4409_v53 = vmul.f32 -1.442695, %v6013_v32  ;;  %v4410_v20 = vmul.f32 -1.442695, %v6015_v45 }
 0x367   : > { %v5051_v6 = vpack.i.bf16 %v6018_v40, %v6033_v55 }
 0x368   : > { %5497 = vpow2.f32 %v4409_v53  ;;  %v977_v41 = vpop.permute.xlu1 %976 }
 0x369   : > { %5499 = vpow2.f32 %v4410_v20  ;;  %v6035_v42 = vadd.f32 %v977_v41, %v967_v29  ;;  %v6037_v43 = vadd.f32 %v977_v41, %v968_v30 }
 0x36b   : > { %v4407_v44 = vmul.f32 -1.442695, %v6035_v42  ;;  %v4408_v22 = vmul.f32 -1.442695, %v6037_v43 }
 0x36d   : > { %5501 = vpow2.f32 %v4407_v44 }
 0x36e   : > { %v5498_v46 = vpop.eup %5497  ;;  %5503 = vpow2.f32 %v4408_v22 }
 0x36f   : > { %v5500_v21 = vpop.eup %5499  ;;  %v1025_v50 = vadd.f32 1.0, %v5498_v46 }
 0x370   : > { %v1026_v36 = vadd.f32 1.0, %v5500_v21 }
 0x371   : > { %5505 = vrcp.f32 %v1025_v50  ;;  %v1070_v58 = vand.u32 2147483647, %v1025_v50  ;;  %v1072_v59 = vand.u32 2147483648, %v1025_v50  ;;  %vm1066_vm4 = vweird.f32 %v1025_v50 }
 0x372   : > { %5507 = vrcp.f32 %v1026_v36  ;;  %v1085_v1 = vand.u32 2147483647, %v1026_v36  ;;  %v1087_v3 = vand.u32 2147483648, %v1026_v36  ;;  %vm1081_vm15 = vweird.f32 %v1026_v36 }
 0x373   : > { %v5502_v47 = vpop.eup %5501  ;;  %vm6043_vm14 = vcmp.eq.f32.partialorder %v1070_v58, 8.507059e+37  ;;  %v1073_v10 = vor.u32 1.1754944e-38, %v1072_v59 }
 0x374   : > { %v5504_v49 = vpop.eup %5503  ;;  %v1023_v48 = vadd.f32 1.0, %v5502_v47  ;;  %vm6047_vm12 = vcmp.eq.f32.partialorder %v1085_v1, 8.507059e+37  ;;  %v1088_v16 = vor.u32 1.1754944e-38, %v1087_v3 }
 0x375   : > { %v1024_v51 = vadd.f32 1.0, %v5504_v49 }
 0x376   : > { %5509 = vrcp.f32 %v1023_v48  ;;  %v1040_v53 = vand.u32 2147483647, %v1023_v48  ;;  %v1042_v20 = vand.u32 2147483648, %v1023_v48 }
 0x377   : > { %v5506_v52 = vpop.eup %5505  ;;  %5511 = vrcp.f32 %v1024_v51  ;;  %v1055_v41 = vand.u32 2147483647, %v1024_v51  ;;  %v1057_v44 = vand.u32 2147483648, %v1024_v51 }
 0x378   : > { %v5508_v56 = vpop.eup %5507  ;;  %v1062_v57 = vmul.f32 %v5506_v52, %v1025_v50  ;;  %vm1067_vm9 = vweird.f32 %v5506_v52 }
 0x379   : > { %v1077_v60 = vmul.f32 %v5508_v56, %v1026_v36  ;;  %vm1082_vm3 = vweird.f32 %v5508_v56  ;;  %vm1068_vm0 = vmor %vm1066_vm4, %vm1067_vm9  ;;  %vm1036_vm4 = vweird.f32 %v1023_v48  ;;  %v1058_v59 = vor.u32 1.1754944e-38, %v1057_v44 }
 0x37a   : > { %v1063_v62 = vsub.f32 1.0, %v1062_v57  ;;  %vm1083_vm11 = vmor %vm1081_vm15, %vm1082_vm3  ;;  %v1043_v57 = vor.u32 1.1754944e-38, %v1042_v20  ;;  %vm1041_vm15 = vcmp.eq.f32.partialorder %v1040_v53, 8.507059e+37 }
 0x37b   : > { %v1078_v4 = vsub.f32 1.0, %v1077_v60 }
 0x37c   : > { %v5510_v63 = vpop.eup %5509  ;;  %v1064_v5 = vmul.f32 %v5506_v52, %v1063_v62 }
 0x37d   : > { %v5512_v9 = vpop.eup %5511  ;;  %v1079_v11 = vmul.f32 %v5508_v56, %v1078_v4  ;;  %v1032_v8 = vmul.f32 %v5510_v63, %v1023_v48  ;;  %vm1037_vm6 = vweird.f32 %v5510_v63 }
 0x37e   : > { %v1065_v15 = vadd.f32 %v5506_v52, %v1064_v5  ;;  %v1047_v19 = vmul.f32 %v5512_v9, %v1024_v51  ;;  %vm1052_vm10 = vweird.f32 %v5512_v9  ;;  %vm1038_vm9 = vmor %vm1036_vm4, %vm1037_vm6  ;;  %v4986_v5 = vpack.i.bf16 %v6033_v55, %v6011_v23 }
 0x37f   : > { %v1080_v31 = vadd.f32 %v5508_v56, %v1079_v11  ;;  %v1033_v2 = vsub.f32 1.0, %v1032_v8  ;;  %vm6213_vm4 = vmpackc.low %vm5827_vm8, %vm5827_vm8  ;;  %vm8043_vm8 = vcmask 916480  }
 0x380   : > { %v1069_v29 = vsel %vm1068_vm0, %v5506_v52, %v1065_v15  ;;  %v1048_v30 = vsub.f32 1.0, %v1047_v19  ;;  %vm6143_vm0 = vmpackc.low %vm5753_vm5, %vm5753_vm5 }
 0x381   : > { %v1074_v22 = vsel %vm6043_vm14, %v1073_v10, %v1069_v29  ;;  %v1084_v46 = vsel %vm1083_vm11, %v5508_v56, %v1080_v31  ;;  %v1034_v21 = vmul.f32 %v5510_v63, %v1033_v2  ;;  %vm1051_vm14 = vweird.f32 %v1024_v51  ;;  %vm6176_vm5 = vmpackc.low %vm5737_vm1, %vm5737_vm1 }
 0x382   : > { %v1089_v50 = vsel %vm6047_vm12, %v1088_v16, %v1084_v46  ;;  %v6058_v47 = vmul.f32 %v1074_v22, %v6013_v32  ;;  %v1049_v49 = vmul.f32 %v5512_v9, %v1048_v30  ;;  %vm1053_vm3 = vmor %vm1051_vm14, %vm1052_vm10  ;;  %vm1056_vm12 = vcmp.eq.f32.partialorder %v1055_v41, 8.507059e+37 }
 0x383   : > { %v6061_v36 = vmul.f32 %v1089_v50, %v6015_v45  ;;  %v1035_v52 = vadd.f32 %v5510_v63, %v1034_v21  ;;  %vm8037_vm11 = vcmask 121856   ;;  %vm8045_vm14 = vmmov %vm8043_vm8 }
 0x384   : > { %v1050_v58 = vadd.f32 %v5512_v9, %v1049_v49  ;;  %vm8038_vm6 = vmmov %vm8037_vm11 }
 0x385   : > { %v1039_v56 = vsel %vm1038_vm9, %v5510_v63, %v1035_v52  ;;  %v4966_v60 = vpack.i.bf16 %v6061_v36, %v6058_v47  ;;  %v5011_v63 = vpack.i.bf16 %v6018_v40, %v6008_v12  ;;  %vm8039_vm10 = vmmov %vm8038_vm6 }
 0x386   : > { %v1044_v32 = vsel %vm1041_vm15, %v1043_v57, %v1039_v56  ;;  %v1054_v62 = vsel %vm1053_vm3, %v5512_v9, %v1050_v58  ;;  %v8035_v57 = vmov 0  ;;  %vm8040_vm1 = vmmov %vm8038_vm6  ;;  %vm8047_vm3 = vcmask 138240  }
 0x387   : > { %v1059_v1 = vsel %vm1056_vm12, %v1058_v59, %v1054_v62  ;;  %v6066_v45 = vmul.f32 %v1044_v32, %v6035_v42  ;;  %4967 = vrot.lane.b32.xlu0 %v4966_v60, %s5628_s24  ;;  %v8036_v57 = vsel %vm6176_vm5, 4294967295, %v8035_v57  ;;  %vm8044_vm9 = vmmov %vm8043_vm8 }
 0x388   : > { %v6070_v48 = vmul.f32 %v1059_v1, %v6037_v43  ;;  %vm8046_vm15 = vmmov %vm8043_vm8 }
 0x389   : > { %v4961_v51 = vpack.i.bf16 %v6058_v47, %v6066_v45  ;;  %v1631_v42 = vpack.c.bf16 %v6058_v47, %v6066_v45  ;;  %vm8048_vm12 = vmmov %vm8047_vm3 }
 0x38a   : > { %v4951_v3 = vpack.i.bf16 %v6070_v48, %v6066_v45  ;;  %v5071_v4 = vpack.i.bf16 %v6061_v36, %v6070_v48 }
 0x38b   : > { %4962 = vrot.lane.b32.xlu2 %v4961_v51, %s5632_s28 }
 0x38c   : > { %4952 = vrot.lane.b32.xlu1 %v4951_v3, %s5628_s24 }
 0x38f   : > { %4977 = vrot.lane.b32.xlu0 %v4966_v60, %s5630_s26 }
 0x393   : > { %4972 = vrot.lane.b32.xlu2 %v4961_v51, %s5629_s25 }
 0x394   : > { %4957 = vrot.lane.b32.xlu1 %v4951_v3, %s5630_s26 }
 0x397   : > { %5012 = vrot.lane.b32.xlu0 %v5011_v63, %s5628_s24 }
 0x39b   : > { %4982 = vrot.lane.b32.xlu2 %v4961_v51, %s5634_s30 }
 0x39c   : > { %4987 = vrot.lane.b32.xlu1 %v4986_v5, %s5628_s24 }
 0x39f   : > { %5022 = vrot.lane.b32.xlu0 %v5011_v63, %s5630_s26 }
 0x3a3   : > { %5007 = vrot.lane.b32.xlu2 %v6024_v39, %s5632_s28 }
 0x3a4   : > { %4992 = vrot.lane.b32.xlu1 %v4986_v5, %s5630_s26 }
 0x3a7   : > { %5032 = vrot.lane.b32.xlu0 %v5011_v63, %s5631_s27 }
 0x3ab   : > { %5017 = vrot.lane.b32.xlu2 %v6024_v39, %s5629_s25 }
 0x3ac   : > { %4997 = vrot.lane.b32.xlu1 %v4986_v5, %s5631_s27 }
 0x3af   : > { %5037 = vrot.lane.b32.xlu0 %v4966_v60, %s5631_s27 }
 0x3b3   : > { %5027 = vrot.lane.b32.xlu2 %v6024_v39, %s5634_s30 }
 0x3b4   : > { %5002 = vrot.lane.b32.xlu1 %v4951_v3, %s5631_s27 }
 0x3b7   : > { %5052 = vrot.lane.b32.xlu0 %v5051_v6, %s5632_s28 }
 0x3bb   : > { %5042 = vrot.lane.b32.xlu2 %v6024_v39, %s5633_s29 }
 0x3bc   : > { %5047 = vrot.lane.b32.xlu1 %v4961_v51, %s5633_s29 }
 0x3bf   : > { %5062 = vrot.lane.b32.xlu0 %v5071_v4, %s5629_s25 }
 0x3c3   : > { %5057 = vrot.lane.b32.xlu2 %v5071_v4, %s5632_s28 }
 0x3c4   : > { %5067 = vrot.lane.b32.xlu1 %v5051_v6, %s5629_s25 }
 0x3c7   : > { %5087 = vrot.lane.b32.xlu0 %v5051_v6, %s5627_s23 }
 0x3cb   : > { %5082 = vrot.lane.b32.xlu2 %v5051_v6, %s5634_s30 }
 0x3cc   : > { %5072 = vrot.lane.b32.xlu1 %v5071_v4, %s5634_s30 }
 0x3cf   : > { %5092 = vrot.lane.b32.xlu0 %v5071_v4, %s5633_s29 }
 0x3d3   : > { %5097 = vrot.lane.b32.xlu2 %v5051_v6, %s5633_s29 }
 0x3d4   : > { %5077 = vrot.lane.b32.xlu1 %v5071_v4, %s5627_s23 }
 0x3db   : > { %5102 = vrot.lane.b32.xlu2 %v6024_v39, %s5627_s23 }
 0x3dc   : > { %5107 = vrot.lane.b32.xlu1 %v4961_v51, %s5627_s23 }
 0x3e5   : > { %v6124_v9 = vpop.permute.xlu2 %4962 }
 0x3e6   : > { %v4965_v61 = vunpack.i.h.bf16 %v6124_v9  ;;  %v4964_v16 = vunpack.i.l.bf16 %v6124_v9  ;;  %v4561_v9 = vld [vmem:[%s7942_s5 + $0x8] sm:$0xf0] }
 0x3e8   : > { %v1331_v25 = vsel %vm7980_vm13, 0.0, %v4964_v16  ;;  %v1332_v41 = vsel %vm7980_vm13, 0.0, %v4965_v61 }
 0x3e9   : > { %v4603_v22 = vpack.c.bf16 %v1332_v41, %v1331_v25  ;;  %v8041_v25 = vmov 0 }
 0x3ea   : > { %v8042_v25 = vsel %vm6213_vm4, 4294967295, %v8041_v25 }
 0x3ed   : > { %v6126_v10 = vpop.permute.xlu2 %4972 }
 0x3ee   : > { %v7962_v46 = vunpack.i.h.bf16 %v6126_v10  ;;  %v7963_v21 = vunpack.i.l.bf16 %v6126_v10 }
 0x3f0   : > { %v1283_v13 = vsel %vm8039_vm10, 0.0, %v7963_v21  ;;  %v1284_v32 = vsel %vm8040_vm1, 0.0, %v7962_v46 }
 0x3f1   : > { %v4609_v3 = vpack.c.bf16 %v1284_v32, %v1283_v13 }
 0x3f5   : > { %v6128_v11 = vpop.permute.xlu2 %4982 }
 0x3f6   : > { %v7964_v41 = vunpack.i.h.bf16 %v6128_v11 }
 0x3f9   : > { %v6130_v8 = vpop.permute.xlu0 %4967 }
 0x3fd   : > { %v6132_v15 = vpop.permute.xlu2 %5007 }
 0x3fe   : > { %v6136_v19 = vpop.permute.xlu1 %4952  ;;  %v5010_v39 = vunpack.i.h.bf16 %v6132_v15  ;;  %v5009_v31 = vunpack.i.l.bf16 %v6132_v15  ;;  %v4417_v15 = vld [vmem:[%s7942_s5] sm:$0xf] }
 0x3ff   : > { %v4955_v6 = vunpack.i.h.bf16 %v6136_v19 }
 0x400   : > { %v1333_v53 = vsel %vm7980_vm13, 0.0, %v5009_v31  ;;  %v1334_v20 = vsel %vm7980_vm13, 0.0, %v5010_v39 }
 0x401   : > { %v6153_v29 = vpop.permute.xlu0 %4977  ;;  %v4600_v30 = vpack.c.bf16 %v1334_v20, %v1333_v53  ;;  %v4954_v53 = vunpack.i.l.bf16 %v6136_v19 }
 0x403   : > { %4601 = vmatpush.bf16.msk.msra.mxu3 %vm6143_vm0, %v4600_v30  ;;  %v1471_v27 = vsel %vm8045_vm14, %v4954_v53, %v4955_v6 }
 0x405   : > { %v6163_v44 = vpop.permute.xlu2 %5017 }
 0x406   : > { %v6167_v50 = vpop.permute.xlu1 %4957  ;;  %v7968_v49 = vunpack.i.h.bf16 %v6163_v44  ;;  %v7972_v52 = vunpack.i.l.bf16 %v6163_v44 }
 0x407   : > { %4604 = vmatpush.bf16.msk.msra.mxu3 %vm6143_vm0, %v4603_v22  ;;  %v7965_v22 = vunpack.i.l.bf16 %v6128_v11  ;;  %v8068_v19 = vunpack.i.h.bf16 %v6167_v50 }
 0x408   : > { %v1285_v58 = vsel %vm8037_vm11, 0.0, %v7972_v52  ;;  %v1286_v56 = vsel %vm8038_vm6, 0.0, %v7968_v49  ;;  %vm8049_vm11 = vcmask 924672  }
 0x409   : > { %v6186_v59 = vpop.permute.xlu0 %5012  ;;  %v4606_v60 = vpack.c.bf16 %v1286_v56, %v1285_v58  ;;  %v7978_v56 = vunpack.i.h.bf16 %v6130_v8  ;;  %vm8050_vm6 = vmmov %vm8049_vm11 }
 0x40a   : > { %v5015_v62 = vunpack.i.h.bf16 %v6186_v59  ;;  %v5014_v1 = vunpack.i.l.bf16 %v6186_v59  ;;  %vm8051_vm10 = vmmov %vm8050_vm6 }
 0x40b   : > { %4607 = vmatpush.bf16.msk.msra.mxu3 %vm6176_vm5, %v4606_v60  ;;  %v4969_v60 = vunpack.i.l.bf16 %v6130_v8  ;;  %vm8052_vm1 = vmmov %vm8050_vm6 }
 0x40c   : > { %v1474_v32 = vsel %vm8044_vm9, %v5014_v1, %v5015_v62  ;;  %v4619_v1 = vpack.c.bf16 %v7964_v41, %v7965_v22 }
 0x40d   : > { %v6198_v51 = vpop.permute.xlu2 %5027 }
 0x40e   : > { %v6200_v4 = vpop.permute.xlu1 %4987  ;;  %v7960_v63 = vunpack.i.h.bf16 %v6198_v51  ;;  %v7961_v5 = vunpack.i.l.bf16 %v6198_v51 }
 0x40f   : > { %v4990_v20 = vunpack.i.h.bf16 %v6200_v4  ;;  %v4989_v30 = vunpack.i.l.bf16 %v6200_v4  ;;  %4610 = vmatpush.bf16.msk.msra.mxu3 %vm6176_vm5, %v4609_v3  ;;  %v8064_v4 = vunpack.i.h.bf16 %v6130_v8 }
 0x410   : > { %v4614_v58 = vpack.c.bf16 %v7960_v63, %v7961_v5  ;;  %v4959_v5 = vunpack.i.l.bf16 %v6167_v50 }
 0x411   : > { %v6225_v13 = vpop.permute.xlu0 %5022  ;;  %v1473_v0 = vsel %vm8043_vm8, %v4989_v30, %v4990_v20  ;;  %v1472_v30 = vsel %vm8046_vm15, %v4969_v60, %v7978_v56  ;;  %v7971_v60 = vunpack.i.h.bf16 %v6153_v29  ;;  %vm8053_vm8 = vcmask 1039360  }
 0x412   : > { %v1645_v3 = vpack.c.bf16 %v1474_v32, %v1473_v0  ;;  %v7975_v43 = vunpack.i.h.bf16 %v6225_v13  ;;  %v5024_v35 = vunpack.i.l.bf16 %v6225_v13  ;;  %v1643_v32 = vpack.c.bf16 %v1472_v30, %v1471_v27  ;;  %vm8054_vm9 = vmmov %vm8053_vm8 }
 0x413   : > { %4615 = vmatpush.bf16.msk.msra.mxu3 %vm6213_vm4, %v4614_v58  ;;  %v4979_v30 = vunpack.i.l.bf16 %v6153_v29  ;;  %vm8055_vm14 = vmmov %vm8053_vm8  ;;  %v8057_v56 = vmov 0 }
 0x414   : > { %1722 = vmatpush.bf16.msrb.mxu2 %v1645_v3  ;;  %v7973_v3 = vunpack.i.h.bf16 %v6167_v50  ;;  %vm8056_vm15 = vmmov %vm8053_vm8  ;;  %v8074_v50 = vunpack.i.h.bf16 %v6163_v44 }
 0x415   : > { %v6240_v63 = vpop.permute.xlu2 %5042 }
 0x416   : > { %v6249_v58 = vpop.permute.xlu1 %4992  ;;  %v7969_v53 = vunpack.i.h.bf16 %v6240_v63  ;;  %v7970_v0 = vunpack.i.l.bf16 %v6240_v63 }
 0x417   : > { %v7977_v46 = vunpack.i.h.bf16 %v6249_v58  ;;  %v4994_v21 = vunpack.i.l.bf16 %v6249_v58  ;;  %4620 = vmatpush.bf16.msk.msra.mxu3 %vm6213_vm4, %v4619_v1  ;;  %v8065_v47 = vunpack.i.h.bf16 %v6249_v58  ;;  %v8070_v58 = vmov 0 }
 0x418   : > { %1723 = vmatpush.bf16.msrb.mxu2 %v1643_v32  ;;  %v1197_v41 = vsel %vm8047_vm3, 0.0, %v7970_v0  ;;  %v1198_v27 = vsel %vm8048_vm12, 0.0, %v7969_v53  ;;  %v1426_v32 = vsel %vm8050_vm6, %v5024_v35, %v7975_v43  ;;  %v1423_v53 = vsel %vm8051_vm10, %v4959_v5, %v7973_v3  ;;  %vm6320_vm3 = vmpackc.low %vm5757_vm7, %vm5757_vm7 }
 0x419   : > { %v6267_v22 = vpop.permute.xlu0 %5032  ;;  %v4622_v54 = vpack.c.bf16 %v1198_v27, %v1197_v41  ;;  %v1425_v1 = vsel %vm8049_vm11, %v4994_v21, %v7977_v46  ;;  %v1424_v35 = vsel %vm8052_vm1, %v4979_v30, %v7971_v60  ;;  %v8058_v56 = vsel %vm6320_vm3, 4294967295, %v8057_v56  ;;  %vm8059_vm7 = vmmov %vm8048_vm12 }
 0x41a   : > { %v4628_v49 = vpack.c.bf16 %v1426_v32, %v1425_v1  ;;  %v7976_v41 = vunpack.i.h.bf16 %v6267_v22  ;;  %v5034_v27 = vunpack.i.l.bf16 %v6267_v22  ;;  %v4631_v32 = vpack.c.bf16 %v1424_v35, %v1423_v53  ;;  %vm8060_vm12 = vmmov %vm8059_vm7 }
 0x41b   : > { %4623 = vmatpush.bf16.msk.msra.mxu3 %vm6143_vm0, %v4622_v54  ;;  %vm8061_vm11 = vcmask 916480   ;;  %vm8066_vm10 = vmmov %vm8052_vm1 }
 0x41c   : > { %4629 = vmatpush.bf16.msk.msrb.mxu2 %vm6143_vm0, %v4628_v49  ;;  %v1378_v30 = vsel %vm8054_vm9, %v5034_v27, %v7976_v41  ;;  %vm6375_vm6 = vmpackc.low %vm8061_vm11, %vm8061_vm11  ;;  %v1437_v45 = vsel %vm8066_vm10, %v8065_v47, 0.0 }
 0x41d   : > { %v5058_v21 = vpop.permute.xlu2 %5057  ;;  %vm6435_vm9 = vmpackc.low %vm5741_vm2, %vm5741_vm2 }
 0x41e   : > { %v6287_v1 = vpop.permute.xlu1 %4997  ;;  %v8071_v58 = vsel %vm6435_vm9, 4294967295, %v8070_v58 }
 0x41f   : > { %v7974_v54 = vunpack.i.h.bf16 %v6287_v1  ;;  %v4999_v0 = vunpack.i.l.bf16 %v6287_v1 }
 0x420   : > { %4632 = vmatpush.bf16.msk.msrb.mxu2 %vm6143_vm0, %v4631_v32 }
 0x421   : > { %v6293_v49 = vpop.permute.xlu0 %5037  ;;  %v1377_v5 = vsel %vm8053_vm8, %v4999_v0, %v7974_v54  ;;  %v5060_v54 = vunpack.i.h.bf16 %v5058_v21  ;;  %vm8069_vm8 = vmmov %vm8052_vm1 }
 0x422   : > { %v4634_v60 = vpack.c.bf16 %v1378_v30, %v1377_v5  ;;  %v5040_v53 = vunpack.i.h.bf16 %v6293_v49  ;;  %v5039_v35 = vunpack.i.l.bf16 %v6293_v49  ;;  %v5059_v5 = vunpack.i.l.bf16 %v5058_v21 }
 0x423   : > { %v1435_v8 = vsel %vm8069_vm8, %v8068_v19, 0.0 }
 0x424   : > { %4635 = vmatpush.bf16.msk.msrb.mxu2 %vm6176_vm5, %v4634_v60  ;;  %v1376_v60 = vsel %vm8056_vm15, %v5039_v35, %v5040_v53 }
 0x425   : > { %v6305_v52 = vpop.permute.xlu2 %5082 }
 0x426   : > { %v6307_v32 = vpop.permute.xlu1 %5002 }
 0x427   : > { %v5005_v3 = vunpack.i.h.bf16 %v6307_v32  ;;  %v5004_v0 = vunpack.i.l.bf16 %v6307_v32  ;;  %v8100_v32 = vunpack.i.l.bf16 %v6240_v63 }
 0x429   : > { %v5053_v43 = vpop.permute.xlu0 %5052  ;;  %v1375_v27 = vsel %vm8055_vm14, %v5004_v0, %v5005_v3  ;;  %vm8073_vm14 = vcmask 121856  }
 0x42a   : > { %v5055_v30 = vunpack.i.h.bf16 %v5053_v43  ;;  %v5054_v41 = vunpack.i.l.bf16 %v5053_v43  ;;  %v4637_v46 = vpack.c.bf16 %v1376_v60, %v1375_v27  ;;  %v1319_v27 = vsel %vm7980_vm13, %v4964_v16, %v5059_v5  ;;  %v4419_v16 = vld [vmem:[%s7942_s5 + $0xc] sm:$0xf0]  ;;  %vm8075_vm15 = vmmov %vm8073_vm14 }
 0x42b   : > { %vm8078_vm2 = vmmov %vm8073_vm14 }
 0x42c   : > { %4638 = vmatpush.bf16.msk.msrb.mxu2 %vm6176_vm5, %v4637_v46  ;;  %v1321_v0 = vsel %vm7980_vm13, %v5009_v31, %v5054_v41  ;;  %v1322_v21 = vsel %vm7980_vm13, %v5010_v39, %v5055_v30  ;;  %v1320_v46 = vsel %vm7980_vm13, %v4965_v61, %v5060_v54  ;;  %v4560_v61 = vld [vmem:[%s7942_s5 + $0x4] sm:$0xf]  ;;  %v5639_v39 = vmov 3  }
 0x42d   : > { %v6332_v43 = vpop.permute.xlu2 %5097  ;;  %v4646_v35 = vpack.c.bf16 %v1322_v21, %v1321_v0  ;;  %5113 = vset.pattern.permute.xlu1 %v5639_v39  ;;  %v4649_v54 = vpack.c.bf16 %v1320_v46, %v1319_v27  ;;  %5112 = vset.pattern.permute.xlu2 %v5639_v39  ;;  %v8062_v30 = vmov 0  ;;  %v6382_v0 = vld [vmem:[%s7946_s9 + $0x10] sm:$0xff]  ;;  %v4664_v21 = vpack.c.bf16 %v5015_v62, %v4990_v20  ;;  %v6399_v46 = vld [vmem:[%s7946_s9 + $0x18] sm:$0xff] }
 0x42e   : > { %v6334_v28 = vpop.permute.xlu1 %5047  ;;  %v8063_v30 = vsel %vm6375_vm6, 4294967295, %v8062_v30  ;;  %1660 = vperm.xlu2 %5112, %v6382_v0   ;;  %5111 = vset.pattern.permute.xlu0 %v5639_v39  ;;  %v6394_v27 = vor.u32 %v4560_v61, %v4419_v16  ;;  %v4667_v20 = vpack.c.bf16 %v8064_v4, %v4955_v6  ;;  %v8067_v16 = vunpack.i.h.bf16 %v6225_v13  ;;  %v1820_v6 = vld [vmem:[%s6414_s13 + $0x18] sm:$0xff] }
 0x42f   : > { %v5050_v60 = vunpack.i.h.bf16 %v6334_v28  ;;  %v5049_v31 = vunpack.i.l.bf16 %v6334_v28  ;;  %4647 = vmatpush.bf16.msk.msrb.mxu1 %vm6320_vm3, %v4646_v35  ;;  %v6392_v35 = vor.u32 %v4561_v9, %v4417_v15  ;;  %1664 = vperm.xlu0 %5111, %v6399_v46   ;;  %v8072_v13 = vunpack.i.l.bf16 %v6163_v44  ;;  %v4425_v28 = vld [vmem:[%s7942_s5 + $0x8] sm:$0xf] }
 0x430   : > { %1728 = vmatpush.bf16.msrb.mxu2 %v1633_v7  ;;  %v6370_v7 = vld [vmem:[%s7946_s9 + $0x8] sm:$0xff]  ;;  %v1438_v39 = vsel %vm8052_vm1, %v8067_v16, 0.0  ;;  %v5084_v44 = vunpack.i.l.bf16 %v6305_v52 }
 0x431   : > { %v5063_v41 = vpop.permute.xlu0 %5062  ;;  %v1195_v12 = vsel %vm8059_vm7, 0.0, %v5049_v31  ;;  %v1196_v23 = vsel %vm8060_vm12, 0.0, %v5050_v60  ;;  %1656 = vperm.xlu1 %5113, %v6370_v7   ;;  %vm8080_vm7 = vmmov %vm8078_vm2  ;;  %vm8081_vm12 = vcmask 908288  }
 0x432   : > { %v4625_v5 = vpack.c.bf16 %v1196_v23, %v1195_v12  ;;  %v5064_v15 = vunpack.i.l.bf16 %v5063_v41  ;;  %vm8082_vm11 = vmmov %vm8081_vm12 }
 0x433   : > { %4650 = vmatpush.bf16.msk.msrb.mxu1 %vm6320_vm3, %v4649_v54  ;;  %vm8083_vm10 = vmmov %vm8082_vm11 }
 0x434   : > { %4626 = vmatpush.bf16.msk.msra.mxu3 %vm6143_vm0, %v4625_v5  ;;  %1729 = vmatpush.bf16.msrb.mxu2 %v1631_v42  ;;  %v5065_v42 = vunpack.i.h.bf16 %v5063_v41  ;;  %v4670_v5 = vpack.c.bf16 %v1438_v39, %v1437_v45  ;;  %v8077_v45 = vunpack.i.l.bf16 %v6126_v10  ;;  %vm8084_vm1 = vmmov %vm8083_vm10 }
 0x435   : > { %v5103_v62 = vpop.permute.xlu2 %5102 }
 0x436   : > { %v5068_v59 = vpop.permute.xlu1 %5067  ;;  %v5105_v41 = vunpack.i.h.bf16 %v5103_v62 }
 0x437   : > { %v5070_v9 = vunpack.i.h.bf16 %v5068_v59  ;;  %v5069_v61 = vunpack.i.l.bf16 %v5068_v59  ;;  %1711 = vmatmul.bf16.vlgmr.msra.gmra.mxu3 %v6392_v35  ;;  %1730 = vmatmul.bf16.vlgmr.msrb.gmra.mxu2 %v6394_v27 }
 0x438   : > { %4665 = vmatpush.bf16.msk.msrb.mxu3 %vm6375_vm6, %v4664_v21  ;;  %v5104_v21 = vunpack.i.l.bf16 %v5103_v62  ;;  %v8079_v62 = vunpack.i.h.bf16 %v6126_v10  ;;  %5115 = vset.pattern.permute.xlu0 %v8076_v14 }
 0x439   : > { %v5088_v54 = vpop.permute.xlu0 %5087  ;;  %v1273_v12 = vsel %vm8073_vm14, %v8072_v13, %v5069_v61  ;;  %v1274_v23 = vsel %vm8075_vm15, %v8074_v50, %v5070_v9  ;;  %5114 = vset.pattern.permute.xlu1 %v8076_v14  ;;  %v5085_v61 = vunpack.i.h.bf16 %v6305_v52  ;;  %v1271_v9 = vsel %vm8078_vm2, %v8077_v45, %v5064_v15 }
 0x43a   : > { %v5090_v59 = vunpack.i.h.bf16 %v5088_v54  ;;  %v5089_v4 = vunpack.i.l.bf16 %v5088_v54  ;;  %v4652_v47 = vpack.c.bf16 %v1274_v23, %v1273_v12  ;;  %1838 = vperm.xlu1 %5114, %v1820_v6   ;;  %v1272_v16 = vsel %vm8080_vm7, %v8079_v62, %v5065_v42 }
 0x43b   : > { %v8085_v42 = vunpack.i.h.bf16 %v6153_v29  ;;  %v4655_v12 = vpack.c.bf16 %v1272_v16, %v1271_v9  ;;  %v8086_v23 = vunpack.i.h.bf16 %v6287_v1  ;;  %vm8087_vm14 = vcmask 1039360   ;;  %v4429_v1 = vld [vmem:[%s7942_s5 + $0x18] sm:$0xf] }
 0x43c   : > { %4668 = vmatpush.bf16.msk.msrb.mxu3 %vm6375_vm6, %v4667_v20  ;;  %v6451_v20 = vld [vmem:[%s7946_s9] sm:$0xff]  ;;  %v1526_v39 = vsel %vm8081_vm12, %v5090_v59, 0.0  ;;  %v1525_v19 = vsel %vm8082_vm11, %v5089_v4, 0.0  ;;  %4653 = vmatpush.bf16.msk.msrb.mxu1 %vm6435_vm9, %v4652_v47  ;;  %v1513_v6 = vsel %vm8083_vm10, %v5104_v21, %v5089_v4  ;;  %v1514_v52 = vsel %vm8084_vm1, %v5105_v41, %v5090_v59  ;;  %vm8093_vm7 = vmmov %vm8087_vm14 }
 0x43d   : > { %1652 = vperm.xlu2 %5112, %v6451_v20   ;;  %v4682_v54 = vpack.c.bf16 %v1526_v39, %v1525_v19  ;;  %v4640_v10 = vpack.c.bf16 %v1514_v52, %v1513_v6  ;;  %v1436_v15 = vsel %vm8069_vm8, %v8085_v42, 0.0  ;;  %v1389_v47 = vsel %vm8087_vm14, %v8086_v23, 0.0  ;;  %v4564_v59 = vld [vmem:[%s7942_s5 + $0x20] sm:$0xf0]  ;;  %vm8098_vm10 = vmmov %vm8093_vm7 }
 0x43e   : > { %v5073_v13 = vpop.permute.xlu1 %5072  ;;  %v4673_v50 = vpack.c.bf16 %v1436_v15, %v1435_v8  ;;  %v8088_v41 = vunpack.i.l.bf16 %v6198_v51  ;;  %vm8089_vm15 = vcmask 130048   ;;  %v8092_v4 = vunpack.i.h.bf16 %v6267_v22  ;;  %v1817_v15 = vld [vmem:[%s6414_s13] sm:$0xff]  ;;  %vm8099_vm1 = vmmov %vm8093_vm7 }
 0x43f   : > { %v5075_v45 = vunpack.i.h.bf16 %v5073_v13  ;;  %v5074_v21 = vunpack.i.l.bf16 %v5073_v13  ;;  %4641 = vmatpush.bf16.msk.msrb.mxu0 %vm6176_vm5, %v4640_v10  ;;  %4683 = vmatpush.bf16.msk.msra.mxu2 %vm6435_vm9, %v4682_v54  ;;  %vm8091_vm2 = vmmov %vm8089_vm15  ;;  %v5100_v22 = vunpack.i.h.bf16 %v6332_v43  ;;  %v5099_v62 = vunpack.i.l.bf16 %v6332_v43 }
 0x440   : > { %4671 = vmatpush.bf16.msk.msrb.mxu3 %vm6320_vm3, %v4670_v5  ;;  %v1233_v29 = vsel %vm8089_vm15, %v8088_v41, %v5084_v44  ;;  %v8090_v5 = vunpack.i.h.bf16 %v6198_v51  ;;  %v1390_v9 = vsel %vm8093_vm7, %v8092_v4, 0.0  ;;  %4656 = vmatpush.bf16.msk.msrb.mxu1 %vm6435_vm9, %v4655_v12  ;;  %v4563_v51 = vld [vmem:[%s7942_s5 + $0x1c] sm:$0xf]  ;;  %v4430_v39 = vor.u32 %v4564_v59, %v4429_v1  ;;  %vm8095_vm12 = vmmov %vm8091_vm2 }
 0x441   : > { %v4676_v44 = vpack.c.bf16 %v1390_v9, %v1389_v47  ;;  %v8094_v6 = vunpack.i.l.bf16 %v6128_v11  ;;  %v8096_v54 = vunpack.i.h.bf16 %v6128_v11  ;;  %vm8097_vm11 = vmmov %vm8091_vm2  ;;  %v1387_v42 = vsel %vm8098_vm10, %v5005_v3, 0.0  ;;  %v5093_v13 = vpop.permute.xlu0 %5092 }
 0x442   : > { %v1234_v8 = vsel %vm8091_vm2, %v8090_v5, %v5085_v61  ;;  %v4431_v61 = vld [vmem:[%s7942_s5 + $0x24] sm:$0xf0]  ;;  %1823 = vperm.xlu1 %5114, %v1817_v15   ;;  %v1388_v43 = vsel %vm8099_vm1, %v5040_v53, 0.0  ;;  %vm8101_vm8 = vcmask 138240   ;;  %v8102_v23 = vunpack.i.h.bf16 %v6240_v63  ;;  %v1819_v53 = vld [vmem:[%s6414_s13 + $0x10] sm:$0xff] }
 0x443   : > { %v1622_v16 = vpack.c.bf16 %v1234_v8, %v1233_v29  ;;  %v4434_v19 = vor.u32 %v4563_v51, %v4431_v61  ;;  %v1231_v52 = vsel %vm8095_vm12, %v8094_v6, %v5074_v21  ;;  %v1232_v10 = vsel %vm8097_vm11, %v8096_v54, %v5075_v45  ;;  %vm8103_vm14 = vmmov %vm8101_vm8  ;;  %v1818_v29 = vld [vmem:[%s6414_s13 + $0x8] sm:$0xff]  ;;  %1833 = vperm.xlu0 %5115, %v1819_v53   ;;  %s433_s13 = scalar_lea.vmem %s7939_s2, %s8215_s14 }
 0x444   : > { %4674 = vmatpush.bf16.msk.msrb.mxu3 %vm6320_vm3, %v4673_v50  ;;  %v1620_v12 = vpack.c.bf16 %v1232_v10, %v1231_v52  ;;  %v4679_v50 = vpack.c.bf16 %v1388_v43, %v1387_v42  ;;  %v1185_v3 = vsel %vm8101_vm8, %v8100_v32, %v5099_v62  ;;  %v1186_v47 = vsel %vm8103_vm14, %v8102_v23, %v5100_v22  ;;  %vm8106_vm7 = vmmov %vm8101_vm8 }
 0x445   : > { %5116 = vset.pattern.permute.xlu2 %v8076_v14  ;;  %1764 = vmatpush.bf16.msrb.mxu1 %v1622_v16  ;;  %v5095_v45 = vunpack.i.h.bf16 %v5093_v13  ;;  %v5094_v21 = vunpack.i.l.bf16 %v5093_v13  ;;  %vm8104_vm15 = vcmask 908288   ;;  %v4658_v1 = vpack.c.bf16 %v1186_v47, %v1185_v3  ;;  %vm8107_vm12 = vmmov %vm8106_vm7 }
 0x446   : > { %v5078_v11 = vpop.permute.xlu1 %5077  ;;  %vm8105_vm2 = vmmov %vm8104_vm15  ;;  %1828 = vperm.xlu2 %5116, %v1818_v29   ;;  %v8108_v9 = vpack.c.bf16 %v6018_v40, %v6033_v55  ;;  %vm8112_vm1 = vcmask 261120  }
 0x447   : > { %v5080_v49 = vunpack.i.h.bf16 %v5078_v11  ;;  %v5079_v41 = vunpack.i.l.bf16 %v5078_v11  ;;  %1716 = vmatmul.bf16.gmra.mxu3 %v4430_v39  ;;  %1735 = vmatmul.bf16.gmra.mxu2 %v4434_v19  ;;  %v1183_v59 = vsel %vm8106_vm7, %v5049_v31, %v5094_v21  ;;  %v1184_v4 = vsel %vm8107_vm12, %v5050_v60, %v5095_v45  ;;  %v4562_v60 = vld [vmem:[%s7942_s5 + $0x10] sm:$0xf0]  ;;  %vm8110_vm11 = vmmov %vm8105_vm2 }
 0x448   : > { %4677 = vmatpush.bf16.msk.msrb.mxu3 %vm6435_vm9, %v4676_v44  ;;  %v4661_v61 = vpack.c.bf16 %v1184_v4, %v1183_v59  ;;  %v8109_v31 = vpack.c.bf16 %v6061_v36, %v6070_v48  ;;  %vm8111_vm10 = vmmov %vm8105_vm2  ;;  %v4426_v16 = vor.u32 %v4562_v60, %v4425_v28  ;;  %v4437_v36 = vld [vmem:[%s7942_s5 + $0x20] sm:$0xf]  ;;  %v4565_v48 = vld [vmem:[%s7942_s5 + $0x28] sm:$0xf0] }
 0x449   : > { %1765 = vmatpush.bf16.msrb.mxu1 %v1620_v12  ;;  %v1524_v5 = vsel %vm8104_vm15, %v5080_v49, 0.0  ;;  %v1523_v8 = vsel %vm8105_vm2, %v5079_v41, 0.0  ;;  %vm8113_vm8 = vmmov %vm8112_vm1 }
 0x44a   : > { %v4685_v63 = vpack.c.bf16 %v1524_v5, %v1523_v8  ;;  %vm8114_vm14 = vmmov %vm8112_vm1 }
 0x44b   : > { %vm8115_vm15 = vmmov %vm8112_vm1 }
 0x44c   : > { %4680 = vmatpush.bf16.msk.msrb.mxu3 %vm6435_vm9, %v4679_v50  ;;  %4686 = vmatpush.bf16.msk.msra.mxu2 %vm6435_vm9, %v4685_v63  ;;  %vm8116_vm2 = vmmov %vm8112_vm1 }
 0x44d   : > { %4659 = vmatpush.bf16.msk.msrb.mxu1 %vm6320_vm3, %v4658_v1  ;;  %vm8117_vm7 = vmmov %vm8112_vm1 }
 0x44e   : > { %v5108_v51 = vpop.permute.xlu1 %5107  ;;  %vm8118_vm12 = vmmov %vm8112_vm1 }
 0x44f   : > { %v5110_v44 = vunpack.i.h.bf16 %v5108_v51  ;;  %v5109_v22 = vunpack.i.l.bf16 %v5108_v51 }
 0x450   : > { %1785 = vmatpush.bf16.msrb.mxu3 %v8108_v9 }
 0x451   : > { %4662 = vmatpush.bf16.msk.msrb.mxu1 %vm6320_vm3, %v4661_v61  ;;  %v1511_v40 = vsel %vm8110_vm11, %v5109_v22, %v5079_v41  ;;  %v1512_v55 = vsel %vm8111_vm10, %v5110_v44, %v5080_v49  ;;  %vm8119_vm11 = vmmov %vm8112_vm1 }
 0x452   : > { %v4643_v62 = vpack.c.bf16 %v1512_v55, %v1511_v40 }
 0x454   : > { %1786 = vmatpush.bf16.msrb.mxu3 %v8109_v31  ;;  %1768 = vmatmul.bf16.vlgmr.msrb.gmra.mxu1 %v6392_v35  ;;  %v4438_v35 = vor.u32 %v4565_v48, %v4437_v36 }
 0x455   : > { %4644 = vmatpush.bf16.msk.msrb.mxu0 %vm6176_vm5, %v4643_v62 }
 0x457   : > { %1787 = vmatmul.bf16.vlgmr.msrb.gmra.mxu3 %v6394_v27  ;;  %4441 = vmatmul.msk.bf16.vlgmr.msra.gmra.mxu2 %vm8113_vm8, %v4426_v16 }
 0x458   : > { %4439 = vmatmul.msk.bf16.vlgmr.msrb.gmra.mxu0 %vm8112_vm1, %v4426_v16 }
 0x464   : > { %1773 = vmatmul.bf16.gmra.mxu1 %v4430_v39 }
 0x467   : > { %1792 = vmatmul.bf16.gmra.mxu3 %v4434_v19  ;;  %4442 = vmatmul.msk.bf16.gmra.mxu2 %vm8115_vm15, %v4438_v35 }
 0x468   : > { %4440 = vmatmul.msk.bf16.gmra.mxu0 %vm8114_vm14, %v4438_v35 }
 0x488   : > { %v1661_v13 = vpop.permute.xlu2 %1660 }
 0x497   : > { %v1653_v23 = vpop.permute.xlu2 %1652 }
 0x4a0   : > { %v1829_v1 = vpop.permute.xlu2 %1828 }
 0x4a1   : > { %v1665_v49 = vpop.permute.xlu0 %1664 }
 0x4a3   : > { %v1657_v39 = vpop.permute.xlu1 %1656 }
 0x4b5   : > { %v1834_v60 = vpop.permute.xlu0 %1833 }
 0x4ba   : > { %v1712_v6 = vpop.f32.mrf.mxu3  ;;  %v6576_v52 = vpop.f32.mrf.mxu2 }
 0x4c2   : > { %v1714_v27 = vpop.f32.mrf.mxu3  ;;  %v1733_v54 = vpop.f32.mrf.mxu2 }
 0x4c3   : > { %v1715_v47 = vadd.f32 %v1714_v27, %v1657_v39 }
 0x4c5   : > { %v1734_v45 = vadd.f32 %v1733_v54, %v1715_v47 }
 0x4ca   : > { %v1717_v10 = vpop.f32.mrf.mxu3  ;;  %v1736_v42 = vpop.f32.mrf.mxu2 }
 0x4cb   : > { %v1718_v53 = vadd.f32 %v1717_v10, %v1661_v13 }
 0x4cd   : > { %v1737_v9 = vadd.f32 %v1736_v42, %v1718_v53  ;;  %v1839_v42 = vpop.permute.xlu1 %1838 }
 0x4d1   : > { %v1769_v15 = vpop.f32.mrf.mxu1 }
 0x4d2   : > { %v1719_v43 = vpop.f32.mrf.mxu3  ;;  %v1738_v11 = vpop.f32.mrf.mxu2  ;;  %v1770_v27 = vadd.f32 %v1769_v15, %v1653_v23 }
 0x4d3   : > { %v1720_v40 = vadd.f32 %v1719_v43, %v1665_v49 }
 0x4d5   : > { %v1750_v12 = vpop.f32.mrf.mxu0  ;;  %v1739_v54 = vadd.f32 %v1738_v11, %v1720_v40 }
 0x4d9   : > { %v1771_v50 = vpop.f32.mrf.mxu1 }
 0x4da   : > { %v1788_v32 = vpop.f32.mrf.mxu3  ;;  %v1807_v3 = vpop.f32.mrf.mxu2  ;;  %v1772_v21 = vadd.f32 %v1771_v50, %v1657_v39 }
 0x4dd   : > { %v1752_v19 = vpop.f32.mrf.mxu0 }
 0x4de   : > { %v1753_v29 = vadd.f32 %v1752_v19, %v1734_v45  ;;  %v1713_v45 = vadd.f32 %v1712_v6, %v1653_v23 }
 0x4e0   : > { %v6578_v51 = vadd.f32 %v1829_v1, %v1753_v29 }
 0x4e1   : > { %v1774_v5 = vpop.f32.mrf.mxu1 }
 0x4e2   : > { %v1790_v41 = vpop.f32.mrf.mxu3  ;;  %v1809_v63 = vpop.f32.mrf.mxu2  ;;  %v1775_v44 = vadd.f32 %v1774_v5, %v1661_v13  ;;  %v1732_v5 = vadd.f32 %v6576_v52, %v1713_v45  ;;  %v1863_v6 = vmul.f32 %v6578_v51, %v6578_v51 }
 0x4e3   : > { %v1791_v8 = vadd.f32 %v1790_v41, %v1772_v21  ;;  %v1789_v21 = vadd.f32 %v1788_v32, %v1770_v27 }
 0x4e4   : > { %v1751_v32 = vadd.f32 %v1750_v12, %v1732_v5 }
 0x4e5   : > { %v1755_v59 = vpop.f32.mrf.mxu0  ;;  %v1810_v4 = vadd.f32 %v1809_v63, %v1791_v8  ;;  %v1808_v8 = vadd.f32 %v1807_v3, %v1789_v21 }
 0x4e6   : > { %v1756_v22 = vadd.f32 %v1755_v59, %v1737_v9 }
 0x4e7   : > { %v6580_v61 = vadd.f32 %v1829_v1, %v1810_v4  ;;  %v1824_v4 = vpop.permute.xlu1 %1823 }
 0x4e8   : > { %v6584_v16 = vadd.f32 %v1834_v60, %v1756_v22  ;;  %v6607_v9 = vadd.f32 %v1824_v4, %v1808_v8 }
 0x4e9   : > { %v1852_v28 = vadd.f32 %v6580_v61, %v6578_v51  ;;  %v1776_v36 = vpop.f32.mrf.mxu1  ;;  %v1864_v29 = vmul.f32 %v6580_v61, %v6580_v61 }
 0x4ea   : > { %v1793_v31 = vpop.f32.mrf.mxu3  ;;  %v1812_v62 = vpop.f32.mrf.mxu2  ;;  %v1777_v13 = vadd.f32 %v1776_v36, %v1665_v49  ;;  %v1865_v43 = vmul.f32 %v6584_v16, %v6584_v16  ;;  %v1862_v12 = vmul.f32 %v6607_v9, %v6607_v9 }
 0x4eb   : > { %v1794_v55 = vadd.f32 %v1793_v31, %v1775_v44  ;;  %1853 = vadd.xlane.f32.xlu1 %v1852_v28  ;;  %v1872_v23 = vadd.f32 %v1864_v29, %v1863_v6  ;;  %v6611_v44 = vadd.f32 %v1824_v4, %v1751_v32  ;;  %v8120_v4 = vmov 1  }
 0x4ed   : > { %v1813_v48 = vadd.f32 %v1812_v62, %v1794_v55  ;;  %v1757_v35 = vpop.f32.mrf.mxu0  ;;  %v1861_v22 = vmul.f32 %v6611_v44, %v6611_v44 }
 0x4ee   : > { %v1758_v50 = vadd.f32 %v1757_v35, %v1739_v54 }
 0x4ef   : > { %v6586_v10 = vadd.f32 %v1834_v60, %v1813_v48  ;;  %v1869_v28 = vadd.f32 %v1862_v12, %v1861_v22  ;;  %v1849_v60 = vadd.f32 %v6607_v9, %v6611_v44 }
 0x4f0   : > { %v6594_v53 = vadd.f32 %v1839_v42, %v1758_v50 }
 0x4f1   : > { %v1855_v39 = vadd.f32 %v6586_v10, %v6584_v16  ;;  %v1866_v19 = vmul.f32 %v6586_v10, %v6586_v10 }
 0x4f2   : > { %v1795_v47 = vpop.f32.mrf.mxu3  ;;  %v1814_v11 = vpop.f32.mrf.mxu2  ;;  %v1867_v1 = vmul.f32 %v6594_v53, %v6594_v53 }
 0x4f3   : > { %v1796_v41 = vadd.f32 %v1795_v47, %v1777_v13  ;;  %1856 = vadd.xlane.f32.xlu0 %v1855_v39  ;;  %v1875_v15 = vadd.f32 %v1866_v19, %v1865_v43  ;;  %v5605_v39 = vld [vmem:[%s7945_s8] sm:$0xff]  ;;  %v5606_v43 = vld [vmem:[%s7945_s8 + $0x8] sm:$0xff]  ;;  %v5607_v19 = vld [vmem:[%s7945_s8 + $0x10] sm:$0xff] }
 0x4f4   : > { %v5608_v47 = vld [vmem:[%s7945_s8 + $0x18] sm:$0xff] }
 0x4f5   : > { %v1815_v49 = vadd.f32 %v1814_v11, %v1796_v41  ;;  %1876 = vadd.xlane.f32.xlu2 %v1875_v15 }
 0x4f7   : > { %v6599_v63 = vadd.f32 %v1839_v42, %v1815_v49 }
 0x4f9   : > { %v1868_v59 = vmul.f32 %v6599_v63, %v6599_v63  ;;  %v1858_v52 = vadd.f32 %v6599_v63, %v6594_v53 }
 0x4fb   : > { %1873 = vadd.xlane.f32.xlu0 %v1872_v23  ;;  %v1878_v3 = vadd.f32 %v1868_v59, %v1867_v1  ;;  %v5640_v1 = vmov 5   ;;  %v5641_v59 = vmov 4  }
 0x4fd   : > { %1859 = vadd.xlane.f32.xlu2 %v1858_v52  ;;  %1879 = vadd.xlane.f32.xlu1 %v1878_v3 }
 0x505   : > { %1870 = vadd.xlane.f32.xlu1 %v1869_v28  ;;  %1850 = vadd.xlane.f32.xlu2 %v1849_v60 }
 0x55e   : > { %v1854_v31 = vpop.xlane.xlu1 %1853 }
 0x566   : > { %v1857_v40 = vpop.xlane.xlu0 %1856 }
 0x568   : > { %v1877_v55 = vpop.xlane.xlu2 %1876 }
 0x569   : > { %v1883_v27 = vsel %vm7980_vm13, %v1857_v40, %v1877_v55 }
 0x56e   : > { %v1874_v35 = vpop.xlane.xlu0 %1873 }
 0x56f   : > { %v1882_v54 = vsel %vm7980_vm13, %v1854_v31, %v1874_v35 }
 0x570   : > { %v1860_v62 = vpop.xlane.xlu2 %1859  ;;  %v1880_v36 = vpop.xlane.xlu1 %1879 }
 0x571   : > { %v1884_v48 = vsel %vm7980_vm13, %v1860_v62, %v1880_v36 }
 0x572   : > { %1897 = vmatpush.msra.mxu0 %v1884_v48 }
 0x574   : > { %1898 = vmatpush.msra.mxu0 %v1883_v27 }
 0x576   : > { %1899 = vmatpush.msra.mxu0 %v1882_v54 }
 0x578   : > { %v1871_v42 = vpop.xlane.xlu1 %1870  ;;  %v1851_v13 = vpop.xlane.xlu2 %1850 }
 0x579   : > { %v1881_v50 = vsel %vm7980_vm13, %v1851_v13, %v1871_v42 }
 0x57a   : > { %1900 = vmatpush.msra.mxu0 %v1881_v50 }
 0x57b   : > { %4443 = vmatmul.msk.f32.vlgmr.msra.gmra.mxu0 %vm8116_vm2, %v5605_v39 }
 0x583   : > { %4444 = vmatmul.msk.f32.gmra.mxu0 %vm8117_vm7, %v5606_v43 }
 0x58b   : > { %4445 = vmatmul.msk.f32.gmra.mxu0 %vm8118_vm12, %v5607_v19 }
 0x593   : > { %4446 = vmatmul.msk.f32.gmra.mxu0 %vm8119_vm11, %v5608_v47 }
 0x5f8   : > { %v1902_v45 = vpop.f32.mrf.mxu0 }
 0x5f9   : > { %v1914_v21 = vmul.f32 0.0009765625, %v1902_v45 }
 0x5fb   : > { %v1918_v41 = vmul.f32 %v1914_v21, %v1914_v21 }
 0x5fd   : > { %1926 = vrot.lane.b32.xlu1 %v1918_v41, %s5632_s28 }
 0x600   : > { %v1905_v15 = vpop.f32.mrf.mxu0 }
 0x601   : > { %v1915_v11 = vmul.f32 0.0009765625, %v1905_v15 }
 0x603   : > { %v1919_v32 = vmul.f32 %v1915_v11, %v1915_v11 }
 0x605   : > { %1949 = vperm.xlu1 %5114, %v1915_v11  }
 0x608   : > { %v1908_v49 = vpop.f32.mrf.mxu0 }
 0x609   : > { %v1916_v29 = vmul.f32 0.0009765625, %v1908_v49 }
 0x60b   : > { %v1920_v5 = vmul.f32 %v1916_v29, %v1916_v29 }
 0x60d   : > { %1930 = vrot.lane.b32.xlu0 %v1920_v5, %s5632_s28  ;;  %5119 = vset.pattern.permute.xlu1 %v5640_v1 }
 0x60e   : > { %2075 = vperm.xlu1 %5119, %v6382_v0  }
 0x610   : > { %v1911_v8 = vpop.f32.mrf.mxu0 }
 0x611   : > { %v1917_v6 = vmul.f32 0.0009765625, %v1911_v8 }
 0x613   : > { %v1921_v23 = vmul.f32 %v1917_v6, %v1917_v6 }
 0x615   : > { %1928 = vrot.lane.b32.xlu0 %v1919_v32, %s5632_s28  ;;  %1932 = vrot.lane.b32.xlu2 %v1921_v23, %s5632_s28 }
 0x616   : > { %5121 = vset.pattern.permute.xlu1 %v8120_v4 }
 0x61d   : > { %1959 = vperm.xlu0 %5115, %v1917_v6   ;;  %1954 = vperm.xlu2 %5116, %v1916_v29  }
 0x625   : > { %1944 = vperm.xlu0 %5115, %v1914_v21   ;;  %5117 = vset.pattern.permute.xlu2 %v5641_v59 }
 0x626   : > { %2051 = vperm.xlu2 %5117, %v6382_v0  }
 0x62d   : > { %5118 = vset.pattern.permute.xlu0 %v5641_v59 }
 0x62e   : > { %2055 = vperm.xlu0 %5118, %v6399_v46   ;;  %5120 = vset.pattern.permute.xlu2 %v5640_v1 }
 0x62f   : > { %2079 = vperm.xlu2 %5120, %v6399_v46  }
 0x636   : > { %2043 = vperm.xlu0 %5118, %v6451_v20  }
 0x637   : > { %5122 = vset.pattern.permute.xlu2 %v8120_v4 }
 0x63e   : > { %5125 = vset.pattern.permute.xlu0 %v5640_v1 }
 0x63f   : > { %2071 = vperm.xlu0 %5125, %v6370_v7  }
 0x66f   : > { %v1927_v52 = vpop.permute.xlu1 %1926  ;;  %v1933_v60 = vpop.permute.xlu2 %1932 }
 0x670   : > { %v1938_v3 = vsub.f32 %v1914_v21, %v1927_v52  ;;  %v1941_v55 = vsub.f32 %v1917_v6, %v1933_v60 }
 0x672   : > { %v1970_v12 = vadd.f32 1e-05, %v1938_v3  ;;  %v1973_v35 = vadd.f32 1e-05, %v1941_v55 }
 0x674   : > { %5513 = vrsqrt.f32 %v1970_v12  ;;  %vm1980_vm1 = vweird.f32 %v1970_v12 }
 0x67a   : > { %v5514_v22 = vpop.eup %5513 }
 0x67b   : > { %v1975_v0 = vmul.f32 %v5514_v22, %v1970_v12  ;;  %vm1981_vm10 = vweird.f32 %v5514_v22 }
 0x67c   : > { %vm1982_vm8 = vmor %vm1980_vm1, %vm1981_vm10  ;;  %vm2010_vm1 = vweird.f32 %v1973_v35 }
 0x67d   : > { %v1976_v28 = vmul.f32 %v5514_v22, %v1975_v0  ;;  %v1955_v0 = vpop.permute.xlu2 %1954 }
 0x67f   : > { %v1977_v31 = vmul.f32 0.5, %v1976_v28  ;;  %v1931_v40 = vpop.permute.xlu0 %1930 }
 0x680   : > { %v1940_v62 = vsub.f32 %v1916_v29, %v1931_v40 }
 0x681   : > { %v1978_v36 = vsub.f32 1.5, %v1977_v31  ;;  %v6660_v31 = vpop.permute.xlu1 %1949 }
 0x682   : > { %v1972_v46 = vadd.f32 1e-05, %v1940_v62 }
 0x683   : > { %v1979_v48 = vmul.f32 %v5514_v22, %v1978_v36 }
 0x684   : > { %5515 = vrsqrt.f32 %v1972_v46  ;;  %vm2000_vm15 = vweird.f32 %v1972_v46 }
 0x685   : > { %v1983_v27 = vsel %vm1982_vm8, %v5514_v22, %v1979_v48  ;;  %5517 = vrsqrt.f32 %v1973_v35  ;;  %v2052_v28 = vpop.permute.xlu2 %2051 }
 0x686   : > { %2016 = vperm.xlu1 %5121, %v1983_v27  }
 0x687   : > { %v1929_v54 = vpop.permute.xlu0 %1928 }
 0x688   : > { %v1939_v42 = vsub.f32 %v1915_v11, %v1929_v54 }
 0x689   : > { %v2076_v55 = vpop.permute.xlu1 %2075 }
 0x68a   : > { %v5516_v13 = vpop.eup %5515  ;;  %v1971_v50 = vadd.f32 1e-05, %v1939_v42 }
 0x68b   : > { %v1995_v39 = vmul.f32 %v5516_v13, %v1972_v46  ;;  %v5518_v19 = vpop.eup %5517  ;;  %vm2001_vm14 = vweird.f32 %v5516_v13 }
 0x68c   : > { %5519 = vrsqrt.f32 %v1971_v50  ;;  %v2005_v45 = vmul.f32 %v5518_v19, %v1973_v35  ;;  %vm2002_vm2 = vmor %vm2000_vm15, %vm2001_vm14  ;;  %vm1990_vm12 = vweird.f32 %v1971_v50  ;;  %vm2011_vm10 = vweird.f32 %v5518_v19 }
 0x68d   : > { %v1996_v43 = vmul.f32 %v5516_v13, %v1995_v39  ;;  %vm2012_vm8 = vmor %vm2010_vm1, %vm2011_vm10  ;;  %v2080_v40 = vpop.permute.xlu2 %2079 }
 0x68e   : > { %v2006_v29 = vmul.f32 %v5518_v19, %v2005_v45 }
 0x68f   : > { %v1997_v47 = vmul.f32 0.5, %v1996_v43  ;;  %v1960_v60 = vpop.permute.xlu0 %1959 }
 0x690   : > { %v2007_v6 = vmul.f32 0.5, %v2006_v29  ;;  %v1968_v36 = vsub.f32 %v6594_v53, %v1960_v60  ;;  %v1969_v46 = vsub.f32 %v6599_v63, %v1960_v60  ;;  %v1966_v53 = vsub.f32 %v6584_v16, %v1955_v0 }
 0x691   : > { %v1998_v21 = vsub.f32 1.5, %v1997_v47  ;;  %v1967_v63 = vsub.f32 %v6586_v10, %v1955_v0 }
 0x692   : > { %v5520_v41 = vpop.eup %5519  ;;  %v2008_v3 = vsub.f32 1.5, %v2007_v6 }
 0x693   : > { %v1985_v15 = vmul.f32 %v5520_v41, %v1971_v50  ;;  %v1999_v49 = vmul.f32 %v5516_v13, %v1998_v21  ;;  %vm1991_vm7 = vweird.f32 %v5520_v41 }
 0x694   : > { %vm1992_vm11 = vmor %vm1990_vm12, %vm1991_vm7  ;;  %v2009_v12 = vmul.f32 %v5518_v19, %v2008_v3 }
 0x695   : > { %v1986_v5 = vmul.f32 %v5520_v41, %v1985_v15  ;;  %v2003_v8 = vsel %vm2002_vm2, %v5516_v13, %v1999_v49 }
 0x696   : > { %2026 = vperm.xlu1 %5121, %v2003_v8   ;;  %v2013_v22 = vsel %vm2012_vm8, %v5518_v19, %v2009_v12 }
 0x697   : > { %v1987_v11 = vmul.f32 0.5, %v1986_v5 }
 0x699   : > { %v1988_v32 = vsub.f32 1.5, %v1987_v11 }
 0x69b   : > { %v1989_v23 = vmul.f32 %v5520_v41, %v1988_v32 }
 0x69d   : > { %v1993_v52 = vsel %vm1992_vm11, %v5520_v41, %v1989_v23 }
 0x69e   : > { %5123 = vset.pattern.permute.xlu1 %v5641_v59  ;;  %2021 = vperm.xlu2 %5122, %v1993_v52   ;;  %v1945_v59 = vpop.permute.xlu0 %1944 }
 0x69f   : > { %2047 = vperm.xlu1 %5123, %v6370_v7   ;;  %v1963_v54 = vsub.f32 %v6607_v9, %v1945_v59 }
 0x6a6   : > { %2031 = vperm.xlu2 %5122, %v2013_v22   ;;  %v2056_v7 = vpop.permute.xlu0 %2055 }
 0x6ae   : > { %5124 = vset.pattern.permute.xlu2 %v5640_v1  ;;  %v2044_v43 = vpop.permute.xlu0 %2043 }
 0x6af   : > { %2067 = vperm.xlu2 %5124, %v6451_v20   ;;  %v1962_v20 = vsub.f32 %v6611_v44, %v1945_v59 }
 0x6f8   : > { %v6662_v62 = vpop.permute.xlu2 %2021  ;;  %v2017_v48 = vpop.permute.xlu1 %2016 }
 0x6f9   : > { %v2034_v50 = vmul.f32 %v2017_v48, %v1962_v20  ;;  %v2035_v39 = vmul.f32 %v2017_v48, %v1963_v54 }
 0x6fb   : > { %v2058_v44 = vmul.f32 %v2044_v43, %v2034_v50  ;;  %v2059_v41 = vmul.f32 %v2044_v43, %v2035_v39  ;;  %v2072_v50 = vpop.permute.xlu0 %2071 }
 0x700   : > { %v2032_v35 = vpop.permute.xlu2 %2031 }
 0x701   : > { %v2040_v1 = vmul.f32 %v2032_v35, %v1968_v36  ;;  %v2041_v27 = vmul.f32 %v2032_v35, %v1969_v46  ;;  %v1965_v35 = vsub.f32 %v6580_v61, %v6660_v31 }
 0x703   : > { %v2064_v42 = vmul.f32 %v2056_v7, %v2040_v1  ;;  %v2065_v13 = vmul.f32 %v2056_v7, %v2041_v27 }
 0x705   : > { %v6668_v19 = vadd.f32 %v2080_v40, %v2064_v42  ;;  %v6670_v47 = vadd.f32 %v2080_v40, %v2065_v13  ;;  %v1964_v40 = vsub.f32 %v6578_v51, %v6660_v31  ;;  %v2037_v42 = vmul.f32 %v6662_v62, %v1965_v35 }
 0x707   : > { %v4453_v45 = vmul.f32 -1.442695, %v6668_v19  ;;  %v4454_v21 = vmul.f32 -1.442695, %v6670_v47  ;;  %v2036_v36 = vmul.f32 %v6662_v62, %v1964_v40 }
 0x708   : > { %v2027_v9 = vpop.permute.xlu1 %2026 }
 0x709   : > { %5521 = vpow2.f32 %v4453_v45  ;;  %v2038_v15 = vmul.f32 %v2027_v9, %v1966_v53  ;;  %v2039_v49 = vmul.f32 %v2027_v9, %v1967_v63  ;;  %v2068_v29 = vpop.permute.xlu2 %2067 }
 0x70a   : > { %5523 = vpow2.f32 %v4454_v21  ;;  %v6676_v5 = vadd.f32 %v2068_v29, %v2058_v44  ;;  %v6678_v8 = vadd.f32 %v2068_v29, %v2059_v41 }
 0x70b   : > { %v2062_v11 = vmul.f32 %v2052_v28, %v2038_v15  ;;  %v2063_v16 = vmul.f32 %v2052_v28, %v2039_v49 }
 0x70c   : > { %v4447_v10 = vmul.f32 -1.442695, %v6676_v5  ;;  %v4448_v6 = vmul.f32 -1.442695, %v6678_v8 }
 0x70d   : > { %v6682_v32 = vadd.f32 %v2076_v55, %v2062_v11  ;;  %v6684_v23 = vadd.f32 %v2076_v55, %v2063_v16 }
 0x70e   : > { %5525 = vpow2.f32 %v4447_v10 }
 0x70f   : > { %v5522_v52 = vpop.eup %5521  ;;  %v4451_v3 = vmul.f32 -1.442695, %v6682_v32  ;;  %5527 = vpow2.f32 %v4448_v6  ;;  %v4452_v0 = vmul.f32 -1.442695, %v6684_v23 }
 0x710   : > { %v5524_v12 = vpop.eup %5523  ;;  %v6687_v22 = vadd.f32 1.0, %v5522_v52 }
 0x711   : > { %v6690_v60 = vadd.f32 1.0, %v5524_v12  ;;  %5529 = vpow2.f32 %v4451_v3  ;;  %v2048_v7 = vpop.permute.xlu1 %2047 }
 0x712   : > { %5531 = vrcp.f32 %v6687_v22  ;;  %v2223_v27 = vand.u32 2147483648, %v6687_v22  ;;  %v2060_v20 = vmul.f32 %v2048_v7, %v2036_v36  ;;  %v2221_v31 = vand.u32 2147483647, %v6687_v22 }
 0x713   : > { %5533 = vrcp.f32 %v6690_v60  ;;  %v2238_v43 = vand.u32 2147483648, %v6690_v60  ;;  %vm2217_vm14 = vweird.f32 %v6687_v22  ;;  %v2061_v41 = vmul.f32 %v2048_v7, %v2037_v42 }
 0x714   : > { %v5526_v28 = vpop.eup %5525  ;;  %5535 = vpow2.f32 %v4452_v0  ;;  %v6725_v21 = vor.u32 1.1754944e-38, %v2223_v27  ;;  %v6728_v9 = vadd.f32 %v2072_v50, %v2060_v20  ;;  %vm6751_vm1 = vcmp.eq.f32.partialorder %v2221_v31, 8.507059e+37 }
 0x715   : > { %v5528_v59 = vpop.eup %5527  ;;  %v6696_v55 = vadd.f32 1.0, %v5526_v28 }
 0x716   : > { %v6699_v46 = vadd.f32 1.0, %v5528_v59  ;;  %v6749_v59 = vadd.f32 %v2072_v50, %v2061_v41 }
 0x717   : > { %v5530_v48 = vpop.eup %5529  ;;  %5537 = vrcp.f32 %v6696_v55  ;;  %v2131_v45 = vand.u32 2147483647, %v6696_v55  ;;  %v2133_v62 = vand.u32 2147483648, %v6696_v55  ;;  %vm8131_vm11 = vweird.f32 %v6696_v55 }
 0x718   : > { %v6704_v1 = vpop.eup %5531  ;;  %v6707_v51 = vadd.f32 1.0, %v5530_v48  ;;  %5539 = vrcp.f32 %v6699_v46  ;;  %v2146_v44 = vand.u32 2147483647, %v6699_v46  ;;  %v2148_v40 = vand.u32 2147483648, %v6699_v46 }
 0x719   : > { %v6710_v54 = vpop.eup %5533  ;;  %v2213_v13 = vmul.f32 %v6704_v1, %v6687_v22  ;;  %vm2218_vm15 = vweird.f32 %v6704_v1  ;;  %vm6738_vm12 = vcmp.eq.f32.partialorder %v2131_v45, 8.507059e+37  ;;  %v2134_v3 = vor.u32 1.1754944e-38, %v2133_v62 }
 0x71a   : > { %v5536_v61 = vpop.eup %5535  ;;  %v2228_v39 = vmul.f32 %v6710_v54, %v6690_v60  ;;  %5541 = vrcp.f32 %v6707_v51  ;;  %v2191_v29 = vand.u32 2147483647, %v6707_v51  ;;  %v2193_v11 = vand.u32 2147483648, %v6707_v51  ;;  %vm6771_vm6 = vmor %vm2217_vm14, %vm2218_vm15 }
 0x71b   : > { %v2214_v53 = vsub.f32 1.0, %v2213_v13  ;;  %v6720_v63 = vadd.f32 1.0, %v5536_v61  ;;  %vm6744_vm10 = vcmp.eq.f32.partialorder %v2146_v44, 8.507059e+37  ;;  %v2149_v22 = vor.u32 1.1754944e-38, %v2148_v40 }
 0x71c   : > { %v2229_v49 = vsub.f32 1.0, %v2228_v39  ;;  %vm6758_vm13 = vcmp.eq.f32.partialorder %v2191_v29, 8.507059e+37  ;;  %v2194_v27 = vor.u32 1.1754944e-38, %v2193_v11  ;;  %v4449_v29 = vmul.f32 -1.442695, %v6728_v9 }
 0x71d   : > { %v5538_v15 = vpop.eup %5537  ;;  %5543 = vrcp.f32 %v6720_v63  ;;  %v2215_v10 = vmul.f32 %v6704_v1, %v2214_v53  ;;  %v2206_v13 = vand.u32 2147483647, %v6720_v63  ;;  %v2208_v39 = vand.u32 2147483648, %v6720_v63 }
 0x71e   : > { %v5540_v16 = vpop.eup %5539  ;;  %v2123_v6 = vmul.f32 %v5538_v15, %v6696_v55  ;;  %v2230_v36 = vmul.f32 %v6710_v54, %v2229_v49  ;;  %vm2128_vm8 = vweird.f32 %v5538_v15  ;;  %v4450_v11 = vmul.f32 -1.442695, %v6749_v59 }
 0x71f   : > { %v2138_v12 = vmul.f32 %v5540_v16, %v6699_v46  ;;  %v2216_v42 = vadd.f32 %v6704_v1, %v2215_v10  ;;  %vm2143_vm2 = vweird.f32 %v5540_v16  ;;  %vm2129_vm7 = vmor %vm8131_vm11, %vm2128_vm8  ;;  %vm8132_vm15 = vweird.f32 %v6699_v46 }
 0x720   : > { %v5542_v0 = vpop.eup %5541  ;;  %v2124_v20 = vsub.f32 1.0, %v2123_v6  ;;  %vm2144_vm9 = vmor %vm8132_vm15, %vm2143_vm2  ;;  %5545 = vpow2.f32 %v4449_v29  ;;  %vm8134_vm3 = vweird.f32 %v6707_v51  ;;  %v2231_v55 = vadd.f32 %v6710_v54, %v2230_v36 }
 0x721   : > { %v2183_v48 = vmul.f32 %v5542_v0, %v6707_v51  ;;  %v2139_v50 = vsub.f32 1.0, %v2138_v12  ;;  %v2220_v10 = vsel %vm6771_vm6, %v6704_v1, %v2216_v42  ;;  %vm8133_vm4 = vweird.f32 %v5542_v0 }
 0x722   : > { %v2125_v53 = vmul.f32 %v5538_v15, %v2124_v20  ;;  %vm2189_vm5 = vmor %vm8134_vm3, %vm8133_vm4  ;;  %5547 = vpow2.f32 %v4450_v11  ;;  %v2225_v51 = vsel %vm6751_vm1, %v6725_v21, %v2220_v10  ;;  %vm2232_vm4 = vweird.f32 %v6690_v60 }
 0x723   : > { %v5544_v61 = vpop.eup %5543  ;;  %v2184_v31 = vsub.f32 1.0, %v2183_v48  ;;  %v2140_v62 = vmul.f32 %v5540_v16, %v2139_v50  ;;  %vm8136_vm6 = vweird.f32 %v6710_v54 }
 0x724   : > { %v2198_v45 = vmul.f32 %v5544_v61, %v6720_v63  ;;  %v2126_v49 = vadd.f32 %v5538_v15, %v2125_v53  ;;  %vm2203_vm14 = vweird.f32 %v5544_v61 }
 0x725   : > { %v2185_v41 = vmul.f32 %v5542_v0, %v2184_v31  ;;  %v2141_v12 = vadd.f32 %v5540_v16, %v2140_v62 }
 0x726   : > { %v2199_v6 = vsub.f32 1.0, %v2198_v45  ;;  %v2130_v20 = vsel %vm2129_vm7, %v5538_v15, %v2126_v49  ;;  %v5546_v7 = vpop.eup %5545 }
 0x727   : > { %v2186_v48 = vadd.f32 %v5542_v0, %v2185_v41  ;;  %v2135_v1 = vsel %vm6738_vm12, %v2134_v3, %v2130_v20  ;;  %v2145_v42 = vsel %vm2144_vm9, %v5540_v16, %v2141_v12  ;;  %v2236_v3 = vand.u32 2147483647, %v6690_v60  ;;  %vm6813_vm9 = vmor %vm2232_vm4, %vm8136_vm6 }
 0x728   : > { %v2200_v50 = vmul.f32 %v5544_v61, %v2199_v6  ;;  %v2150_v15 = vsel %vm6744_vm10, %v2149_v22, %v2145_v42  ;;  %v6793_v46 = vmul.f32 %v2135_v1, %v6676_v5  ;;  %v2209_v5 = vor.u32 1.1754944e-38, %v2208_v39  ;;  %v5548_v35 = vpop.eup %5547 }
 0x729   : > { %v2190_v40 = vsel %vm2189_vm5, %v5542_v0, %v2186_v48  ;;  %v6801_v16 = vmul.f32 %v2150_v15, %v6678_v8  ;;  %vm8135_vm5 = vweird.f32 %v6720_v63  ;;  %v2235_v63 = vsel %vm6813_vm9, %v6710_v54, %v2231_v55 }
 0x72a   : > { %v2195_v31 = vsel %vm6758_vm13, %v2194_v27, %v2190_v40  ;;  %v2201_v52 = vadd.f32 %v5544_v61, %v2200_v50  ;;  %vm2204_vm3 = vmor %vm8135_vm5, %vm2203_vm14  ;;  %vm2207_vm13 = vcmp.eq.f32.partialorder %v2206_v13, 8.507059e+37  ;;  %v2239_v27 = vor.u32 1.1754944e-38, %v2238_v43 }
 0x72b   : > { %v6809_v0 = vmul.f32 %v2195_v31, %v6682_v32  ;;  %v6819_v28 = vpack.i.bf16 %v6801_v16, %v6793_v46  ;;  %v6825_v32 = vmul.f32 %v2225_v51, %v6668_v19  ;;  %v2116_v39 = vadd.f32 1.0, %v5546_v7 }
 0x72c   : > { %v2205_v8 = vsel %vm2204_vm3, %v5544_v61, %v2201_v52  ;;  %vm2237_vm2 = vcmp.eq.f32.partialorder %v2236_v3, 8.507059e+37  ;;  %v2117_v13 = vadd.f32 1.0, %v5548_v35  ;;  %vm8139_vm4 = vcmask 916480  }
 0x72d   : > { %v2210_v36 = vsel %vm2207_vm13, %v2209_v5, %v2205_v8  ;;  %5132 = vrot.lane.b32.xlu2 %v6819_v28, %s5630_s26  ;;  %5127 = vrot.lane.b32.xlu1 %v6819_v28, %s5628_s24  ;;  %v2724_v54 = vpack.c.bf16 %v6825_v32, %v6809_v0  ;;  %v2240_v61 = vsel %vm2237_vm2, %v2239_v27, %v2235_v63  ;;  %5549 = vrcp.f32 %v2116_v39  ;;  %vm8140_vm5 = vmmov %vm8139_vm4 }
 0x72e   : > { %v6836_v19 = vmul.f32 %v2210_v36, %v6684_v23  ;;  %5551 = vrcp.f32 %v2117_v13  ;;  %v6839_v60 = vmul.f32 %v2240_v61, %v6670_v47  ;;  %v2163_v49 = vand.u32 2147483648, %v2116_v39  ;;  %vm8141_vm3 = vmmov %vm8139_vm4 }
 0x72f   : > { %v2161_v47 = vand.u32 2147483647, %v2116_v39  ;;  %v2178_v10 = vand.u32 2147483648, %v2117_v13  ;;  %v2176_v12 = vand.u32 2147483647, %v2117_v13  ;;  %vm2157_vm11 = vweird.f32 %v2116_v39  ;;  %vm8142_vm6 = vmmov %vm8141_vm3 }
 0x730   : > { %v6843_v43 = vpack.i.bf16 %v6836_v19, %v6809_v0  ;;  %v2164_v48 = vor.u32 1.1754944e-38, %v2163_v49  ;;  %vm2172_vm1 = vweird.f32 %v2117_v13  ;;  %v5166_v52 = vpack.i.bf16 %v6839_v60, %v6825_v32 }
 0x731   : > { %vm2162_vm8 = vcmp.eq.f32.partialorder %v2161_v47, 8.507059e+37  ;;  %v2179_v1 = vor.u32 1.1754944e-38, %v2178_v10  ;;  %vm2177_vm15 = vcmp.eq.f32.partialorder %v2176_v12, 8.507059e+37  ;;  %v5201_v21 = vpack.i.bf16 %v6825_v32, %v6809_v0 }
 0x732   : > { %v5216_v8 = vpack.i.bf16 %v6839_v60, %v6836_v19  ;;  %vm8143_vm9 = vcmask 924672  }
 0x733   : > { %v5550_v45 = vpop.eup %5549  ;;  %vm8144_vm13 = vmmov %vm8143_vm9 }
 0x734   : > { %v5552_v62 = vpop.eup %5551  ;;  %v2153_v44 = vmul.f32 %v5550_v45, %v2116_v39  ;;  %vm2158_vm7 = vweird.f32 %v5550_v45  ;;  %vm8145_vm2 = vmmov %vm8143_vm9 }
 0x735   : > { %5147 = vrot.lane.b32.xlu1 %v6843_v43, %s5628_s24  ;;  %v2168_v23 = vmul.f32 %v5552_v62, %v2117_v13  ;;  %vm2173_vm12 = vweird.f32 %v5552_v62  ;;  %vm2159_vm10 = vmor %vm2157_vm11, %vm2158_vm7 }
 0x736   : > { %v2154_v41 = vsub.f32 1.0, %v2153_v44  ;;  %vm2174_vm14 = vmor %vm2172_vm1, %vm2173_vm12  ;;  %vm8147_vm12 = vcmask 1039360   ;;  %vm8150_vm1 = vnez %v8036_v57 }
 0x737   : > { %v2169_v29 = vsub.f32 1.0, %v2168_v23  ;;  %vm8146_vm7 = vmmov %vm8145_vm2 }
 0x738   : > { %v2155_v11 = vmul.f32 %v5550_v45, %v2154_v41  ;;  %vm8148_vm11 = vmmov %vm8147_vm12 }
 0x739   : > { %v2170_v6 = vmul.f32 %v5552_v62, %v2169_v29 }
 0x73a   : > { %v2156_v22 = vadd.f32 %v5550_v45, %v2155_v11 }
 0x73b   : > { %v2171_v20 = vadd.f32 %v5552_v62, %v2170_v6 }
 0x73c   : > { %v2160_v50 = vsel %vm2159_vm10, %v5550_v45, %v2156_v22  ;;  %vm8149_vm10 = vmmov %vm8148_vm11 }
 0x73d   : > { %5157 = vrot.lane.b32.xlu1 %v6843_v43, %s5631_s27  ;;  %v2165_v42 = vsel %vm2162_vm8, %v2164_v48, %v2160_v50  ;;  %v2175_v55 = vsel %vm2174_vm14, %v5552_v62, %v2171_v20  ;;  %vm8151_vm8 = vmmov %vm8149_vm10  ;;  %vm8152_vm14 = vcmask 7168  }
 0x73e   : > { %v2180_v40 = vsel %vm2177_vm15, %v2179_v1, %v2175_v55  ;;  %v6852_v15 = vmul.f32 %v2165_v42, %v6728_v9  ;;  %vm8153_vm15 = vmmov %vm8152_vm14 }
 0x73f   : > { %v6855_v51 = vmul.f32 %v2180_v40, %v6749_v59 }
 0x740   : > { %v2722_v9 = vpack.c.bf16 %v6852_v15, %v6793_v46  ;;  %v5181_v5 = vpack.i.bf16 %v6852_v15, %v6793_v46 }
 0x741   : > { %v5141_v31 = vpack.i.bf16 %v6855_v51, %v6852_v15  ;;  %v5261_v3 = vpack.i.bf16 %v6855_v51, %v6801_v16 }
 0x743   : > { %5142 = vrot.lane.b32.xlu0 %v5141_v31, %s5630_s26  ;;  %5137 = vrot.lane.b32.xlu2 %v5141_v31, %s5628_s24 }
 0x745   : > { %5167 = vrot.lane.b32.xlu1 %v5166_v52, %s5630_s26 }
 0x74b   : > { %5152 = vrot.lane.b32.xlu0 %v6843_v43, %s5630_s26  ;;  %5162 = vrot.lane.b32.xlu2 %v5166_v52, %s5628_s24 }
 0x74d   : > { %5172 = vrot.lane.b32.xlu1 %v6819_v28, %s5631_s27 }
 0x753   : > { %5182 = vrot.lane.b32.xlu0 %v5181_v5, %s5632_s28  ;;  %5177 = vrot.lane.b32.xlu2 %v5141_v31, %s5631_s27 }
 0x755   : > { %5202 = vrot.lane.b32.xlu1 %v5201_v21, %s5629_s25 }
 0x75b   : > { %5197 = vrot.lane.b32.xlu0 %v5201_v21, %s5632_s28  ;;  %5187 = vrot.lane.b32.xlu2 %v5166_v52, %s5631_s27 }
 0x75d   : > { %5207 = vrot.lane.b32.xlu1 %v5261_v3, %s5632_s28 }
 0x763   : > { %5217 = vrot.lane.b32.xlu0 %v5216_v8, %s5632_s28  ;;  %5192 = vrot.lane.b32.xlu2 %v5181_v5, %s5629_s25 }
 0x765   : > { %5212 = vrot.lane.b32.xlu1 %v5181_v5, %s5634_s30 }
 0x76b   : > { %5227 = vrot.lane.b32.xlu0 %v5216_v8, %s5629_s25  ;;  %5222 = vrot.lane.b32.xlu2 %v5201_v21, %s5634_s30 }
 0x76d   : > { %5237 = vrot.lane.b32.xlu1 %v5181_v5, %s5633_s29 }
 0x773   : > { %5232 = vrot.lane.b32.xlu0 %v5261_v3, %s5629_s25  ;;  %5242 = vrot.lane.b32.xlu2 %v5201_v21, %s5633_s29 }
 0x775   : > { %5257 = vrot.lane.b32.xlu1 %v5216_v8, %s5633_s29 }
 0x77b   : > { %5252 = vrot.lane.b32.xlu0 %v5261_v3, %s5634_s30  ;;  %5247 = vrot.lane.b32.xlu2 %v5216_v8, %s5634_s30 }
 0x77d   : > { %5272 = vrot.lane.b32.xlu1 %v5166_v52, %s5627_s23 }
 0x783   : > { %5267 = vrot.lane.b32.xlu0 %v6843_v43, %s5627_s23  ;;  %5262 = vrot.lane.b32.xlu2 %v5261_v3, %s5633_s29 }
 0x787   : > { %v6905_v7 = vpop.permute.xlu2 %5132 }
 0x788   : > { %v7995_v8 = vunpack.i.h.bf16 %v6905_v7 }
 0x78b   : > { %5282 = vrot.lane.b32.xlu0 %v5141_v31, %s5627_s23  ;;  %5277 = vrot.lane.b32.xlu2 %v6819_v28, %s5627_s23 }
 0x79d   : > { %v5138_v63 = vpop.permute.xlu2 %5137 }
 0x79e   : > { %v5140_v35 = vunpack.i.h.bf16 %v5138_v63  ;;  %v5139_v41 = vunpack.i.l.bf16 %v5138_v63  ;;  %v5134_v63 = vunpack.i.l.bf16 %v6905_v7 }
 0x79f   : > { %v5128_v36 = vpop.permute.xlu1 %5127 }
 0x7a0   : > { %v5130_v27 = vunpack.i.h.bf16 %v5128_v36  ;;  %v5129_v61 = vunpack.i.l.bf16 %v5128_v36  ;;  %v2563_v10 = vsel %vm8142_vm6, %v5139_v41, %v5140_v35 }
 0x7a2   : > { %v6907_v39 = vpack.c.bf16 %v5140_v35, %v5130_v27  ;;  %v2562_v47 = vsel %vm8141_vm3, %v5129_v61, %v5130_v27  ;;  %vm8156_vm3 = vcmask 121856  }
 0x7a3   : > { %v2734_v12 = vpack.c.bf16 %v2563_v10, %v2562_v47  ;;  %vm8157_vm6 = vmmov %vm8156_vm3 }
 0x7a5   : > { %v5163_v13 = vpop.permute.xlu2 %5162 }
 0x7a6   : > { %v5165_v62 = vunpack.i.h.bf16 %v5163_v13  ;;  %v5164_v43 = vunpack.i.l.bf16 %v5163_v13 }
 0x7a7   : > { %v5148_v45 = vpop.permute.xlu1 %5147 }
 0x7a8   : > { %v5150_v44 = vunpack.i.h.bf16 %v5148_v45  ;;  %v5149_v23 = vunpack.i.l.bf16 %v5148_v45  ;;  %v2565_v49 = vsel %vm8139_vm4, %v5164_v43, %v5165_v62  ;;  %v2514_v45 = vsel %vm8146_vm7, %v5134_v63, %v7995_v8  ;;  %vm8154_vm4 = vmmov %vm8152_vm14 }
 0x7aa   : > { %v6910_v29 = vpack.c.bf16 %v5165_v62, %v5150_v44  ;;  %v2564_v28 = vsel %vm8140_vm5, %v5149_v23, %v5150_v44  ;;  %vm8155_vm5 = vmmov %vm8154_vm4 }
 0x7ab   : > { %v2736_v11 = vpack.c.bf16 %v2565_v49, %v2564_v28 }
 0x7ad   : > { %2813 = vmatpush.bf16.msra.mxu3 %v2736_v11  ;;  %v6917_v22 = vpop.permute.xlu2 %5177 }
 0x7ae   : > { %v7991_v10 = vunpack.i.h.bf16 %v6917_v22 }
 0x7af   : > { %v6915_v6 = vpop.permute.xlu1 %5157 }
 0x7b0   : > { %v7994_v13 = vunpack.i.h.bf16 %v6915_v6  ;;  %v5159_v61 = vunpack.i.l.bf16 %v6915_v6 }
 0x7b1   : > { %2814 = vmatpush.bf16.msra.mxu3 %v2734_v12  ;;  %v5179_v12 = vunpack.i.l.bf16 %v6917_v22 }
 0x7b2   : > { %v2468_v49 = vsel %vm8147_vm12, %v5159_v61, %v7994_v13  ;;  %vm8162_vm12 = vmmov %vm8156_vm3 }
 0x7b5   : > { %v6919_v48 = vpop.permute.xlu0 %5142  ;;  %v6925_v42 = vpop.permute.xlu2 %5187 }
 0x7b6   : > { %v7996_v55 = vunpack.i.h.bf16 %v6919_v48  ;;  %v5144_v31 = vunpack.i.l.bf16 %v6919_v48  ;;  %v7993_v62 = vunpack.i.h.bf16 %v6925_v42  ;;  %v5189_v43 = vunpack.i.l.bf16 %v6925_v42 }
 0x7b7   : > { %v6921_v20 = vpop.permute.xlu1 %5167 }
 0x7b8   : > { %v5170_v50 = vunpack.i.h.bf16 %v6921_v20  ;;  %v5169_v1 = vunpack.i.l.bf16 %v6921_v20  ;;  %v2515_v27 = vsel %vm8145_vm2, %v5144_v31, %v7996_v55  ;;  %vm8160_vm2 = vmmov %vm8154_vm4 }
 0x7b9   : > { %v4719_v44 = vpack.c.bf16 %v2515_v27, %v2514_v45  ;;  %vm8161_vm7 = vmmov %vm8160_vm2 }
 0x7ba   : > { %v2517_v5 = vsel %vm8143_vm9, %v5169_v1, %v5170_v50  ;;  %v2469_v1 = vsel %vm8148_vm11, %v5189_v43, %v7993_v62  ;;  %vm8158_vm9 = vmmov %vm8154_vm4 }
 0x7bb   : > { %v4722_v31 = vpack.c.bf16 %v2469_v1, %v2468_v49  ;;  %vm8163_vm11 = vmmov %vm8156_vm3 }
 0x7bd   : > { %v6928_v40 = vpop.permute.xlu0 %5152  ;;  %v6955_v23 = vpop.permute.xlu2 %5192 }
 0x7be   : > { %v5155_v52 = vunpack.i.h.bf16 %v6928_v40  ;;  %v5154_v3 = vunpack.i.l.bf16 %v6928_v40  ;;  %v4469_v40 = vld [vmem:[%s7942_s5 + $0x48] sm:$0xf] }
 0x7bf   : > { %v6936_v21 = vpop.permute.xlu1 %5172 }
 0x7c0   : > { %v2516_v36 = vsel %vm8144_vm13, %v5154_v3, %v5155_v52  ;;  %v7992_v28 = vunpack.i.h.bf16 %v6936_v21  ;;  %v5174_v11 = vunpack.i.l.bf16 %v6936_v21  ;;  %vm8159_vm13 = vmmov %vm8154_vm4 }
 0x7c1   : > { %v4716_v35 = vpack.c.bf16 %v2517_v5, %v2516_v36  ;;  %v2467_v5 = vsel %vm8151_vm8, %v5179_v12, %v7991_v10  ;;  %vm8165_vm8 = vmmov %vm8156_vm3 }
 0x7c2   : > { %v2466_v3 = vsel %vm8149_vm10, %v5174_v11, %v7992_v28  ;;  %vm8164_vm10 = vnez %v8058_v56 }
 0x7c3   : > { %4717 = vmatpush.bf16.msk.msra.mxu3 %vm6143_vm0, %v4716_v35  ;;  %v4725_v63 = vpack.c.bf16 %v2467_v5, %v2466_v3  ;;  %v4566_v5 = vld [vmem:[%s7942_s5 + $0x34] sm:$0xf] }
 0x7c5   : > { %v5183_v41 = vpop.permute.xlu0 %5182  ;;  %v6979_v43 = vpop.permute.xlu2 %5222 }
 0x7c6   : > { %v5185_v35 = vunpack.i.h.bf16 %v5183_v41  ;;  %v5184_v27 = vunpack.i.l.bf16 %v5183_v41 }
 0x7c7   : > { %v6962_v47 = vpop.permute.xlu1 %5202  ;;  %4720 = vmatpush.bf16.msk.msra.mxu3 %vm6143_vm0, %v4719_v44 }
 0x7c8   : > { %v2422_v12 = vsel %vm8155_vm5, 0.0, %v5184_v27  ;;  %v5205_v3 = vunpack.i.h.bf16 %v6962_v47  ;;  %v5204_v41 = vunpack.i.l.bf16 %v6962_v47  ;;  %v5194_v47 = vunpack.i.l.bf16 %v6955_v23 }
 0x7c9   : > { %vm8169_vm5 = vcmask 138240  }
 0x7ca   : > { %v2377_v28 = vsel %vm8156_vm3, 0.0, %v5205_v3  ;;  %v2376_v62 = vsel %vm8157_vm6, 0.0, %v5204_v41  ;;  %v2374_v46 = vsel %vm8163_vm11, 0.0, %v5194_v47 }
 0x7cb   : > { %4723 = vmatpush.bf16.msk.msra.mxu3 %vm8150_vm1, %v4722_v31  ;;  %v2423_v31 = vsel %vm8154_vm4, 0.0, %v5185_v35  ;;  %vm8168_vm4 = vnez %v8071_v58 }
 0x7cc   : > { %v4691_v59 = vpack.c.bf16 %v2423_v31, %v2422_v12 }
 0x7cd   : > { %v5198_v36 = vpop.permute.xlu0 %5197  ;;  %v7017_v31 = vpop.permute.xlu2 %5242 }
 0x7ce   : > { %v5200_v61 = vunpack.i.h.bf16 %v5198_v36  ;;  %v5199_v45 = vunpack.i.l.bf16 %v5198_v36 }
 0x7cf   : > { %v5208_v44 = vpop.permute.xlu1 %5207  ;;  %4726 = vmatpush.bf16.msk.msra.mxu3 %vm8150_vm1, %v4725_v63  ;;  %v4459_v63 = vld [vmem:[%s7942_s5 + $0x3c] sm:$0xf0] }
 0x7d0   : > { %v2425_v49 = vsel %vm8152_vm14, 0.0, %v5200_v61  ;;  %v2424_v11 = vsel %vm8153_vm15, 0.0, %v5199_v45  ;;  %v5210_v36 = vunpack.i.h.bf16 %v5208_v44  ;;  %v7002_v10 = vor.u32 %v4566_v5, %v4459_v63  ;;  %vm8166_vm14 = vmmov %vm8156_vm3 }
 0x7d1   : > { %v4688_v1 = vpack.c.bf16 %v2425_v49, %v2424_v11  ;;  %v5209_v49 = vunpack.i.l.bf16 %v5208_v44  ;;  %v5195_v11 = vunpack.i.h.bf16 %v6955_v23  ;;  %vm8167_vm15 = vnez %v8042_v25  ;;  %vm8170_vm3 = vmmov %vm8169_vm5 }
 0x7d3   : > { %4689 = vmatpush.bf16.msk.msra.mxu1 %vm6143_vm0, %v4688_v1  ;;  %2819 = vmatpush.bf16.msra.mxu3 %v2724_v54  ;;  %v2411_v54 = vsel %vm8160_vm2, %v5185_v35, %v5210_v36  ;;  %v2410_v44 = vsel %vm8161_vm7, %v5184_v27, %v5209_v49  ;;  %vm8173_vm2 = vmmov %vm8170_vm3  ;;  %vm8174_vm7 = vcmask 130048  }
 0x7d4   : > { %v4737_v15 = vpack.c.bf16 %v2411_v54, %v2410_v44  ;;  %v5245_v54 = vunpack.i.h.bf16 %v7017_v31  ;;  %v5244_v44 = vunpack.i.l.bf16 %v7017_v31  ;;  %vm8176_vm11 = vmmov %vm8173_vm2 }
 0x7d5   : > { %v5218_v53 = vpop.permute.xlu0 %5217 }
 0x7d6   : > { %v5220_v13 = vunpack.i.h.bf16 %v5218_v53  ;;  %v5219_v1 = vunpack.i.l.bf16 %v5218_v53  ;;  %v4694_v53 = vpack.c.bf16 %v2377_v28, %v2376_v62  ;;  %v5224_v62 = vunpack.i.l.bf16 %v6979_v43 }
 0x7d7   : > { %v7006_v8 = vpop.permute.xlu1 %5212  ;;  %4692 = vmatpush.bf16.msk.msra.mxu1 %vm6143_vm0, %v4691_v59  ;;  %2820 = vmatpush.bf16.msra.mxu3 %v2722_v9  ;;  %v2375_v59 = vsel %vm8162_vm12, 0.0, %v5195_v11  ;;  %vm8175_vm12 = vmmov %vm8174_vm7 }
 0x7d8   : > { %v2412_v0 = vsel %vm8158_vm9, %v5199_v45, %v5219_v1  ;;  %v2413_v32 = vsel %vm8159_vm13, %v5200_v61, %v5220_v13  ;;  %v4697_v9 = vpack.c.bf16 %v2375_v59, %v2374_v46  ;;  %v5225_v13 = vunpack.i.h.bf16 %v6979_v43  ;;  %v7079_v59 = vld [vmem:[%s7946_s9 + $0x18] sm:$0xff]  ;;  %vm8171_vm9 = vmmov %vm8157_vm6 }
 0x7d9   : > { %v4734_v12 = vpack.c.bf16 %v2413_v32, %v2412_v0  ;;  %v5215_v45 = vunpack.i.h.bf16 %v7006_v8  ;;  %v5214_v5 = vunpack.i.l.bf16 %v7006_v8  ;;  %v5642_v43 = vmov 6   ;;  %v7049_v0 = vld [vmem:[%s7946_s9 + $0x10] sm:$0xff]  ;;  %v7061_v32 = vld [vmem:[%s7946_s9] sm:$0xff]  ;;  %vm8172_vm13 = vmmov %vm8170_vm3 }
 0x7da   : > { %2821 = vmatmul.bf16.vlgmr.msra.gmra.mxu3 %v7002_v10  ;;  %5286 = vset.pattern.permute.xlu1 %v5642_v43  ;;  %v4702_v49 = vpack.c.bf16 %v5225_v13, %v5224_v62 }
 0x7db   : > { %4735 = vmatpush.bf16.msk.msrb.mxu0 %vm8164_vm10, %v4734_v12  ;;  %4695 = vmatpush.bf16.msk.msra.mxu1 %vm8150_vm1, %v4694_v53  ;;  %v5248_v53 = vpop.permute.xlu2 %5247 }
 0x7dc   : > { %4863 = vmatpush.bf16.msk.msrb.mxu3 %vm8164_vm10, %v4734_v12  ;;  %5288 = vset.pattern.permute.xlu0 %v5642_v43  ;;  %v4707_v12 = vpack.c.bf16 %v5215_v45, %v5214_v5 }
 0x7dd   : > { %v5228_v28 = vpop.permute.xlu0 %5227  ;;  %2751 = vperm.xlu1 %5286, %v7049_v0   ;;  %2743 = vperm.xlu0 %5288, %v7061_v32  }
 0x7de   : > { %v5230_v35 = vunpack.i.h.bf16 %v5228_v28  ;;  %v5229_v27 = vunpack.i.l.bf16 %v5228_v28  ;;  %5287 = vset.pattern.permute.xlu2 %v5642_v43  ;;  %v5250_v28 = vunpack.i.h.bf16 %v5248_v53  ;;  %v2289_v43 = vsel %vm8169_vm5, 0.0, %v5245_v54  ;;  %vm8179_vm5 = vmmov %vm8174_vm7 }
 0x7df   : > { %v7034_v61 = vpop.permute.xlu1 %5237  ;;  %4698 = vmatpush.bf16.msk.msra.mxu1 %vm8150_vm1, %v4697_v9  ;;  %4738 = vmatpush.bf16.msk.msrb.mxu0 %vm8164_vm10, %v4737_v15 }
 0x7e0   : > { %v2364_v63 = vsel %vm8165_vm8, %v5204_v41, %v5229_v27  ;;  %v2365_v36 = vsel %vm8166_vm14, %v5205_v3, %v5230_v35  ;;  %4864 = vmatpush.bf16.msk.msrb.mxu3 %vm8164_vm10, %v4737_v15  ;;  %v4569_v41 = vld [vmem:[%s7942_s5 + $0x4c] sm:$0xf]  ;;  %v4471_v3 = vld [vmem:[%s7942_s5 + $0x54] sm:$0xf0]  ;;  %2755 = vperm.xlu2 %5287, %v7079_v59   ;;  %v5240_v46 = vunpack.i.h.bf16 %v7034_v61  ;;  %v5239_v15 = vunpack.i.l.bf16 %v7034_v61  ;;  %vm8177_vm8 = vmmov %vm8173_vm2 }
 0x7e1   : > { %v4740_v1 = vpack.c.bf16 %v2365_v36, %v2364_v63  ;;  %v7084_v9 = vor.u32 %v4569_v41, %v4471_v3  ;;  %v5249_v35 = vunpack.i.l.bf16 %v5248_v53  ;;  %vm8178_vm14 = vmmov %vm8174_vm7 }
 0x7e2   : > { %v2287_v3 = vsel %vm8172_vm13, 0.0, %v5240_v46  ;;  %v2286_v53 = vsel %vm8173_vm2, 0.0, %v5239_v15  ;;  %vm8183_vm13 = vmmov %vm8173_vm2 }
 0x7e3   : > { %4703 = vmatpush.bf16.msk.msra.mxu1 %vm8167_vm15, %v4702_v49  ;;  %4741 = vmatpush.bf16.msk.msrb.mxu0 %vm8168_vm4, %v4740_v1  ;;  %v2288_v49 = vsel %vm8170_vm3, 0.0, %v5244_v44  ;;  %v2324_v55 = vsel %vm8174_vm7, %v5224_v62, %v5249_v35  ;;  %v4713_v23 = vpack.c.bf16 %v2287_v3, %v2286_v53  ;;  %v4457_v62 = vld [vmem:[%s7942_s5 + $0x30] sm:$0xf]  ;;  %vm8180_vm3 = vnez %v8063_v30 }
 0x7e4   : > { %4865 = vmatpush.bf16.msk.msrb.mxu3 %vm8168_vm4, %v4740_v1  ;;  %vm8184_vm7 = vcmask 908288  }
 0x7e5   : > { %v5233_v31 = vpop.permute.xlu0 %5232 }
 0x7e6   : > { %v5235_v27 = vunpack.i.h.bf16 %v5233_v31  ;;  %v5234_v63 = vunpack.i.l.bf16 %v5233_v31  ;;  %v7101_v31 = vld [vmem:[%s7946_s9 + $0x8] sm:$0xff] }
 0x7e7   : > { %v5258_v36 = vpop.permute.xlu1 %5257  ;;  %4708 = vmatpush.bf16.msk.msra.mxu1 %vm8167_vm15, %v4707_v12  ;;  %2747 = vperm.xlu1 %5286, %v7101_v31   ;;  %v4710_v12 = vpack.c.bf16 %v2289_v43, %v2288_v49  ;;  %v5263_v49 = vpop.permute.xlu2 %5262 }
 0x7e8   : > { %v2362_v1 = vsel %vm8157_vm6, %v5194_v47, %v5234_v63  ;;  %v2363_v61 = vsel %vm8171_vm9, %v5195_v11, %v5235_v27  ;;  %v2325_v47 = vsel %vm8175_vm12, %v5225_v13, %v5250_v28  ;;  %v5260_v11 = vunpack.i.h.bf16 %v5258_v36  ;;  %v4567_v13 = vld [vmem:[%s7942_s5 + $0x38] sm:$0xf0]  ;;  %vm8185_vm12 = vmmov %vm8184_vm7 }
 0x7e9   : > { %v4743_v41 = vpack.c.bf16 %v2363_v61, %v2362_v1  ;;  %v5259_v27 = vunpack.i.l.bf16 %v5258_v36  ;;  %v2713_v35 = vpack.c.bf16 %v2325_v47, %v2324_v55  ;;  %v4458_v1 = vor.u32 %v4567_v13, %v4457_v62 }
 0x7ea   : > { %2826 = vmatmul.bf16.gmra.mxu3 %v7084_v9  ;;  %v2277_v36 = vsel %vm8176_vm11, %v5245_v54, %v5260_v11  ;;  %v5264_v62 = vunpack.i.l.bf16 %v5263_v49  ;;  %vm8181_vm6 = vcmask 924672  }
 0x7eb   : > { %4744 = vmatpush.bf16.msk.msrb.mxu0 %vm8168_vm4, %v4743_v41  ;;  %4866 = vmatpush.bf16.msk.msrb.mxu3 %vm8168_vm4, %v4743_v41  ;;  %v2276_v41 = vsel %vm8177_vm8, %v5244_v44, %v5259_v27  ;;  %vm8182_vm9 = vmmov %vm8181_vm6 }
 0x7ec   : > { %4711 = vmatpush.bf16.msk.msra.mxu1 %vm6143_vm0, %v4710_v12  ;;  %v4746_v54 = vpack.c.bf16 %v2277_v36, %v2276_v41  ;;  %v2528_v8 = vsel %vm8182_vm9, %v5155_v52, 0.0  ;;  %v8186_v52 = vunpack.i.h.bf16 %v6919_v48  ;;  %vm8187_vm11 = vmmov %vm8181_vm6  ;;  %v8192_v48 = vunpack.i.h.bf16 %v6915_v6 }
 0x7ed   : > { %v5253_v28 = vpop.permute.xlu0 %5252  ;;  %vm8188_vm8 = vmmov %vm8184_vm7 }
 0x7ee   : > { %v5255_v63 = vunpack.i.h.bf16 %v5253_v28  ;;  %v5254_v43 = vunpack.i.l.bf16 %v5253_v28 }
 0x7ef   : > { %2855 = vmatpush.bf16.msrb.mxu0 %v2713_v35  ;;  %4867 = vmatpush.bf16.msrb.mxu3 %v2713_v35  ;;  %v5273_v61 = vpop.permute.xlu1 %5272  ;;  %v5278_v35 = vpop.permute.xlu2 %5277 }
 0x7f0   : > { %4714 = vmatpush.bf16.msk.msra.mxu1 %vm6143_vm0, %v4713_v23  ;;  %v2322_v3 = vsel %vm8178_vm14, %v5214_v5, %v5254_v43  ;;  %v2323_v55 = vsel %vm8179_vm5, %v5215_v45, %v5255_v63  ;;  %v5275_v12 = vunpack.i.h.bf16 %v5273_v61  ;;  %v5274_v47 = vunpack.i.l.bf16 %v5273_v61  ;;  %vm8189_vm14 = vmmov %vm8184_vm7 }
 0x7f1   : > { %v2711_v53 = vpack.c.bf16 %v2323_v55, %v2322_v3  ;;  %v5265_v23 = vunpack.i.h.bf16 %v5263_v49  ;;  %v2529_v5 = vsel %vm8181_vm6, %v5170_v50, 0.0  ;;  %v8190_v61 = vunpack.i.h.bf16 %v6905_v7  ;;  %vm8191_vm5 = vmmov %vm8181_vm6 }
 0x7f2   : > { %v2617_v20 = vsel %vm8184_vm7, %v5275_v12, 0.0  ;;  %v2605_v50 = vsel %vm8185_vm12, %v5274_v47, %v5275_v12  ;;  %v4758_v13 = vpack.c.bf16 %v2529_v5, %v2528_v8  ;;  %vm8193_vm6 = vcmask 1039360  }
 0x7f3   : > { %2856 = vmatpush.bf16.msrb.mxu0 %v2711_v53  ;;  %4868 = vmatpush.bf16.msrb.mxu3 %v2711_v53  ;;  %v2275_v45 = vsel %vm8183_vm13, %v5240_v46, %v5265_v23  ;;  %v2527_v46 = vsel %vm8187_vm11, %v8186_v52, 0.0  ;;  %v2526_v36 = vsel %vm8191_vm5, %v8190_v61, 0.0  ;;  %v2480_v55 = vsel %vm8193_vm6, %v8192_v48, 0.0  ;;  %vm8195_vm9 = vmmov %vm8193_vm6  ;;  %v4477_v52 = vld [vmem:[%s7942_s5 + $0x50] sm:$0xf] }
 0x7f4   : > { %4753 = vmatpush.bf16.msk.msrb.mxu1 %vm8180_vm3, %v6910_v29  ;;  %v2274_v29 = vsel %vm8173_vm2, %v5239_v15, %v5264_v62  ;;  %v4761_v3 = vpack.c.bf16 %v2527_v46, %v2526_v36  ;;  %v5280_v53 = vunpack.i.h.bf16 %v5278_v35  ;;  %v5279_v12 = vunpack.i.l.bf16 %v5278_v35  ;;  %vm8197_vm13 = vmmov %vm8193_vm6  ;;  %v4571_v46 = vld [vmem:[%s7942_s5 + $0x58] sm:$0xf0] }
 0x7f5   : > { %2802 = vmatmul.bf16.vlgmr.msra.gmra.mxu1 %v4458_v1  ;;  %v5268_v44 = vpop.permute.xlu0 %5267  ;;  %v4749_v63 = vpack.c.bf16 %v2275_v45, %v2274_v29  ;;  %v8194_v47 = vunpack.i.h.bf16 %v6925_v42  ;;  %v8196_v5 = vunpack.i.h.bf16 %v6936_v21  ;;  %v4465_v45 = vld [vmem:[%s7942_s5 + $0x38] sm:$0xf]  ;;  %v4568_v29 = vld [vmem:[%s7942_s5 + $0x40] sm:$0xf0]  ;;  %vm8198_vm2 = vmmov %vm8184_vm7 }
 0x7f6   : > { %v5270_v11 = vunpack.i.h.bf16 %v5268_v44  ;;  %v5269_v27 = vunpack.i.l.bf16 %v5268_v44  ;;  %v2614_v42 = vsel %vm8198_vm2, %v5280_v53, 0.0  ;;  %vm8199_vm7 = vmmov %vm8198_vm2 }
 0x7f7   : > { %4747 = vmatpush.bf16.msk.msrb.mxu0 %vm8164_vm10, %v4746_v54  ;;  %4869 = vmatpush.bf16.msk.msrb.mxu3 %vm8164_vm10, %v4746_v54  ;;  %v2481_v23 = vsel %vm8195_vm9, %v8194_v47, 0.0  ;;  %v2478_v8 = vsel %vm8197_vm13, %v8196_v5, 0.0  ;;  %v2602_v44 = vsel %vm8199_vm7, %v5279_v12, %v5280_v53  ;;  %vm8200_vm12 = vmmov %vm8198_vm2 }
 0x7f8   : > { %4756 = vmatpush.bf16.msk.msrb.mxu1 %vm8180_vm3, %v6907_v39  ;;  %v4570_v39 = vld [vmem:[%s7942_s5 + $0x50] sm:$0xf0]  ;;  %v2616_v15 = vsel %vm8188_vm8, %v5270_v11, 0.0  ;;  %v2604_v28 = vsel %vm8189_vm14, %v5269_v27, %v5270_v11  ;;  %v4764_v54 = vpack.c.bf16 %v2481_v23, %v2480_v55  ;;  %vm8201_vm11 = vmmov %vm8198_vm2  ;;  %vm8204_vm14 = vcmask 261120  }
 0x7f9   : > { %v4770_v43 = vpack.c.bf16 %v2617_v20, %v2616_v15  ;;  %v4728_v49 = vpack.c.bf16 %v2605_v50, %v2604_v28  ;;  %v4470_v41 = vor.u32 %v4570_v39, %v4469_v40  ;;  %v8202_v20 = vunpack.i.h.bf16 %v6917_v22  ;;  %vm8203_vm8 = vmmov %vm8193_vm6 }
 0x7fa   : > { %v8205_v39 = vpack.c.bf16 %v6839_v60, %v6836_v19  ;;  %v8206_v22 = vpack.c.bf16 %v6855_v51, %v6801_v16  ;;  %vm8207_vm5 = vmmov %vm8204_vm14  ;;  %v4478_v15 = vor.u32 %v4571_v46, %v4477_v52 }
 0x7fb   : > { %4750 = vmatpush.bf16.msk.msrb.mxu0 %vm8164_vm10, %v4749_v63  ;;  %4870 = vmatpush.bf16.msk.msrb.mxu3 %vm8164_vm10, %v4749_v63  ;;  %v2479_v50 = vsel %vm8203_vm8, %v8202_v20, 0.0  ;;  %vm8208_vm6 = vmmov %vm8207_vm5 }
 0x7fc   : > { %4759 = vmatpush.bf16.msk.msrb.mxu1 %vm8164_vm10, %v4758_v13  ;;  %4729 = vmatpush.bf16.msk.msrb.mxu2 %vm8150_vm1, %v4728_v49  ;;  %v4466_v13 = vor.u32 %v4568_v29, %v4465_v45  ;;  %v4767_v40 = vpack.c.bf16 %v2479_v50, %v2478_v8  ;;  %vm8209_vm9 = vmmov %vm8207_vm5 }
 0x7fd   : > { %v5283_v7 = vpop.permute.xlu0 %5282  ;;  %vm8210_vm13 = vmmov %vm8207_vm5 }
 0x7fe   : > { %v5285_v62 = vunpack.i.h.bf16 %v5283_v7  ;;  %v5284_v6 = vunpack.i.l.bf16 %v5283_v7  ;;  %2864 = vmatmul.bf16.vlgmr.msrb.gmra.mxu3 %v4470_v41  ;;  %2859 = vmatmul.bf16.vlgmr.msrb.gmra.mxu0 %v4458_v1  ;;  %vm8211_vm2 = vmmov %vm8207_vm5 }
 0x7ff   : > { %4771 = vmatpush.bf16.msk.msra.mxu3 %vm8168_vm4, %v4770_v43  ;;  %vm8212_vm7 = vmmov %vm8211_vm2 }
 0x800   : > { %4762 = vmatpush.bf16.msk.msrb.mxu1 %vm8164_vm10, %v4761_v3  ;;  %v2615_v11 = vsel %vm8200_vm12, %v5285_v62, 0.0  ;;  %v2603_v1 = vsel %vm8201_vm11, %v5284_v6, %v5285_v62  ;;  %vm8213_vm12 = vmmov %vm8211_vm2 }
 0x801   : > { %v4731_v27 = vpack.c.bf16 %v2603_v1, %v2602_v44  ;;  %v4773_v21 = vpack.c.bf16 %v2615_v11, %v2614_v42  ;;  %v5643_v11 = vmov 7   ;;  %vm8214_vm11 = vmmov %vm8211_vm2 }
 0x802   : > { %5291 = vset.pattern.permute.xlu0 %v5643_v11  ;;  %5289 = vset.pattern.permute.xlu2 %v5643_v11  ;;  %vm8216_vm8 = vmmov %vm8211_vm2 }
 0x803   : > { %4732 = vmatpush.bf16.msk.msrb.mxu2 %vm8150_vm1, %v4731_v27  ;;  %4774 = vmatpush.bf16.msk.msra.mxu3 %vm8168_vm4, %v4773_v21 }
 0x804   : > { %4765 = vmatpush.bf16.msk.msrb.mxu1 %vm8168_vm4, %v4764_v54  ;;  %2925 = vperm.xlu0 %5291, %v7101_v31  }
 0x805   : > { %2807 = vmatmul.bf16.gmra.mxu1 %v4470_v41  ;;  %2929 = vperm.xlu2 %5289, %v7049_v0  }
 0x806   : > { %4479 = vmatmul.msk.bf16.vlgmr.msrb.gmra.mxu2 %vm8204_vm14, %v4466_v13  ;;  %5290 = vset.pattern.permute.xlu1 %v5643_v11  ;;  %vm8217_vm14 = vmmov %vm8211_vm2 }
 0x807   : > { %2933 = vperm.xlu1 %5290, %v7079_v59  }
 0x808   : > { %4768 = vmatpush.bf16.msk.msrb.mxu1 %vm8168_vm4, %v4767_v40 }
 0x80c   : > { %2876 = vmatpush.bf16.msrb.mxu1 %v8205_v39 }
 0x80d   : > { %2921 = vperm.xlu2 %5289, %v7061_v32  }
 0x80e   : > { %4481 = vmatmul.msk.bf16.vlgmr.msra.gmra.mxu3 %vm8207_vm5, %v4466_v13  ;;  %vm8218_vm5 = vmmov %vm8211_vm2 }
 0x810   : > { %2877 = vmatpush.bf16.msrb.mxu1 %v8206_v22 }
 0x815   : > { %2878 = vmatmul.bf16.vlgmr.msrb.gmra.mxu1 %v7002_v10 }
 0x816   : > { %4480 = vmatmul.msk.bf16.gmra.mxu2 %vm8208_vm6, %v4478_v15  ;;  %vm8219_vm6 = vmmov %vm8211_vm2 }
 0x81e   : > { %4482 = vmatmul.msk.bf16.gmra.mxu3 %vm8209_vm9, %v4478_v15  ;;  %vm8220_vm9 = vcmask 1043456  }
 0x825   : > { %2883 = vmatmul.bf16.gmra.mxu1 %v7084_v9 }
 0x83a   : > { %v2756_v12 = vpop.permute.xlu2 %2755 }
 0x84f   : > { %v2752_v41 = vpop.permute.xlu1 %2751  ;;  %v2744_v62 = vpop.permute.xlu0 %2743 }
 0x859   : > { %v2748_v53 = vpop.permute.xlu1 %2747 }
 0x85d   : > { %v2822_v16 = vpop.f32.mrf.mxu3 }
 0x865   : > { %v2824_v19 = vpop.f32.mrf.mxu3 }
 0x86d   : > { %v2827_v60 = vpop.f32.mrf.mxu3 }
 0x872   : > { %v2803_v51 = vpop.f32.mrf.mxu1 }
 0x873   : > { %v2804_v5 = vadd.f32 %v2803_v51, %v2744_v62 }
 0x875   : > { %v2829_v28 = vpop.f32.mrf.mxu3  ;;  %v2823_v21 = vadd.f32 %v2822_v16, %v2804_v5  ;;  %v2995_v5 = vld [vmem:[%s433_s13 + $0x18] sm:$0xff] }
 0x87a   : > { %v2805_v35 = vpop.f32.mrf.mxu1 }
 0x87b   : > { %v2860_v55 = vpop.f32.mrf.mxu0  ;;  %v2806_v6 = vadd.f32 %v2805_v35, %v2748_v53 }
 0x87c   : > { %v2861_v15 = vadd.f32 %v2860_v55, %v2744_v62 }
 0x87d   : > { %v2825_v45 = vadd.f32 %v2824_v19, %v2806_v6 }
 0x881   : > { %v2865_v43 = vpop.f32.mrf.mxu3 }
 0x882   : > { %v2808_v63 = vpop.f32.mrf.mxu1  ;;  %v2866_v40 = vadd.f32 %v2865_v43, %v2752_v41 }
 0x883   : > { %v2809_v47 = vadd.f32 %v2808_v63, %v2752_v41  ;;  %v2862_v29 = vpop.f32.mrf.mxu0  ;;  %v2990_v41 = vld [vmem:[%s428_s12] sm:$0xff] }
 0x884   : > { %v2863_v22 = vadd.f32 %v2862_v29, %v2748_v53  ;;  %v2993_v29 = vld [vmem:[%s433_s13 + $0x8] sm:$0xff] }
 0x885   : > { %v2828_v8 = vadd.f32 %v2827_v60, %v2809_v47 }
 0x889   : > { %v2841_v61 = vpop.f32.mrf.mxu2  ;;  %v2867_v36 = vpop.f32.mrf.mxu3 }
 0x88a   : > { %v2810_v49 = vpop.f32.mrf.mxu1  ;;  %v2842_v39 = vadd.f32 %v2841_v61, %v2823_v21  ;;  %v4552_v61 = vld [vmem:[%s7944_s7] sm:$0xff] }
 0x88b   : > { %v2811_v54 = vadd.f32 %v2810_v49, %v2756_v12 }
 0x88c   : > { %v7239_v51 = vadd.f32 %v2842_v39, %v5868_v33  ;;  %v5472_v39 = vld [vmem:[%s7947_s10] ss:$0 sm:$0xff] }
 0x88d   : > { %v2830_v44 = vadd.f32 %v2829_v28, %v2811_v54  ;;  %v2868_v28 = vadd.f32 %v2867_v36, %v2756_v12  ;;  %v4558_v36 = vld [vmem:[%s7944_s7 + $0x30] sm:$0xff] }
 0x88e   : > { %v2994_v54 = vld [vmem:[%s433_s13 + $0x10] sm:$0xff] }
 0x891   : > { %v2843_v10 = vpop.f32.mrf.mxu2  ;;  %v2898_v48 = vpop.f32.mrf.mxu3 }
 0x892   : > { %v2879_v3 = vpop.f32.mrf.mxu1  ;;  %v2844_v20 = vadd.f32 %v2843_v10, %v2825_v45  ;;  %v2997_v45 = vpack.c.bf16 %v2995_v5, %v2994_v54 }
 0x894   : > { %v7234_v16 = vadd.f32 %v2844_v20, %v5852_v17  ;;  %v4559_v17 = vld [vmem:[%s7944_s7 + $0x38] sm:$0xff]  ;;  %3067 = vmatpush.bf16.msrb.mxu3 %v2997_v45 }
 0x895   : > { %3022 = vmatpush.bf16.msra.mxu1 %v4559_v17 }
 0x896   : > { %v2916_v49 = vpack.c.bf16 %v7234_v16, %v7239_v51 }
 0x899   : > { %v2846_v9 = vpop.f32.mrf.mxu2  ;;  %v2900_v23 = vpop.f32.mrf.mxu3  ;;  %3023 = vmatpush.bf16.msra.mxu1 %v4558_v36 }
 0x89a   : > { %v2881_v7 = vpop.f32.mrf.mxu1  ;;  %v2847_v42 = vadd.f32 %v2846_v9, %v2828_v8  ;;  %v2992_v8 = vld [vmem:[%s433_s13] sm:$0xff] }
 0x89b   : > { %v2882_v35 = vadd.f32 %v2881_v7, %v2863_v22  ;;  %v2991_v7 = vpack.c.bf16 %v2990_v41, %v2990_v41 }
 0x89c   : > { %v7227_v52 = vadd.f32 %v2847_v42, %v5858_v24  ;;  %v5644_v42 = vmov 9  }
 0x89d   : > { %v2901_v10 = vadd.f32 %v2900_v23, %v2882_v35  ;;  %4503 = vmatmul.msk.bf16.vlgmr.msra.gmra.mxu1 %vm8211_vm2, %v2991_v7  ;;  %5292 = vset.pattern.permute.xlu1 %v5644_v42  ;;  %vm8221_vm2 = vmmov %vm8220_vm9 }
 0x89e   : > { %5293 = vset.pattern.permute.xlu2 %v5644_v42  ;;  %3030 = vperm.xlu1 %5292, %v7061_v32  }
 0x89f   : > { %v7266_v9 = vadd.f32 %v2901_v10, %v5854_v18  ;;  %v4553_v18 = vld [vmem:[%s7944_s7 + $0x8] sm:$0xff]  ;;  %3034 = vperm.xlu2 %5293, %v7101_v31  }
 0x8a1   : > { %v2848_v27 = vpop.f32.mrf.mxu2  ;;  %v2903_v13 = vpop.f32.mrf.mxu3 }
 0x8a2   : > { %v2884_v1 = vpop.f32.mrf.mxu1  ;;  %v2849_v50 = vadd.f32 %v2848_v27, %v2830_v44  ;;  %v2996_v44 = vpack.c.bf16 %v2993_v29, %v2992_v8  ;;  %v2930_v27 = vpop.permute.xlu2 %2929 }
 0x8a3   : > { %v2885_v19 = vadd.f32 %v2884_v1, %v2866_v40  ;;  %v4556_v1 = vld [vmem:[%s7944_s7 + $0x20] sm:$0xff] }
 0x8a4   : > { %v7230_v46 = vadd.f32 %v2849_v50, %v5872_v37  ;;  %v2880_v37 = vadd.f32 %v2879_v3, %v2861_v15  ;;  %3068 = vmatpush.bf16.msrb.mxu3 %v2996_v44  ;;  %v2934_v50 = vpop.permute.xlu1 %2933 }
 0x8a5   : > { %v2904_v63 = vadd.f32 %v2903_v13, %v2885_v19  ;;  %v2926_v13 = vpop.permute.xlu0 %2925 }
 0x8a6   : > { %v2918_v60 = vpack.c.bf16 %v7230_v46, %v7227_v52  ;;  %v2899_v3 = vadd.f32 %v2898_v48, %v2880_v37  ;;  %3038 = vperm.xlu1 %5292, %v7049_v0  }
 0x8a7   : > { %v7259_v53 = vadd.f32 %v2904_v63, %v5860_v26  ;;  %4512 = vmatmul.msk.bf16.vlgmr.msrb.gmra.mxu3 %vm8216_vm8, %v4556_v1  ;;  %3042 = vperm.xlu2 %5293, %v7079_v59   ;;  %vm8225_vm8 = vmmov %vm8218_vm5 }
 0x8a8   : > { %2958 = vmatpush.bf16.msra.mxu2 %v2918_v60  ;;  %v7271_v23 = vadd.f32 %v2899_v3, %v5870_v34 }
 0x8a9   : > { %v2905_v33 = vpop.f32.mrf.mxu3 }
 0x8aa   : > { %v2886_v24 = vpop.f32.mrf.mxu1  ;;  %v2917_v26 = vpack.c.bf16 %v7266_v9, %v7271_v23  ;;  %v2922_v19 = vpop.permute.xlu2 %2921 }
 0x8ab   : > { %v2887_v43 = vadd.f32 %v2886_v24, %v2868_v28 }
 0x8ac   : > { %2959 = vmatpush.bf16.msra.mxu2 %v2916_v49 }
 0x8ad   : > { %v2906_v55 = vadd.f32 %v2905_v33, %v2887_v43  ;;  %v4557_v43 = vld [vmem:[%s7944_s7 + $0x28] sm:$0xff] }
 0x8af   : > { %v7262_v12 = vadd.f32 %v2906_v55, %v5874_v38  ;;  %4491 = vmatmul.msk.bf16.vlgmr.msra.gmra.mxu2 %vm8210_vm13, %v4552_v61  ;;  %vm3154_vm13 = vcmask 64512  }
 0x8b1   : > { %v2919_v47 = vpack.c.bf16 %v7262_v12, %v7259_v53 }
 0x8b3   : > { %2977 = vmatpush.bf16.msra.mxu0 %v2919_v47 }
 0x8b7   : > { %2978 = vmatpush.bf16.msra.mxu0 %v2917_v26  ;;  %4513 = vmatmul.msk.bf16.gmra.mxu3 %vm8217_vm14, %v4557_v43  ;;  %vm8226_vm14 = vcmask 7168  }
 0x8ba   : > { %4493 = vmatmul.msk.bf16.vlgmr.msra.gmra.mxu0 %vm8212_vm7, %v4552_v61  ;;  %vm8222_vm7 = vmmov %vm8218_vm5 }
 0x8bf   : > { %4492 = vmatmul.msk.bf16.gmra.mxu2 %vm8213_vm12, %v4553_v18  ;;  %vm8223_vm12 = vmmov %vm8218_vm5 }
 0x8ca   : > { %4494 = vmatmul.msk.bf16.gmra.mxu0 %vm8214_vm11, %v4553_v18  ;;  %vm8224_vm11 = vmmov %vm8218_vm5 }
 0x91a   : > { %v3025_v38 = vpop.f32.mrf.mxu1 }
 0x91b   : > { %v3026_v24 = vadd.f32 %v5472_v39, %v3025_v38 }
 0x91d   : > { %v3080_v36 = vpack.c.bf16 %v3026_v24, %v3026_v24 }
 0x922   : > { %v3027_v62 = vpop.f32.mrf.mxu1 }
 0x932   : > { %v2961_v34 = vpop.f32.mrf.mxu2 }
 0x933   : > { %v2962_v60 = vadd.f32 %v2961_v34, %v2922_v19 }
 0x937   : > { %v2980_v48 = vpop.f32.mrf.mxu0 }
 0x938   : > { %v2981_v41 = vadd.f32 %v2980_v48, %v2922_v19 }
 0x93a   : > { %v2963_v6 = vpop.f32.mrf.mxu2 }
 0x93b   : > { %v2964_v28 = vadd.f32 %v2963_v6, %v2926_v13 }
 0x93d   : > { %v3081_v33 = vpack.c.bf16 %v2964_v28, %v2962_v60 }
 0x93f   : > { %v2982_v11 = vpop.f32.mrf.mxu0 }
 0x940   : > { %v2983_v49 = vadd.f32 %v2982_v11, %v2926_v13 }
 0x942   : > { %v2966_v21 = vpop.f32.mrf.mxu2  ;;  %v3082_v10 = vpack.c.bf16 %v2983_v49, %v2981_v41 }
 0x943   : > { %v2967_v22 = vadd.f32 %v2966_v21, %v2930_v27 }
 0x947   : > { %v2985_v20 = vpop.f32.mrf.mxu0 }
 0x948   : > { %v2986_v37 = vadd.f32 %v2985_v20, %v2930_v27 }
 0x94a   : > { %v2968_v40 = vpop.f32.mrf.mxu2 }
 0x94b   : > { %v2969_v15 = vadd.f32 %v2968_v40, %v2934_v50  ;;  %v3070_v40 = vpop.f32.mrf.mxu3 }
 0x94d   : > { %v3083_v35 = vpack.c.bf16 %v2969_v15, %v2967_v22 }
 0x94f   : > { %v2987_v17 = vpop.f32.mrf.mxu0  ;;  %3094 = vmatpush.bf16.msrb.mxu1 %v3083_v35 }
 0x950   : > { %v2988_v63 = vadd.f32 %v2987_v17, %v2934_v50 }
 0x952   : > { %v3084_v61 = vpack.c.bf16 %v2988_v63, %v2986_v37  ;;  %v3035_v37 = vpop.permute.xlu2 %3034  ;;  %v3031_v63 = vpop.permute.xlu1 %3030 }
 0x953   : > { %3095 = vmatpush.bf16.msrb.mxu1 %v3081_v33  ;;  %v3072_v24 = vpop.f32.mrf.mxu3 }
 0x954   : > { %3107 = vmatpush.bf16.msrb.mxu2 %v3084_v61  ;;  %v3073_v61 = vadd.f32 %v3072_v24, %v3035_v37 }
 0x956   : > { %4514 = vmatmul.msk.bf16.vlgmr.msrb.gmra.mxu1 %vm8218_vm5, %v3080_v36  ;;  %vm8227_vm5 = vmmov %vm8226_vm14 }
 0x958   : > { %3108 = vmatpush.bf16.msrb.mxu2 %v3082_v10 }
 0x95b   : > { %4515 = vmatmul.msk.bf16.vlgmr.msrb.gmra.mxu2 %vm8219_vm6, %v3080_v36  ;;  %v3071_v36 = vadd.f32 %v3070_v40, %v3031_v63  ;;  %vm8228_vm6 = vmmov %vm8227_vm5 }
 0x9d3   : > { %v3097_v55 = vpop.f32.mrf.mxu1 }
 0x9d4   : > { %v3114_v3 = vmul.f32 0.17677669, %v3097_v55 }
 0x9d6   : > { %v3116_v7 = vrot.slane %v3114_v3, 4 }
 0x9d8   : > { %v3117_v47 = vmax.f32 %v3114_v3, %v3116_v7 }
 0x9da   : > { %v3118_v26 = vrot.slane %v3117_v47, 2 }
 0x9db   : > { %v3099_v18 = vpop.f32.mrf.mxu1 }
 0x9dc   : > { %v3119_v38 = vmax.f32 %v3117_v47, %v3118_v26  ;;  %v3075_v47 = vpop.f32.mrf.mxu3 }
 0x9de   : > { %v3110_v34 = vpop.f32.mrf.mxu2  ;;  %v3120_v62 = vrot.slane %v3119_v38, 1 }
 0x9df   : > { %v3115_v48 = vmul.f32 0.17677669, %v3110_v34  ;;  %v3043_v34 = vpop.permute.xlu2 %3042 }
 0x9e0   : > { %v3121_v6 = vmax.f32 %v3119_v38, %v3120_v62 }
 0x9e1   : > { %v3122_v54 = vrot.slane %v3115_v48, 4 }
 0x9e2   : > { %v3128_v5 = vsub.f32 %v3114_v3, %v3121_v6  ;;  %v3150_v3 = vpack.c.bf16 %v3073_v61, %v3071_v36 }
 0x9e3   : > { %v3123_v8 = vmax.f32 %v3115_v48, %v3122_v54 }
 0x9e4   : > { %v3130_v45 = vmul.f32 1.442695, %v3128_v5  ;;  %v3077_v6 = vpop.f32.mrf.mxu3 }
 0x9e5   : > { %v3124_v29 = vrot.slane %v3123_v8, 2  ;;  %v3078_v5 = vadd.f32 %v3077_v6, %v3043_v34 }
 0x9e6   : > { %v3112_v42 = vpop.f32.mrf.mxu2  ;;  %5553 = vpow2.f32 %v3130_v45 }
 0x9e7   : > { %v3125_v44 = vmax.f32 %v3123_v8, %v3124_v29 }
 0x9e9   : > { %v3126_v11 = vrot.slane %v3125_v44, 1 }
 0x9eb   : > { %v3127_v1 = vmax.f32 %v3125_v44, %v3126_v11  ;;  %v5645_v44 = vmov 8  }
 0x9ec   : > { %v5554_v27 = vpop.eup %5553  ;;  %5295 = vset.pattern.permute.xlu1 %v5645_v44  ;;  %5294 = vset.pattern.permute.xlu0 %v5645_v44 }
 0x9ed   : > { %v3129_v21 = vsub.f32 %v3115_v48, %v3127_v1  ;;  %v3134_v20 = vrot.slane %v5554_v27, 4  ;;  %v3039_v48 = vpop.permute.xlu1 %3038  ;;  %3280 = vperm.xlu1 %5295, %v7049_v0   ;;  %3284 = vperm.xlu0 %5294, %v7079_v59  }
 0x9ee   : > { %v3076_v54 = vadd.f32 %v3075_v47, %v3039_v48  ;;  %5296 = vset.pattern.permute.xlu2 %v5645_v44 }
 0x9ef   : > { %v3132_v50 = vmul.f32 1.442695, %v3129_v21  ;;  %v3135_v13 = vadd.f32 %v5554_v27, %v3134_v20  ;;  %3276 = vperm.xlu2 %5296, %v7101_v31  }
 0x9f0   : > { %v3151_v8 = vpack.c.bf16 %v3078_v5, %v3076_v54 }
 0x9f1   : > { %5555 = vpow2.f32 %v3132_v50  ;;  %v3136_v39 = vrot.slane %v3135_v13, 2 }
 0x9f3   : > { %v3137_v22 = vadd.f32 %v3136_v39, %v3135_v13  ;;  %v4554_v13 = vld [vmem:[%s7944_s7 + $0x10] sm:$0xff] }
 0x9f5   : > { %v3138_v15 = vrot.slane %v3137_v22, 1  ;;  %3272 = vperm.xlu1 %5295, %v7061_v32   ;;  %5297 = vset.pattern.permute.xlu0 %v8076_v14 }
 0x9f7   : > { %v5556_v19 = vpop.eup %5555  ;;  %v3139_v60 = vadd.f32 %v3138_v15, %v3137_v22  ;;  %5298 = vset.pattern.permute.xlu2 %v8076_v14  ;;  %v4555_v15 = vld [vmem:[%s7944_s7 + $0x18] sm:$0xff] }
 0x9f8   : > { %v3140_v28 = vrot.slane %v5556_v19, 4 }
 0x9f9   : > { %5557 = vrcp.f32 %v3139_v60 }
 0x9fa   : > { %v3141_v35 = vadd.f32 %v5556_v19, %v3140_v28 }
 0x9fc   : > { %v3142_v17 = vrot.slane %v3141_v35, 2 }
 0x9fd   : > { %5299 = vset.pattern.permute.xlu1 %v8076_v14 }
 0x9fe   : > { %v3143_v43 = vadd.f32 %v3142_v17, %v3141_v35 }
 0x9ff   : > { %v5558_v33 = vpop.eup %5557 }
 0xa00   : > { %v3144_v49 = vrot.slane %v3143_v43, 1  ;;  %v3148_v41 = vmul.f32 %v5558_v33, %v5554_v27 }
 0xa02   : > { %v3145_v10 = vadd.f32 %v3144_v49, %v3143_v43  ;;  %v3152_v55 = vpack.c.bf16 %v3148_v41, %v3148_v41 }
 0xa04   : > { %5559 = vrcp.f32 %v3145_v10  ;;  %v3162_v7 = vsel %vm8220_vm9, %v3152_v55, 0  ;;  %vm8229_vm9 = vmmov %vm8227_vm5 }
 0xa05   : > { %3174 = vmatpush.bf16.msrb.mxu0 %v3162_v7 }
 0xa08   : > { %4516 = vmatmul.msk.bf16.vlgmr.msrb.gmra.mxu0 %vm3154_vm13, %v3150_v3 }
 0xa0a   : > { %v5560_v26 = vpop.eup %5559 }
 0xa0b   : > { %v3149_v18 = vmul.f32 %v5560_v26, %v5556_v19 }
 0xa0d   : > { %v3153_v38 = vpack.c.bf16 %v3149_v18, %v3149_v18 }
 0xa0f   : > { %v3165_v62 = vsel %vm8221_vm2, %v3153_v38, 0  ;;  %vm8231_vm2 = vmmov %vm8222_vm7 }
 0xa10   : > { %3193 = vmatpush.bf16.msra.mxu1 %v3165_v62 }
 0xa13   : > { %4518 = vmatmul.msk.bf16.vlgmr.msra.gmra.mxu1 %vm3154_vm13, %v3150_v3 }
 0xa18   : > { %4517 = vmatmul.msk.bf16.gmra.mxu0 %vm3154_vm13, %v3151_v8 }
 0xa23   : > { %4519 = vmatmul.msk.bf16.gmra.mxu1 %vm3154_vm13, %v3151_v8  ;;  %vm8230_vm13 = vmmov %vm8222_vm7 }
 0xa49   : > { %v3277_v35 = vpop.permute.xlu2 %3276 }
 0xa5f   : > { %v3281_v61 = vpop.permute.xlu1 %3280  ;;  %v3285_v47 = vpop.permute.xlu0 %3284 }
 0xa67   : > { %v3273_v8 = vpop.permute.xlu1 %3272 }
 0xa85   : > { %v3176_v45 = vpop.f32.mrf.mxu0 }
 0xa8d   : > { %v3178_v29 = vpop.f32.mrf.mxu0 }
 0xa8e   : > { %v3205_v50 = vpack.c.bf16 %v3178_v29, %v3176_v45 }
 0xa90   : > { %v3195_v42 = vpop.f32.mrf.mxu1 }
 0xa95   : > { %v3181_v11 = vpop.f32.mrf.mxu0 }
 0xa98   : > { %v3197_v1 = vpop.f32.mrf.mxu1 }
 0xa99   : > { %v3206_v22 = vpack.c.bf16 %v3197_v1, %v3195_v42 }
 0xa9d   : > { %v3183_v27 = vpop.f32.mrf.mxu0 }
 0xa9e   : > { %v3207_v21 = vpack.c.bf16 %v3183_v27, %v3181_v11 }
 0xaa0   : > { %v3200_v20 = vpop.f32.mrf.mxu1  ;;  %3231 = vmatpush.bf16.msra.mxu2 %v3207_v21 }
 0xaa4   : > { %3232 = vmatpush.bf16.msra.mxu2 %v3205_v50 }
 0xaa7   : > { %4528 = vmatmul.msk.bf16.vlgmr.msra.gmra.mxu2 %vm8222_vm7, %v4554_v13  ;;  %vm8232_vm7 = vmmov %vm8231_vm2 }
 0xaa8   : > { %v3202_v40 = vpop.f32.mrf.mxu1 }
 0xaa9   : > { %v3208_v39 = vpack.c.bf16 %v3202_v40, %v3200_v20 }
 0xaab   : > { %3250 = vmatpush.bf16.msra.mxu3 %v3208_v39 }
 0xaaf   : > { %3251 = vmatpush.bf16.msra.mxu3 %v3206_v22 }
 0xab2   : > { %4530 = vmatmul.msk.bf16.vlgmr.msra.gmra.mxu3 %vm8223_vm12, %v4554_v13  ;;  %vm8233_vm12 = vmmov %vm8231_vm2 }
 0xab7   : > { %4529 = vmatmul.msk.bf16.gmra.mxu2 %vm8224_vm11, %v4555_v15 }
 0xac2   : > { %4531 = vmatmul.msk.bf16.gmra.mxu3 %vm8225_vm8, %v4555_v15 }
 0xb2a   : > { %v3234_v19 = vpop.f32.mrf.mxu2 }
 0xb2b   : > { %v3263_v6 = vadd.f32 %v3234_v19, %v7239_v51 }
 0xb2d   : > { %v7363_v42 = vadd.f32 %v3273_v8, %v3263_v6 }
 0xb2f   : > { %v3307_v44 = vmul.f32 %v7363_v42, %v7363_v42 }
 0xb32   : > { %v3236_v14 = vpop.f32.mrf.mxu2 }
 0xb33   : > { %v3265_v28 = vadd.f32 %v3236_v14, %v7234_v16 }
 0xb35   : > { %v3253_v60 = vpop.f32.mrf.mxu3  ;;  %v7325_v63 = vadd.f32 %v3277_v35, %v3265_v28  ;;  %v5613_v28 = vld [vmem:[%s7945_s8] sm:$0xff] }
 0xb36   : > { %v3264_v34 = vadd.f32 %v3253_v60, %v7271_v23 }
 0xb37   : > { %v3309_v48 = vmul.f32 %v7325_v63, %v7325_v63 }
 0xb38   : > { %v7359_v45 = vadd.f32 %v3273_v8, %v3264_v34 }
 0xb3a   : > { %v3239_v24 = vpop.f32.mrf.mxu2  ;;  %v3308_v51 = vmul.f32 %v7359_v45, %v7359_v45  ;;  %v3295_v1 = vadd.f32 %v7359_v45, %v7363_v42 }
 0xb3b   : > { %v3267_v33 = vadd.f32 %v3239_v24, %v7227_v52  ;;  %v5615_v24 = vld [vmem:[%s7945_s8 + $0x10] sm:$0xff] }
 0xb3c   : > { %v3315_v11 = vadd.f32 %v3308_v51, %v3307_v44 }
 0xb3d   : > { %v3255_v17 = vpop.f32.mrf.mxu3  ;;  %v7332_v41 = vadd.f32 %v3281_v61, %v3267_v33 }
 0xb3e   : > { %v3266_v37 = vadd.f32 %v3255_v17, %v7266_v9  ;;  %v5616_v17 = vld [vmem:[%s7945_s8 + $0x18] sm:$0xff] }
 0xb3f   : > { %v3311_v52 = vmul.f32 %v7332_v41, %v7332_v41 }
 0xb40   : > { %v7327_v43 = vadd.f32 %v3277_v35, %v3266_v37  ;;  %v5614_v35 = vld [vmem:[%s7945_s8 + $0x8] sm:$0xff] }
 0xb42   : > { %v3298_v49 = vadd.f32 %v7327_v43, %v7325_v63  ;;  %v3241_v10 = vpop.f32.mrf.mxu2 }
 0xb43   : > { %v3269_v9 = vadd.f32 %v3241_v10, %v7230_v46  ;;  %v3310_v46 = vmul.f32 %v7327_v43, %v7327_v43 }
 0xb44   : > { %3299 = vadd.xlane.f32.xlu0 %v3298_v49 }
 0xb45   : > { %v3258_v36 = vpop.f32.mrf.mxu3  ;;  %v7344_v38 = vadd.f32 %v3285_v47, %v3269_v9  ;;  %v3318_v54 = vadd.f32 %v3310_v46, %v3309_v48 }
 0xb46   : > { %v3268_v16 = vadd.f32 %v3258_v36, %v7259_v53 }
 0xb47   : > { %v3313_v5 = vmul.f32 %v7344_v38, %v7344_v38 }
 0xb48   : > { %v7335_v55 = vadd.f32 %v3281_v61, %v3268_v16 }
 0xb4a   : > { %v3301_v3 = vadd.f32 %v7335_v55, %v7332_v41  ;;  %v3312_v7 = vmul.f32 %v7335_v55, %v7335_v55 }
 0xb4c   : > { %3302 = vadd.xlane.f32.xlu1 %v3301_v3  ;;  %v3321_v26 = vadd.f32 %v3312_v7, %v3311_v52 }
 0xb4d   : > { %v3260_v18 = vpop.f32.mrf.mxu3 }
 0xb4e   : > { %v3270_v53 = vadd.f32 %v3260_v18, %v7262_v12  ;;  %3322 = vadd.xlane.f32.xlu2 %v3321_v26  ;;  %v5646_v26 = vmov 10   ;;  %v5647_v18 = vmov 11  }
 0xb50   : > { %v7350_v62 = vadd.f32 %v3285_v47, %v3270_v53 }
 0xb52   : > { %v3314_v12 = vmul.f32 %v7350_v62, %v7350_v62  ;;  %v3304_v23 = vadd.f32 %v7350_v62, %v7344_v38 }
 0xb54   : > { %3319 = vadd.xlane.f32.xlu1 %v3318_v54  ;;  %v3324_v29 = vadd.f32 %v3314_v12, %v3313_v5 }
 0xb56   : > { %3325 = vadd.xlane.f32.xlu0 %v3324_v29  ;;  %3305 = vadd.xlane.f32.xlu2 %v3304_v23 }
 0xb5e   : > { %3316 = vadd.xlane.f32.xlu0 %v3315_v11  ;;  %3296 = vadd.xlane.f32.xlu2 %v3295_v1 }
 0xbb7   : > { %v3300_v27 = vpop.xlane.xlu0 %3299 }
 0xbbf   : > { %v3303_v21 = vpop.xlane.xlu1 %3302 }
 0xbc1   : > { %v3323_v20 = vpop.xlane.xlu2 %3322 }
 0xbc2   : > { %v3329_v22 = vsel %vm8227_vm5, %v3303_v21, %v3323_v20 }
 0xbc7   : > { %v3320_v39 = vpop.xlane.xlu1 %3319 }
 0xbc8   : > { %v3328_v15 = vsel %vm8228_vm6, %v3300_v27, %v3320_v39 }
 0xbc9   : > { %v3326_v50 = vpop.xlane.xlu0 %3325  ;;  %v3306_v13 = vpop.xlane.xlu2 %3305 }
 0xbca   : > { %v3330_v40 = vsel %vm8226_vm14, %v3306_v13, %v3326_v50 }
 0xbcb   : > { %3343 = vmatpush.msra.mxu0 %v3330_v40 }
 0xbcd   : > { %3344 = vmatpush.msra.mxu0 %v3329_v22 }
 0xbcf   : > { %3345 = vmatpush.msra.mxu0 %v3328_v15 }
 0xbd1   : > { %v3317_v19 = vpop.xlane.xlu0 %3316  ;;  %v3297_v14 = vpop.xlane.xlu2 %3296 }
 0xbd2   : > { %v3327_v60 = vsel %vm8229_vm9, %v3297_v14, %v3317_v19 }
 0xbd3   : > { %3346 = vmatpush.msra.mxu0 %v3327_v60 }
 0xbd4   : > { %4532 = vmatmul.msk.f32.vlgmr.msra.gmra.mxu0 %vm8230_vm13, %v5613_v28 }
 0xbdc   : > { %4533 = vmatmul.msk.f32.gmra.mxu0 %vm8231_vm2, %v5614_v35 }
 0xbe4   : > { %4534 = vmatmul.msk.f32.gmra.mxu0 %vm8232_vm7, %v5615_v24 }
 0xbec   : > { %4535 = vmatmul.msk.f32.gmra.mxu0 %vm8233_vm12, %v5616_v17 }
 0xc51   : > { %v3348_v37 = vpop.f32.mrf.mxu0 }
 0xc52   : > { %v3360_v33 = vmul.f32 0.0009765625, %v3348_v37 }
 0xc54   : > { %v3364_v49 = vmul.f32 %v3360_v33, %v3360_v33 }
 0xc56   : > { %3372 = vrot.lane.b32.xlu0 %v3364_v49, %s5632_s28  ;;  %v5617_v49 = vld [vmem:[%s7946_s9 + $0x8] sm:$0xff] }
 0xc59   : > { %v3351_v61 = vpop.f32.mrf.mxu0 }
 0xc5a   : > { %v3361_v9 = vmul.f32 0.0009765625, %v3351_v61 }
 0xc5c   : > { %v3365_v7 = vmul.f32 %v3361_v9, %v3361_v9 }
 0xc61   : > { %v3354_v36 = vpop.f32.mrf.mxu0 }
 0xc62   : > { %v3362_v16 = vmul.f32 0.0009765625, %v3354_v36 }
 0xc64   : > { %v3366_v10 = vmul.f32 %v3362_v16, %v3362_v16  ;;  %3400 = vperm.xlu0 %5297, %v3362_v16  }
 0xc66   : > { %3376 = vrot.lane.b32.xlu1 %v3366_v10, %s5632_s28 }
 0xc69   : > { %v3357_v3 = vpop.f32.mrf.mxu0 }
 0xc6a   : > { %v3363_v52 = vmul.f32 0.0009765625, %v3357_v3 }
 0xc6c   : > { %v3367_v47 = vmul.f32 %v3363_v52, %v3363_v52  ;;  %3395 = vperm.xlu0 %5297, %v3361_v9  }
 0xc6e   : > { %3374 = vrot.lane.b32.xlu1 %v3365_v7, %s5632_s28  ;;  %3378 = vrot.lane.b32.xlu2 %v3367_v47, %s5632_s28 }
 0xc74   : > { %5305 = vset.pattern.permute.xlu0 %v8120_v4 }
 0xc76   : > { %3390 = vperm.xlu1 %5299, %v3360_v33   ;;  %3405 = vperm.xlu2 %5298, %v3363_v52  }
 0xc7e   : > { %5301 = vset.pattern.permute.xlu1 %v5646_v26  ;;  %5300 = vset.pattern.permute.xlu2 %v5646_v26 }
 0xc7f   : > { %3501 = vperm.xlu1 %5301, %v7079_v59   ;;  %3497 = vperm.xlu2 %5300, %v7049_v0  }
 0xc87   : > { %5302 = vset.pattern.permute.xlu1 %v5647_v18  ;;  %5303 = vset.pattern.permute.xlu2 %v5647_v18 }
 0xc88   : > { %3521 = vperm.xlu1 %5302, %v7049_v0   ;;  %3525 = vperm.xlu2 %5303, %v7079_v59  }
 0xc90   : > { %5304 = vset.pattern.permute.xlu1 %v5646_v26  ;;  %5307 = vset.pattern.permute.xlu2 %v8120_v4 }
 0xc91   : > { %3489 = vperm.xlu1 %5304, %v7061_v32  }
 0xc99   : > { %5308 = vset.pattern.permute.xlu1 %v8120_v4 }
 0xcc8   : > { %v3373_v53 = vpop.permute.xlu0 %3372  ;;  %v3379_v5 = vpop.permute.xlu2 %3378 }
 0xcc9   : > { %v3384_v46 = vsub.f32 %v3360_v33, %v3373_v53  ;;  %v3387_v0 = vsub.f32 %v3363_v52, %v3379_v5 }
 0xccb   : > { %v3416_v34 = vadd.f32 1e-05, %v3384_v46  ;;  %v3419_v32 = vadd.f32 1e-05, %v3387_v0 }
 0xccd   : > { %5561 = vrsqrt.f32 %v3416_v34  ;;  %vm3426_vm8 = vweird.f32 %v3416_v34 }
 0xcd0   : > { %v3406_v10 = vpop.permute.xlu2 %3405 }
 0xcd3   : > { %v5562_v48 = vpop.eup %5561 }
 0xcd4   : > { %v3421_v6 = vmul.f32 %v5562_v48, %v3416_v34  ;;  %vm3427_vm11 = vweird.f32 %v5562_v48  ;;  %v3414_v34 = vsub.f32 %v7344_v38, %v3406_v10 }
 0xcd5   : > { %vm3428_vm14 = vmor %vm3426_vm8, %vm3427_vm11  ;;  %vm3456_vm11 = vweird.f32 %v3419_v32 }
 0xcd6   : > { %v3422_v54 = vmul.f32 %v5562_v48, %v3421_v6  ;;  %v3401_v47 = vpop.permute.xlu0 %3400 }
 0xcd7   : > { %v3412_v38 = vsub.f32 %v7332_v41, %v3401_v47 }
 0xcd8   : > { %v3423_v12 = vmul.f32 0.5, %v3422_v54  ;;  %v3377_v8 = vpop.permute.xlu1 %3376 }
 0xcd9   : > { %v3386_v29 = vsub.f32 %v3362_v16, %v3377_v8  ;;  %v7414_v16 = vld [vmem:[%s7946_s9] sm:$0xff]  ;;  %v3498_v3 = vpop.permute.xlu2 %3497 }
 0xcda   : > { %v3424_v59 = vsub.f32 1.5, %v3423_v12 }
 0xcdb   : > { %v3418_v23 = vadd.f32 1e-05, %v3386_v29 }
 0xcdc   : > { %v3425_v51 = vmul.f32 %v5562_v48, %v3424_v59 }
 0xcdd   : > { %5563 = vrsqrt.f32 %v3418_v23  ;;  %vm3446_vm6 = vweird.f32 %v3418_v23 }
 0xcde   : > { %v3429_v44 = vsel %vm3428_vm14, %v5562_v48, %v3425_v51  ;;  %5565 = vrsqrt.f32 %v3419_v32  ;;  %v3396_v46 = vpop.permute.xlu0 %3395 }
 0xcdf   : > { %3462 = vperm.xlu0 %5305, %v3429_v44  }
 0xce0   : > { %v3375_v4 = vpop.permute.xlu1 %3374 }
 0xce1   : > { %v3385_v11 = vsub.f32 %v3361_v9, %v3375_v4 }
 0xce2   : > { %v3526_v7 = vpop.permute.xlu2 %3525 }
 0xce3   : > { %v5564_v1 = vpop.eup %5563  ;;  %v3417_v27 = vadd.f32 1e-05, %v3385_v11 }
 0xce4   : > { %v3441_v21 = vmul.f32 %v5564_v1, %v3418_v23  ;;  %v5566_v50 = vpop.eup %5565  ;;  %vm3447_vm5 = vweird.f32 %v5564_v1 }
 0xce5   : > { %5567 = vrsqrt.f32 %v3417_v27  ;;  %v3451_v40 = vmul.f32 %v5566_v50, %v3419_v32  ;;  %vm3448_vm9 = vmor %vm3446_vm6, %vm3447_vm5  ;;  %vm3436_vm2 = vweird.f32 %v3417_v27  ;;  %vm3457_vm12 = vweird.f32 %v5566_v50 }
 0xce6   : > { %v3442_v20 = vmul.f32 %v5564_v1, %v3441_v21  ;;  %vm3458_vm8 = vmor %vm3456_vm11, %vm3457_vm12 }
 0xce7   : > { %5306 = vset.pattern.permute.xlu0 %v5646_v26  ;;  %v3452_v14 = vmul.f32 %v5566_v50, %v3451_v40 }
 0xce8   : > { %v3443_v13 = vmul.f32 0.5, %v3442_v20  ;;  %3493 = vperm.xlu0 %5306, %v7101_v31   ;;  %v3391_v9 = vpop.permute.xlu1 %3390 }
 0xce9   : > { %v3453_v24 = vmul.f32 0.5, %v3452_v14  ;;  %v3408_v8 = vsub.f32 %v7363_v42, %v3391_v9  ;;  %v3409_v0 = vsub.f32 %v7359_v45, %v3391_v9 }
 0xcea   : > { %v3444_v39 = vsub.f32 1.5, %v3443_v13 }
 0xceb   : > { %v5568_v22 = vpop.eup %5567  ;;  %v3454_v31 = vsub.f32 1.5, %v3453_v24 }
 0xcec   : > { %v3431_v15 = vmul.f32 %v5568_v22, %v3417_v27  ;;  %v3445_v19 = vmul.f32 %v5564_v1, %v3444_v39  ;;  %vm3437_vm13 = vweird.f32 %v5568_v22 }
 0xced   : > { %vm3438_vm7 = vmor %vm3436_vm2, %vm3437_vm13  ;;  %v3455_v61 = vmul.f32 %v5566_v50, %v3454_v31 }
 0xcee   : > { %v3432_v60 = vmul.f32 %v5568_v22, %v3431_v15  ;;  %v3449_v28 = vsel %vm3448_vm9, %v5564_v1, %v3445_v19  ;;  %v3410_v19 = vsub.f32 %v7325_v63, %v3396_v46 }
 0xcef   : > { %3472 = vperm.xlu1 %5308, %v3449_v28   ;;  %v3459_v36 = vsel %vm3458_vm8, %v5566_v50, %v3455_v61 }
 0xcf0   : > { %v3433_v35 = vmul.f32 0.5, %v3432_v60 }
 0xcf1   : > { %v3502_v52 = vpop.permute.xlu1 %3501 }
 0xcf2   : > { %v3434_v17 = vsub.f32 1.5, %v3433_v35 }
 0xcf4   : > { %v3435_v37 = vmul.f32 %v5568_v22, %v3434_v17 }
 0xcf6   : > { %v3439_v33 = vsel %vm3438_vm7, %v5568_v22, %v3435_v37 }
 0xcf7   : > { %5310 = vset.pattern.permute.xlu1 %v5647_v18  ;;  %3467 = vperm.xlu2 %5307, %v3439_v33  }
 0xcf8   : > { %3517 = vperm.xlu1 %5310, %v5617_v49  }
 0xcfa   : > { %v3522_v26 = vpop.permute.xlu1 %3521 }
 0xcff   : > { %3477 = vperm.xlu2 %5307, %v3459_v36  }
 0xd03   : > { %v3490_v48 = vpop.permute.xlu1 %3489 }
 0xd07   : > { %5309 = vset.pattern.permute.xlu2 %v5647_v18  ;;  %v3415_v18 = vsub.f32 %v7350_v62, %v3406_v10  ;;  %v3413_v62 = vsub.f32 %v7335_v55, %v3401_v47  ;;  %v3411_v10 = vsub.f32 %v7327_v43, %v3396_v46 }
 0xd08   : > { %3513 = vperm.xlu2 %5309, %v7414_v16  }
 0xd51   : > { %v3468_v53 = vpop.permute.xlu2 %3467  ;;  %v3463_v54 = vpop.permute.xlu0 %3462 }
 0xd52   : > { %v3480_v23 = vmul.f32 %v3463_v54, %v3408_v8  ;;  %v3481_v51 = vmul.f32 %v3463_v54, %v3409_v0  ;;  %v3482_v24 = vmul.f32 %v3468_v53, %v3410_v19 }
 0xd54   : > { %v3504_v1 = vmul.f32 %v3490_v48, %v3480_v23  ;;  %v3505_v42 = vmul.f32 %v3490_v48, %v3481_v51 }
 0xd59   : > { %v3478_v6 = vpop.permute.xlu2 %3477 }
 0xd5a   : > { %v3486_v5 = vmul.f32 %v3478_v6, %v3414_v34  ;;  %v3487_v12 = vmul.f32 %v3478_v6, %v3415_v18  ;;  %v3494_v60 = vpop.permute.xlu0 %3493 }
 0xd5b   : > { %v3506_v49 = vmul.f32 %v3494_v60, %v3482_v24 }
 0xd5c   : > { %v3510_v29 = vmul.f32 %v3502_v52, %v3486_v5  ;;  %v3511_v59 = vmul.f32 %v3502_v52, %v3487_v12 }
 0xd5e   : > { %v7421_v32 = vadd.f32 %v3526_v7, %v3510_v29  ;;  %v7423_v44 = vadd.f32 %v3526_v7, %v3511_v59  ;;  %v3483_v7 = vmul.f32 %v3468_v53, %v3411_v10 }
 0xd60   : > { %v4542_v4 = vmul.f32 -1.442695, %v7421_v32  ;;  %v4543_v11 = vmul.f32 -1.442695, %v7423_v44  ;;  %v3507_v53 = vmul.f32 %v3494_v60, %v3483_v7 }
 0xd61   : > { %v3473_v27 = vpop.permute.xlu1 %3472 }
 0xd62   : > { %5569 = vpow2.f32 %v4542_v4  ;;  %v3484_v45 = vmul.f32 %v3473_v27, %v3412_v38  ;;  %v3485_v21 = vmul.f32 %v3473_v27, %v3413_v62  ;;  %v3514_v20 = vpop.permute.xlu2 %3513 }
 0xd63   : > { %5571 = vpow2.f32 %v4543_v11  ;;  %v7429_v50 = vadd.f32 %v3514_v20, %v3504_v1  ;;  %v7431_v13 = vadd.f32 %v3514_v20, %v3505_v42 }
 0xd64   : > { %v3508_v40 = vmul.f32 %v3498_v3, %v3484_v45  ;;  %v3509_v41 = vmul.f32 %v3498_v3, %v3485_v21 }
 0xd65   : > { %v4536_v55 = vmul.f32 -1.442695, %v7429_v50  ;;  %v4537_v39 = vmul.f32 -1.442695, %v7431_v13 }
 0xd66   : > { %v7435_v22 = vadd.f32 %v3522_v26, %v3508_v40  ;;  %v7437_v15 = vadd.f32 %v3522_v26, %v3509_v41 }
 0xd67   : > { %5573 = vpow2.f32 %v4536_v55 }
 0xd68   : > { %v5570_v14 = vpop.eup %5569  ;;  %v4540_v28 = vmul.f32 -1.442695, %v7435_v22  ;;  %5575 = vpow2.f32 %v4537_v39  ;;  %v4541_v37 = vmul.f32 -1.442695, %v7437_v15 }
 0xd69   : > { %v5572_v35 = vpop.eup %5571  ;;  %v7441_v17 = vadd.f32 1.0, %v5570_v14 }
 0xd6a   : > { %v7444_v31 = vadd.f32 1.0, %v5572_v35  ;;  %5577 = vpow2.f32 %v4540_v28  ;;  %v3518_v33 = vpop.permute.xlu1 %3517 }
 0xd6b   : > { %5579 = vrcp.f32 %v7441_v17  ;;  %v7448_v61 = vadd.f32 %v3518_v33, %v3506_v49  ;;  %v3669_v26 = vand.u32 2147483648, %v7441_v17  ;;  %v3667_v46 = vand.u32 2147483647, %v7441_v17 }
 0xd6c   : > { %5581 = vrcp.f32 %v7444_v31  ;;  %v3682_v5 = vand.u32 2147483647, %v7444_v31  ;;  %v3684_v12 = vand.u32 2147483648, %v7444_v31  ;;  %vm3663_vm14 = vweird.f32 %v7441_v17 }
 0xd6d   : > { %v5574_v63 = vpop.eup %5573  ;;  %5583 = vpow2.f32 %v4541_v37  ;;  %v4538_v18 = vmul.f32 -1.442695, %v7448_v61  ;;  %v7478_v23 = vor.u32 1.1754944e-38, %v3669_v26  ;;  %v7484_v1 = vadd.f32 %v3518_v33, %v3507_v53 }
 0xd6e   : > { %v5576_v36 = vpop.eup %5575  ;;  %v7451_v9 = vadd.f32 1.0, %v5574_v63  ;;  %vm7504_vm11 = vcmp.eq.f32.partialorder %v3667_v46, 8.507059e+37 }
 0xd6f   : > { %v7453_v3 = vadd.f32 1.0, %v5576_v36 }
 0xd70   : > { %v5578_v52 = vpop.eup %5577  ;;  %5585 = vrcp.f32 %v7451_v9  ;;  %v3577_v29 = vand.u32 2147483647, %v7451_v9  ;;  %v3579_v59 = vand.u32 2147483648, %v7451_v9  ;;  %vm8244_vm2 = vweird.f32 %v7451_v9 }
 0xd71   : > { %v7456_v47 = vpop.eup %5579  ;;  %v7459_v34 = vadd.f32 1.0, %v5578_v52  ;;  %5587 = vrcp.f32 %v7453_v3  ;;  %v3592_v38 = vand.u32 2147483647, %v7453_v3  ;;  %v3594_v19 = vand.u32 2147483648, %v7453_v3 }
 0xd72   : > { %v7463_v48 = vpop.eup %5581  ;;  %v3659_v43 = vmul.f32 %v7456_v47, %v7441_v17  ;;  %vm3664_vm5 = vweird.f32 %v7456_v47  ;;  %vm7492_vm13 = vcmp.eq.f32.partialorder %v3577_v29, 8.507059e+37  ;;  %v3580_v40 = vor.u32 1.1754944e-38, %v3579_v59 }
 0xd73   : > { %v5584_v6 = vpop.eup %5583  ;;  %v3674_v54 = vmul.f32 %v7463_v48, %v7444_v31  ;;  %5589 = vrcp.f32 %v7459_v34  ;;  %v3637_v4 = vand.u32 2147483647, %v7459_v34  ;;  %v3639_v11 = vand.u32 2147483648, %v7459_v34  ;;  %vm7523_vm6 = vmor %vm3663_vm14, %vm3664_vm5 }
 0xd74   : > { %v3660_v8 = vsub.f32 1.0, %v3659_v43  ;;  %v7473_v0 = vadd.f32 1.0, %v5584_v6  ;;  %5591 = vpow2.f32 %v4538_v18  ;;  %vm7499_vm12 = vcmp.eq.f32.partialorder %v3592_v38, 8.507059e+37 }
 0xd75   : > { %v3675_v51 = vsub.f32 1.0, %v3674_v54  ;;  %vm7510_vm9 = vcmp.eq.f32.partialorder %v3637_v4, 8.507059e+37  ;;  %v3640_v35 = vor.u32 1.1754944e-38, %v3639_v11  ;;  %v4539_v54 = vmul.f32 -1.442695, %v7484_v1 }
 0xd76   : > { %v5586_v62 = vpop.eup %5585  ;;  %5593 = vrcp.f32 %v7473_v0  ;;  %v3661_v27 = vmul.f32 %v7456_v47, %v3660_v8  ;;  %v3652_v49 = vand.u32 2147483647, %v7473_v0  ;;  %v3654_v63 = vand.u32 2147483648, %v7473_v0 }
 0xd77   : > { %v5588_v42 = vpop.eup %5587  ;;  %v3676_v45 = vmul.f32 %v7463_v48, %v3675_v51  ;;  %v3569_v21 = vmul.f32 %v5586_v62, %v7451_v9  ;;  %vm3574_vm8 = vweird.f32 %v5586_v62  ;;  %v3595_v38 = vor.u32 1.1754944e-38, %v3594_v19 }
 0xd78   : > { %v3584_v41 = vmul.f32 %v5588_v42, %v7453_v3  ;;  %v3662_v33 = vadd.f32 %v7456_v47, %v3661_v27  ;;  %vm3589_vm7 = vweird.f32 %v5588_v42  ;;  %vm3575_vm3 = vmor %vm8244_vm2, %vm3574_vm8  ;;  %vm8245_vm5 = vweird.f32 %v7453_v3 }
 0xd79   : > { %v5590_v55 = vpop.eup %5589  ;;  %v3570_v24 = vsub.f32 1.0, %v3569_v21  ;;  %v3677_v52 = vadd.f32 %v7463_v48, %v3676_v45  ;;  %vm3590_vm15 = vmor %vm8245_vm5, %vm3589_vm7  ;;  %5595 = vpow2.f32 %v4539_v54  ;;  %vm8247_vm1 = vweird.f32 %v7459_v34 }
 0xd7a   : > { %v3629_v60 = vmul.f32 %v5590_v55, %v7459_v34  ;;  %v5592_v37 = vpop.eup %5591  ;;  %v3585_v36 = vsub.f32 1.0, %v3584_v41  ;;  %v3666_v29 = vsel %vm7523_vm6, %v7456_v47, %v3662_v33  ;;  %vm8246_vm4 = vweird.f32 %v5590_v55 }
 0xd7b   : > { %v3571_v26 = vmul.f32 %v5586_v62, %v3570_v24  ;;  %v3562_v8 = vadd.f32 1.0, %v5592_v37  ;;  %vm3635_vm10 = vmor %vm8247_vm1, %vm8246_vm4  ;;  %vm3648_vm6 = vweird.f32 %v7473_v0  ;;  %v3671_v34 = vsel %vm7504_vm11, %v7478_v23, %v3666_v29 }
 0xd7c   : > { %v5594_v10 = vpop.eup %5593  ;;  %v3630_v7 = vsub.f32 1.0, %v3629_v60  ;;  %v3586_v43 = vmul.f32 %v5588_v42, %v3585_v36  ;;  %vm8248_vm1 = vweird.f32 %v7463_v48  ;;  %vm8249_vm4 = vweird.f32 %v7444_v31 }
 0xd7d   : > { %v3644_v18 = vmul.f32 %v5594_v10, %v7473_v0  ;;  %v3572_v6 = vadd.f32 %v5586_v62, %v3571_v26  ;;  %vm3649_vm14 = vweird.f32 %v5594_v10  ;;  %5597 = vrcp.f32 %v3562_v8 }
 0xd7e   : > { %v3631_v53 = vmul.f32 %v5590_v55, %v3630_v7  ;;  %v3587_v51 = vadd.f32 %v5588_v42, %v3586_v43  ;;  %v3685_v23 = vor.u32 1.1754944e-38, %v3684_v12  ;;  %v3655_v20 = vor.u32 1.1754944e-38, %v3654_v63 }
 0xd7f   : > { %v3645_v59 = vsub.f32 1.0, %v3644_v18  ;;  %v3576_v4 = vsel %vm3575_vm3, %v5586_v62, %v3572_v6  ;;  %vm7553_vm3 = vmor %vm8249_vm4, %vm8248_vm1  ;;  %v3607_v28 = vand.u32 2147483647, %v3562_v8  ;;  %vm3603_vm2 = vweird.f32 %v3562_v8 }
 0xd80   : > { %v3632_v17 = vadd.f32 %v5590_v55, %v3631_v53  ;;  %v3581_v47 = vsel %vm7492_vm13, %v3580_v40, %v3576_v4  ;;  %v3591_v27 = vsel %vm3590_vm15, %v5588_v42, %v3587_v51  ;;  %vm3653_vm15 = vcmp.eq.f32.partialorder %v3652_v49, 8.507059e+37 }
 0xd81   : > { %v3646_v11 = vmul.f32 %v5594_v10, %v3645_v59  ;;  %v3596_v62 = vsel %vm7499_vm12, %v3595_v38, %v3591_v27  ;;  %v7544_v3 = vmul.f32 %v3581_v47, %v7429_v50  ;;  %v3681_v50 = vsel %vm7553_vm3, %v7463_v48, %v3677_v52 }
 0xd82   : > { %v3636_v9 = vsel %vm3635_vm10, %v5590_v55, %v3632_v17  ;;  %v7560_v21 = vmul.f32 %v3596_v62, %v7431_v13  ;;  %vm3650_vm10 = vmor %vm3648_vm6, %vm3649_vm14  ;;  %v5596_v13 = vpop.eup %5595  ;;  %v7578_v48 = vmul.f32 %v3671_v34, %v7421_v32  ;;  %vm3608_vm12 = vcmp.eq.f32.partialorder %v3607_v28, 8.507059e+37 }
 0xd83   : > { %v3641_v0 = vsel %vm7510_vm9, %v3640_v35, %v3636_v9  ;;  %v3647_v45 = vadd.f32 %v5594_v10, %v3646_v11  ;;  %vm3683_vm9 = vcmp.eq.f32.partialorder %v3682_v5, 8.507059e+37  ;;  %v5598_v39 = vpop.eup %5597  ;;  %v3563_v14 = vadd.f32 1.0, %v5596_v13 }
 0xd84   : > { %v7569_v40 = vmul.f32 %v3641_v0, %v7435_v22  ;;  %v7573_v55 = vpack.i.bf16 %v7560_v21, %v7544_v3  ;;  %v3686_v19 = vsel %vm3683_vm9, %v3685_v23, %v3681_v50  ;;  %v3599_v60 = vmul.f32 %v5598_v39, %v3562_v8 }
 0xd85   : > { %v3651_v41 = vsel %vm3650_vm10, %v5594_v10, %v3647_v45  ;;  %5599 = vrcp.f32 %v3563_v14  ;;  %v7590_v32 = vmul.f32 %v3686_v19, %v7423_v44  ;;  %v3609_v35 = vand.u32 2147483648, %v3562_v8 }
 0xd86   : > { %v3656_v12 = vsel %vm3653_vm15, %v3655_v20, %v3651_v41  ;;  %5322 = vrot.lane.b32.xlu2 %v7573_v55, %s5631_s27  ;;  %5312 = vrot.lane.b32.xlu0 %v7573_v55, %s5628_s24  ;;  %v4171_v31 = vpack.c.bf16 %v7578_v48, %v7569_v40  ;;  %v3600_v5 = vsub.f32 1.0, %v3599_v60  ;;  %vm3604_vm13 = vweird.f32 %v5598_v39 }
 0xd87   : > { %v7585_v22 = vmul.f32 %v3656_v12, %v7437_v15  ;;  %vm3605_vm7 = vmor %vm3603_vm2, %vm3604_vm13  ;;  %v3610_v63 = vor.u32 1.1754944e-38, %v3609_v35  ;;  %v3624_v26 = vand.u32 2147483648, %v3563_v14  ;;  %v3622_v43 = vand.u32 2147483647, %v3563_v14 }
 0xd88   : > { %v3601_v24 = vmul.f32 %v5598_v39, %v3600_v5  ;;  %vm3618_vm8 = vweird.f32 %v3563_v14  ;;  %v5376_v4 = vpack.i.bf16 %v7578_v48, %v7569_v40  ;;  %vm8252_vm6 = vcmask 916480  }
 0xd89   : > { %v5446_v37 = vpack.i.bf16 %v7590_v32, %v7585_v22  ;;  %v5361_v53 = vpack.i.bf16 %v7585_v22, %v7569_v40  ;;  %vm3623_vm5 = vcmp.eq.f32.partialorder %v3622_v43, 8.507059e+37  ;;  %vm8253_vm1 = vmmov %vm8252_vm6  ;;  %vm8256_vm10 = vcmask 924672  }
 0xd8a   : > { %v3602_v33 = vadd.f32 %v5598_v39, %v3601_v24  ;;  %vm8254_vm4 = vmmov %vm8253_vm1  ;;  %vm8259_vm13 = vcmask 7168  }
 0xd8b   : > { %v5600_v49 = vpop.eup %5599  ;;  %vm8255_vm3 = vmmov %vm8253_vm1 }
 0xd8c   : > { %v3606_v44 = vsel %vm3605_vm7, %v5598_v39, %v3602_v33  ;;  %v3614_v36 = vmul.f32 %v5600_v49, %v3563_v14  ;;  %vm3619_vm11 = vweird.f32 %v5600_v49  ;;  %vm8257_vm15 = vmmov %vm8256_vm10 }
 0xd8d   : > { %v3611_v10 = vsel %vm3608_vm12, %v3610_v63, %v3606_v44  ;;  %vm3620_vm14 = vmor %vm3618_vm8, %vm3619_vm11 }
 0xd8e   : > { %5317 = vrot.lane.b32.xlu0 %v7573_v55, %s5630_s26  ;;  %v3615_v52 = vsub.f32 1.0, %v3614_v36  ;;  %v7599_v7 = vmul.f32 %v3611_v10, %v7448_v61  ;;  %v3625_v61 = vor.u32 1.1754944e-38, %v3624_v26  ;;  %vm8258_vm9 = vmmov %vm8256_vm10 }
 0xd8f   : > { %vm8260_vm2 = vmmov %vm8259_vm13 }
 0xd90   : > { %v3616_v18 = vmul.f32 %v5600_v49, %v3615_v52  ;;  %v5331_v46 = vpack.i.bf16 %v7599_v7, %v7544_v3  ;;  %v4169_v6 = vpack.c.bf16 %v7599_v7, %v7544_v3  ;;  %vm8261_vm7 = vmmov %vm8260_vm2 }
 0xd91   : > { %vm8262_vm12 = vmmov %vm8260_vm2 }
 0xd92   : > { %v3617_v54 = vadd.f32 %v5600_v49, %v3616_v18  ;;  %5332 = vrot.lane.b32.xlu1 %v5331_v46, %s5632_s28  ;;  %vm8263_vm11 = vmmov %vm8260_vm2 }
 0xd93   : > { %vm8264_vm8 = vmmov %vm8260_vm2 }
 0xd94   : > { %v3621_v8 = vsel %vm3620_vm14, %v5600_v49, %v3617_v54  ;;  %vm8265_vm14 = vmmov %vm8260_vm2 }
 0xd95   : > { %v3626_v29 = vsel %vm3623_vm5, %v3625_v61, %v3621_v8  ;;  %vm8266_vm5 = vmmov %vm8260_vm2 }
 0xd96   : > { %5362 = vrot.lane.b32.xlu0 %v5361_v53, %s5630_s26  ;;  %v7610_v59 = vmul.f32 %v3626_v29, %v7484_v1  ;;  %v5371_v1 = vpack.i.bf16 %v7590_v32, %v7578_v48 }
 0xd98   : > { %v5326_v51 = vpack.i.bf16 %v7610_v59, %v7599_v7  ;;  %v5466_v38 = vpack.i.bf16 %v7610_v59, %v7560_v21 }
 0xd9a   : > { %5327 = vrot.lane.b32.xlu2 %v5326_v51, %s5628_s24  ;;  %5342 = vrot.lane.b32.xlu1 %v5331_v46, %s5629_s25 }
 0xd9e   : > { %5367 = vrot.lane.b32.xlu0 %v5361_v53, %s5631_s27 }
 0xda2   : > { %5337 = vrot.lane.b32.xlu2 %v5326_v51, %s5630_s26  ;;  %5347 = vrot.lane.b32.xlu1 %v5326_v51, %s5631_s27 }
 0xda6   : > { %5402 = vrot.lane.b32.xlu0 %v5331_v46, %s5633_s29 }
 0xdaa   : > { %5352 = vrot.lane.b32.xlu2 %v5466_v38, %s5632_s28  ;;  %5372 = vrot.lane.b32.xlu1 %v5371_v1, %s5628_s24 }
 0xdae   : > { %5417 = vrot.lane.b32.xlu0 %v5446_v37, %s5632_s28 }
 0xdb2   : > { %5357 = vrot.lane.b32.xlu2 %v5361_v53, %s5628_s24  ;;  %5377 = vrot.lane.b32.xlu1 %v5376_v4, %s5632_s28 }
 0xdb6   : > { %5422 = vrot.lane.b32.xlu0 %v5376_v4, %s5634_s30 }
 0xdba   : > { %5382 = vrot.lane.b32.xlu2 %v5371_v1, %s5630_s26  ;;  %5387 = vrot.lane.b32.xlu1 %v5376_v4, %s5629_s25 }
 0xdbe   : > { %5427 = vrot.lane.b32.xlu0 %v5446_v37, %s5629_s25 }
 0xdc2   : > { %5412 = vrot.lane.b32.xlu2 %v5371_v1, %s5631_s27  ;;  %5392 = vrot.lane.b32.xlu1 %v5331_v46, %s5634_s30  ;;  %s443_s27 = scalar_lea.vmem %s7948_s11, %s4384_s20 }
 0xdc6   : > { %5432 = vrot.lane.b32.xlu0 %v5361_v53, %s5627_s23 }
 0xdca   : > { %5442 = vrot.lane.b32.xlu2 %v5376_v4, %s5633_s29  ;;  %5397 = vrot.lane.b32.xlu1 %v5466_v38, %s5629_s25 }
 0xdce   : > { %5437 = vrot.lane.b32.xlu0 %v7573_v55, %s5627_s23 }
 0xdd2   : > { %5447 = vrot.lane.b32.xlu2 %v5446_v37, %s5634_s30  ;;  %5407 = vrot.lane.b32.xlu1 %v5466_v38, %s5634_s30 }
 0xdda   : > { %5452 = vrot.lane.b32.xlu2 %v5371_v1, %s5627_s23  ;;  %5457 = vrot.lane.b32.xlu1 %v5446_v37, %s5633_s29 }
 0xde0   : > { %v7650_v11 = vpop.permute.xlu2 %5322 }
 0xde2   : > { %5462 = vrot.lane.b32.xlu2 %v5326_v51, %s5627_s23  ;;  %5467 = vrot.lane.b32.xlu1 %v5466_v38, %s5633_s29 }
 0xdf4   : > { %v7652_v47 = vpop.permute.xlu2 %5327 }
 0xdf5   : > { %v5330_v24 = vunpack.i.h.bf16 %v7652_v47  ;;  %v5329_v37 = vunpack.i.l.bf16 %v7652_v47 }
 0xdf7   : > { %v4010_v54 = vsel %vm8255_vm3, %v5329_v37, %v5330_v24 }
 0xdf8   : > { %v7654_v27 = vpop.permute.xlu0 %5312 }
 0xdf9   : > { %v5315_v39 = vunpack.i.h.bf16 %v7654_v27  ;;  %v5314_v19 = vunpack.i.l.bf16 %v7654_v27 }
 0xdfb   : > { %v4009_v10 = vsel %vm8254_vm4, %v5314_v19, %v5315_v39  ;;  %vm8269_vm4 = vcmask 1039360   ;;  %v4843_v2 = vpack.c.bf16 %v5330_v24, %v5315_v39 }
 0xdfc   : > { %v7656_v9 = vpop.permute.xlu2 %5337  ;;  %v4181_v51 = vpack.c.bf16 %v4010_v54, %v4009_v10  ;;  %vm8270_vm3 = vmmov %vm8269_vm4 }
 0xdfd   : > { %v5340_v61 = vunpack.i.h.bf16 %v7656_v9  ;;  %v5339_v8 = vunpack.i.l.bf16 %v7656_v9 }
 0xe00   : > { %v7658_v62 = vpop.permute.xlu0 %5317 }
 0xe01   : > { %v8002_v49 = vunpack.i.h.bf16 %v7658_v62  ;;  %v5319_v63 = vunpack.i.l.bf16 %v7658_v62  ;;  %v8305_v39 = vunpack.i.h.bf16 %v7658_v62 }
 0xe03   : > { %v3961_v29 = vsel %vm8256_vm10, %v5319_v63, %v8002_v49  ;;  %vm8271_vm10 = vcmask 121856  }
 0xe04   : > { %v5353_v34 = vpop.permute.xlu2 %5352  ;;  %v5333_v42 = vpop.permute.xlu1 %5332 }
 0xe05   : > { %v5335_v46 = vunpack.i.h.bf16 %v5333_v42  ;;  %v5334_v53 = vunpack.i.l.bf16 %v5333_v42  ;;  %v5355_v38 = vunpack.i.h.bf16 %v5353_v34  ;;  %v5354_v1 = vunpack.i.l.bf16 %v5353_v34 }
 0xe07   : > { %v3870_v63 = vsel %vm8259_vm13, 0.0, %v5335_v46  ;;  %v3857_v34 = vsel %vm8260_vm2, %v5334_v53, %v5354_v1  ;;  %v3858_v10 = vsel %vm8261_vm7, %v5335_v46, %v5355_v38  ;;  %v3696_v46 = vld [vmem:[%s7943_s6] sm:$0x3f] }
 0xe08   : > { %v7660_v0 = vpop.permute.xlu0 %5362  ;;  %4194 = vst [vmem:[#allocation1] ss:$4 sm:$0xff] %v3696_v46 }
 0xe09   : > { %v8003_v18 = vunpack.i.h.bf16 %v7660_v0  ;;  %v5364_v43 = vunpack.i.l.bf16 %v7660_v0 }
 0xe0b   : > { %v3963_v37 = vsel %vm8258_vm9, %v5364_v43, %v8003_v18 }
 0xe0c   : > { %v7662_v45 = vpop.permute.xlu2 %5357  ;;  %v7664_v50 = vpop.permute.xlu1 %5342 }
 0xe0d   : > { %v5360_v13 = vunpack.i.h.bf16 %v7662_v45  ;;  %v5359_v12 = vunpack.i.l.bf16 %v7662_v45 }
 0xe0f   : > { %v4011_v33 = vsel %vm8252_vm6, %v5359_v12, %v5360_v13  ;;  %vm8267_vm6 = vmmov %vm8258_vm9 }
 0xe10   : > { %v7666_v23 = vpop.permute.xlu0 %5367  ;;  %v3962_v1 = vsel %vm8267_vm6, %v5339_v8, %v5340_v61  ;;  %vm8273_vm9 = vmmov %vm8271_vm10 }
 0xe11   : > { %v8004_v54 = vunpack.i.h.bf16 %v7666_v23  ;;  %vm8274_vm13 = vmmov %vm8273_vm9 }
 0xe12   : > { %vm8275_vm2 = vmmov %vm8273_vm9 }
 0xe13   : > { %vm8276_vm7 = vmmov %vm8275_vm2 }
 0xe14   : > { %v7668_v20 = vpop.permute.xlu2 %5382  ;;  %v7670_v41 = vpop.permute.xlu1 %5347 }
 0xe15   : > { %v5385_v52 = vunpack.i.h.bf16 %v7668_v20  ;;  %v5384_v26 = vunpack.i.l.bf16 %v7668_v20 }
 0xe18   : > { %v7672_v55 = vpop.permute.xlu0 %5402 }
 0xe1c   : > { %v7678_v14 = vpop.permute.xlu2 %5412  ;;  %v7680_v60 = vpop.permute.xlu1 %5372 }
 0xe1d   : > { %v5375_v5 = vunpack.i.h.bf16 %v7680_v60  ;;  %v5374_v28 = vunpack.i.l.bf16 %v7680_v60  ;;  %v8303_v60 = vunpack.i.h.bf16 %v7660_v0 }
 0xe1f   : > { %v4012_v44 = vsel %vm8253_vm1, %v5374_v28, %v5375_v5  ;;  %v3964_v28 = vsel %vm8257_vm15, %v5384_v26, %v5385_v52  ;;  %v5369_v26 = vunpack.i.l.bf16 %v7666_v23  ;;  %vm8268_vm1 = vnez %v8058_v56  ;;  %vm8272_vm15 = vmmov %vm8271_vm10 }
 0xe20   : > { %v5418_v35 = vpop.permute.xlu0 %5417  ;;  %v4183_v36 = vpack.c.bf16 %v4012_v44, %v4011_v33 }
 0xe21   : > { %v5420_v42 = vunpack.i.h.bf16 %v5418_v35  ;;  %v5419_v19 = vunpack.i.l.bf16 %v5418_v35  ;;  %v3869_v35 = vsel %vm8262_vm12, 0.0, %v5334_v53  ;;  %v5415_v53 = vunpack.i.h.bf16 %v7678_v14  ;;  %vm8277_vm12 = vmmov %vm8270_vm3 }
 0xe22   : > { %4215 = vmatpush.bf16.msrb.mxu2 %v4183_v36  ;;  %v3915_v8 = vsel %vm8269_vm4, %v5369_v26, %v8004_v54  ;;  %v8005_v26 = vunpack.i.h.bf16 %v7650_v11 }
 0xe24   : > { %v7709_v4 = vpop.permute.xlu2 %5442  ;;  %v5378_v12 = vpop.permute.xlu1 %5377 }
 0xe25   : > { %v5380_v33 = vunpack.i.h.bf16 %v5378_v12  ;;  %v5379_v44 = vunpack.i.l.bf16 %v5378_v12  ;;  %v4804_v12 = vpack.c.bf16 %v3964_v28, %v3963_v37  ;;  %v5345_v28 = vunpack.i.h.bf16 %v7664_v50 }
 0xe26   : > { %4216 = vmatpush.bf16.msrb.mxu2 %v4181_v51  ;;  %v5414_v51 = vunpack.i.l.bf16 %v7678_v14 }
 0xe27   : > { %v3872_v17 = vsel %vm8263_vm11, 0.0, %v5380_v33  ;;  %v3871_v43 = vsel %vm8264_vm8, 0.0, %v5379_v44  ;;  %v3860_v49 = vsel %vm8265_vm14, %v5380_v33, %v5420_v42  ;;  %v3859_v18 = vsel %vm8266_vm5, %v5379_v44, %v5419_v19  ;;  %vm8279_vm8 = vmmov %vm8270_vm3 }
 0xe28   : > { %v7717_v36 = vpop.permute.xlu0 %5422  ;;  %v4776_v15 = vpack.c.bf16 %v3872_v17, %v3871_v43  ;;  %v4822_v38 = vpack.c.bf16 %v3860_v49, %v3859_v18  ;;  %v4779_v17 = vpack.c.bf16 %v3870_v63, %v3869_v35  ;;  %v4825_v42 = vpack.c.bf16 %v3858_v10, %v3857_v34 }
 0xe29   : > { %v4807_v19 = vpack.c.bf16 %v3962_v1, %v3961_v29  ;;  %v5344_v49 = vunpack.i.l.bf16 %v7664_v50  ;;  %v8008_v18 = vunpack.i.h.bf16 %v7670_v41  ;;  %v5349_v33 = vunpack.i.l.bf16 %v7670_v41 }
 0xe2a   : > { %4777 = vmatpush.bf16.msk.msrb.mxu1 %vm6143_vm0, %v4776_v15  ;;  %4805 = vmatpush.bf16.msk.msrb.mxu2 %vm6143_vm0, %v4804_v12  ;;  %v3916_v29 = vsel %vm8270_vm3, %v5414_v51, %v5415_v53  ;;  %v5324_v43 = vunpack.i.l.bf16 %v7650_v11  ;;  %vm8278_vm11 = vnez %v8036_v57  ;;  %vm8280_vm14 = vnez %v8071_v58  ;;  %v4195_v57 = vld.sshfl [vmem:[#allocation1] sm:$0xff pattern:$0x73625140] }
 0xe2b   : > { %4823 = vmatpush.bf16.msk.msrb.mxu0 %vm8268_vm1, %v4822_v38  ;;  %v4810_v51 = vpack.c.bf16 %v3916_v29, %v3915_v8  ;;  %v5425_v8 = vunpack.i.h.bf16 %v7717_v36  ;;  %v5424_v29 = vunpack.i.l.bf16 %v7717_v36  ;;  %vm8281_vm5 = vcmask 908288  }
 0xe2c   : > { %v7749_v15 = vpop.permute.xlu2 %5447  ;;  %v5388_v37 = vpop.permute.xlu1 %5387  ;;  %vm8282_vm6 = vmmov %vm8281_vm5 }
 0xe2d   : > { %v5390_v44 = vunpack.i.h.bf16 %v5388_v37  ;;  %v5389_v63 = vunpack.i.l.bf16 %v5388_v37  ;;  %v3821_v37 = vsel %vm8276_vm7, 0.0, %v5344_v49  ;;  %vm8283_vm4 = vmmov %vm8281_vm5 }
 0xe2e   : > { %4780 = vmatpush.bf16.msk.msrb.mxu1 %vm6143_vm0, %v4779_v17  ;;  %4808 = vmatpush.bf16.msk.msrb.mxu2 %vm6143_vm0, %v4807_v19  ;;  %v3822_v19 = vsel %vm8275_vm2, 0.0, %v5345_v28  ;;  %vm8284_vm3 = vmmov %vm8283_vm4 }
 0xe2f   : > { %v3824_v12 = vsel %vm8271_vm10, 0.0, %v5390_v44  ;;  %v3823_v46 = vsel %vm8272_vm15, 0.0, %v5389_v63  ;;  %4826 = vmatpush.bf16.msk.msrb.mxu0 %vm8268_vm1, %v4825_v42  ;;  %v3913_v42 = vsel %vm8279_vm8, %v5324_v43, %v8005_v26  ;;  %v5445_v43 = vunpack.i.h.bf16 %v7709_v4  ;;  %vm8290_vm7 = vmmov %vm8284_vm3 }
 0xe30   : > { %v5428_v34 = vpop.permute.xlu0 %5427  ;;  %v4782_v38 = vpack.c.bf16 %v3824_v12, %v3823_v46  ;;  %vm8285_vm10 = vnez %v8042_v25  ;;  %vm8286_vm15 = vcmask 138240  }
 0xe31   : > { %v5430_v10 = vunpack.i.h.bf16 %v5428_v34  ;;  %v5429_v35 = vunpack.i.l.bf16 %v5428_v34  ;;  %v3914_v34 = vsel %vm8277_vm12, %v5349_v33, %v8008_v18  ;;  %v5449_v18 = vunpack.i.l.bf16 %v7749_v15 }
 0xe32   : > { %4783 = vmatpush.bf16.msk.msrb.mxu1 %vm8278_vm11, %v4782_v38  ;;  %4811 = vmatpush.bf16.msk.msrb.mxu2 %vm8278_vm11, %v4810_v51  ;;  %v4813_v33 = vpack.c.bf16 %v3914_v34, %v3913_v42  ;;  %v8006_v51 = vunpack.i.h.bf16 %v7672_v55  ;;  %v8007_v38 = vunpack.i.l.bf16 %v7672_v55  ;;  %vm8291_vm12 = vcmask 121856  }
 0xe33   : > { %v3812_v1 = vsel %vm8273_vm9, %v5390_v44, %v5430_v10  ;;  %v3811_v17 = vsel %vm8274_vm13, %v5389_v63, %v5429_v35  ;;  %v4785_v44 = vpack.c.bf16 %v3822_v19, %v3821_v37  ;;  %vm8287_vm9 = vmmov %vm8286_vm15 }
 0xe34   : > { %v4828_v54 = vpack.c.bf16 %v3812_v1, %v3811_v17  ;;  %v5453_v63 = vpop.permute.xlu2 %5452  ;;  %v7787_v10 = vpop.permute.xlu1 %5392  ;;  %v5444_v1 = vunpack.i.l.bf16 %v7709_v4  ;;  %v4790_v17 = vpack.c.bf16 %v5425_v8, %v5424_v29  ;;  %vm8288_vm13 = vmmov %vm8287_vm9 }
 0xe35   : > { %v5455_v35 = vunpack.i.h.bf16 %v5453_v63  ;;  %v5454_v12 = vunpack.i.l.bf16 %v5453_v63  ;;  %v5395_v19 = vunpack.i.h.bf16 %v7787_v10  ;;  %v5394_v34 = vunpack.i.l.bf16 %v7787_v10  ;;  %vm8289_vm2 = vmmov %vm8287_vm9 }
 0xe36   : > { %4829 = vmatpush.bf16.msk.msrb.mxu0 %vm8280_vm14, %v4828_v54  ;;  %4786 = vmatpush.bf16.msk.msrb.mxu1 %vm8278_vm11, %v4785_v44  ;;  %v3735_v10 = vsel %vm8287_vm9, 0.0, %v5444_v1  ;;  %v3733_v40 = vsel %vm8289_vm2, 0.0, %v8007_v38  ;;  %v7828_v38 = vld.sshfl [vmem:[#allocation1 + $0x8] sm:$0xff pattern:$0x73625140]  ;;  %vm8292_vm8 = vmmov %vm8291_vm12 }
 0xe37   : > { %4814 = vmatpush.bf16.msk.msrb.mxu2 %vm8278_vm11, %v4813_v33  ;;  %v4052_v37 = vsel %vm8281_vm5, %v5454_v12, %v5455_v35  ;;  %v4064_v33 = vsel %vm8284_vm3, %v5455_v35, 0.0  ;;  %v3736_v12 = vsel %vm8286_vm15, 0.0, %v5445_v43  ;;  %v3734_v35 = vsel %vm8288_vm13, 0.0, %v8006_v51  ;;  %vm8293_vm5 = vmmov %vm8284_vm3 }
 0xe38   : > { %v5433_v46 = vpop.permute.xlu0 %5432  ;;  %v4795_v48 = vpack.c.bf16 %v5395_v19, %v5394_v34  ;;  %v4801_v50 = vpack.c.bf16 %v3734_v35, %v3733_v40  ;;  %vm8301_vm13 = vcmask 261120  }
 0xe39   : > { %v5435_v36 = vunpack.i.h.bf16 %v5433_v46  ;;  %v5434_v54 = vunpack.i.l.bf16 %v5433_v46 }
 0xe3a   : > { %4791 = vmatpush.bf16.msk.msrb.mxu1 %vm8285_vm10, %v4790_v17 }
 0xe3b   : > { %v4063_v42 = vsel %vm8282_vm6, %v5435_v36, 0.0  ;;  %v4051_v44 = vsel %vm8283_vm4, %v5434_v54, %v5435_v36  ;;  %4221 = vmatpush.bf16.msrb.mxu2 %v4171_v31  ;;  %vm8294_vm6 = vmmov %vm8284_vm3 }
 0xe3c   : > { %v4816_v63 = vpack.c.bf16 %v4052_v37, %v4051_v44  ;;  %v4858_v46 = vpack.c.bf16 %v4064_v33, %v4063_v42  ;;  %v5463_v31 = vpop.permute.xlu2 %5462  ;;  %v5398_v36 = vpop.permute.xlu1 %5397  ;;  %v4798_v42 = vpack.c.bf16 %v3736_v12, %v3735_v10  ;;  %v5450_v33 = vunpack.i.h.bf16 %v7749_v15  ;;  %vm8295_vm4 = vmmov %vm8284_vm3 }
 0xe3d   : > { %v5465_v54 = vunpack.i.h.bf16 %v5463_v31  ;;  %v5464_v17 = vunpack.i.l.bf16 %v5463_v31  ;;  %v5400_v37 = vunpack.i.h.bf16 %v5398_v36  ;;  %v5399_v44 = vunpack.i.l.bf16 %v5398_v36 }
 0xe3e   : > { %4817 = vmatpush.bf16.msk.msrb.mxu3 %vm8278_vm11, %v4816_v63  ;;  %4796 = vmatpush.bf16.msk.msrb.mxu1 %vm8285_vm10, %v4795_v48  ;;  %vm8296_vm3 = vcmask 130048   ;;  %v5648_v36 = vmov 12  }
 0xe3f   : > { %4222 = vmatpush.bf16.msrb.mxu2 %v4169_v6  ;;  %v4062_v31 = vsel %vm8290_vm7, %v5465_v54, 0.0  ;;  %v3809_v12 = vsel %vm8291_vm12, %v5344_v49, %v5399_v44  ;;  %v3810_v25 = vsel %vm8292_vm8, %v5345_v28, %v5400_v37  ;;  %v4050_v3 = vsel %vm8293_vm5, %v5464_v17, %v5465_v54  ;;  %vm8297_vm10 = vmmov %vm8296_vm3  ;;  %5471 = vset.pattern.permute.xlu0 %v5648_v36 }
 0xe40   : > { %v5438_v26 = vpop.permute.xlu0 %5437  ;;  %v4831_v7 = vpack.c.bf16 %v3810_v25, %v3809_v12  ;;  %v3771_v48 = vsel %vm8296_vm3, %v5424_v29, %v5449_v18  ;;  %v3772_v49 = vsel %vm8297_vm10, %v5425_v8, %v5450_v33  ;;  %v4197_v18 = vld.sshfl [vmem:[#allocation1 + $0x10] sm:$0xff pattern:$0x73625140]  ;;  %v4840_v8 = vpack.c.bf16 %v5375_v5, %v5360_v13  ;;  %vm8299_vm15 = vmmov %vm8296_vm3  ;;  %4190 = vperm.xlu0 %5471, %v7414_v16  }
 0xe41   : > { %v5440_v63 = vunpack.i.h.bf16 %v5438_v26  ;;  %v5439_v51 = vunpack.i.l.bf16 %v5438_v26  ;;  %vm8300_vm9 = vmmov %vm8296_vm3  ;;  %vm8307_vm12 = vcmask 138240   ;;  %v8314_v17 = vunpack.i.h.bf16 %v7670_v41 }
 0xe42   : > { %4223 = vmatmul.bf16.vlgmr.msrb.gmra.mxu2 %v7828_v38  ;;  %4799 = vmatpush.bf16.msk.msrb.mxu1 %vm6143_vm0, %v4798_v42  ;;  %vm8308_vm8 = vmmov %vm8307_vm12  ;;  %v8318_v37 = vunpack.i.h.bf16 %v7672_v55  ;;  %v8320_v42 = vunpack.i.h.bf16 %v7650_v11  ;;  %v8322_v41 = vpack.c.bf16 %v7590_v32, %v7585_v22 }
 0xe43   : > { %4859 = vmatpush.bf16.msk.msra.mxu2 %vm8280_vm14, %v4858_v46  ;;  %v4061_v6 = vsel %vm8294_vm6, %v5440_v63, 0.0  ;;  %v4049_v15 = vsel %vm8295_vm4, %v5439_v51, %v5440_v63  ;;  %4832 = vmatpush.bf16.msk.msrb.mxu0 %vm8280_vm14, %v4831_v7  ;;  %v4160_v51 = vpack.c.bf16 %v3772_v49, %v3771_v48  ;;  %vm8310_vm6 = vmmov %vm8301_vm13  ;;  %vm8311_vm4 = vcmask 1039360  }
 0xe44   : > { %v4861_v26 = vpack.c.bf16 %v4062_v31, %v4061_v6  ;;  %v4819_v10 = vpack.c.bf16 %v4050_v3, %v4049_v15  ;;  %v5408_v28 = vpop.permute.xlu1 %5407  ;;  %v3928_v62 = vsel %vm8311_vm4, %v5415_v53, 0.0  ;;  %vm8313_vm3 = vmmov %vm8311_vm4  ;;  %v8316_v53 = vunpack.i.l.bf16 %v7672_v55 }
 0xe45   : > { %v5410_v29 = vunpack.i.h.bf16 %v5408_v28  ;;  %v5409_v46 = vunpack.i.l.bf16 %v5408_v28  ;;  %vm8315_vm10 = vmmov %vm8313_vm3  ;;  %v8323_v55 = vpack.c.bf16 %v7610_v59, %v7560_v21 }
 0xe46   : > { %4820 = vmatpush.bf16.msk.msrb.mxu3 %vm8278_vm11, %v4819_v10  ;;  %4802 = vmatpush.bf16.msk.msrb.mxu1 %vm6143_vm0, %v4801_v50  ;;  %vm8298_vm11 = vnez %v8063_v30  ;;  %vm8302_vm0 = vcmask 924672   ;;  %v3926_v14 = vsel %vm8315_vm10, %v8314_v17, 0.0 }
 0xe47   : > { %4862 = vmatpush.bf16.msk.msra.mxu2 %vm8280_vm14, %v4861_v26  ;;  %4245 = vmatpush.bf16.msrb.mxu0 %v4160_v51  ;;  %v3769_v35 = vsel %vm8299_vm15, %v5394_v34, %v5409_v46  ;;  %v3770_v40 = vsel %vm8300_vm9, %v5395_v19, %v5410_v29  ;;  %v3976_v13 = vsel %vm8302_vm0, %v5385_v52, 0.0  ;;  %vm8304_vm2 = vmmov %vm8302_vm0 }
 0xe48   : > { %v4158_v45 = vpack.c.bf16 %v3770_v40, %v3769_v35  ;;  %v3975_v5 = vsel %vm8304_vm2, %v8303_v60, 0.0  ;;  %vm8306_vm7 = vmmov %vm8302_vm0 }
 0xe49   : > { %4544 = vmatmul.msk.bf16.vlgmr.msrb.gmra.mxu3 %vm8301_vm13, %v4197_v18  ;;  %4210 = vmatmul.bf16.vlgmr.msrb.gmra.mxu1 %v4195_v57  ;;  %v4846_v27 = vpack.c.bf16 %v3976_v13, %v3975_v5  ;;  %v3973_v16 = vsel %vm8306_vm7, %v8305_v39, 0.0  ;;  %vm8309_vm5 = vmmov %vm8302_vm0 }
 0xe4a   : > { %4841 = vmatpush.bf16.msk.msra.mxu1 %vm8298_vm11, %v4840_v8  ;;  %v3974_v30 = vsel %vm8309_vm5, %v5340_v61, 0.0  ;;  %vm8319_vm15 = vmmov %vm8308_vm8 }
 0xe4b   : > { %4246 = vmatpush.bf16.msrb.mxu0 %v4158_v45  ;;  %v4849_v52 = vpack.c.bf16 %v3974_v30, %v3973_v16  ;;  %vm8321_vm9 = vmmov %vm8313_vm3 }
 0xe4c   : > { %v5458_v19 = vpop.permute.xlu1 %5457  ;;  %v3925_v33 = vsel %vm8321_vm9, %v8320_v42, 0.0 }
 0xe4d   : > { %v5460_v34 = vunpack.i.h.bf16 %v5458_v19  ;;  %v5459_v47 = vunpack.i.l.bf16 %v5458_v19  ;;  %v4855_v31 = vpack.c.bf16 %v3926_v14, %v3925_v33 }
 0xe4e   : > { %4844 = vmatpush.bf16.msk.msra.mxu1 %vm8298_vm11, %v4843_v2  ;;  %vm8317_vm11 = vmmov %vm8308_vm8 }
 0xe4f   : > { %v3723_v20 = vsel %vm8307_vm12, %v5444_v1, %v5459_v47  ;;  %v3724_v0 = vsel %vm8308_vm8, %v5445_v43, %v5460_v34  ;;  %v8312_v1 = vunpack.i.h.bf16 %v7666_v23 }
 0xe50   : > { %v4834_v24 = vpack.c.bf16 %v3724_v0, %v3723_v20 }
 0xe51   : > { %v3927_v4 = vsel %vm8313_vm3, %v8312_v1, 0.0 }
 0xe52   : > { %4847 = vmatpush.bf16.msk.msra.mxu1 %vm8268_vm1, %v4846_v27  ;;  %4545 = vmatmul.msk.bf16.vlgmr.msra.gmra.mxu2 %vm8310_vm6, %v4197_v18  ;;  %v4852_v61 = vpack.c.bf16 %v3928_v62, %v3927_v4 }
 0xe53   : > { %4835 = vmatpush.bf16.msk.msrb.mxu0 %vm8268_vm1, %v4834_v24 }
 0xe54   : > { %v5468_v9 = vpop.permute.xlu1 %5467 }
 0xe55   : > { %v5470_v43 = vunpack.i.h.bf16 %v5468_v9  ;;  %v5469_v54 = vunpack.i.l.bf16 %v5468_v9 }
 0xe56   : > { %4850 = vmatpush.bf16.msk.msra.mxu1 %vm8268_vm1, %v4849_v52 }
 0xe57   : > { %v3721_v23 = vsel %vm8317_vm11, %v8316_v53, %v5469_v54  ;;  %v3722_v44 = vsel %vm8319_vm15, %v8318_v37, %v5470_v43 }
 0xe58   : > { %v4837_v63 = vpack.c.bf16 %v3722_v44, %v3721_v23 }
 0xe5a   : > { %4853 = vmatpush.bf16.msk.msra.mxu1 %vm8280_vm14, %v4852_v61  ;;  %4838 = vmatpush.bf16.msk.msrb.mxu0 %vm8268_vm1, %v4837_v63  ;;  %vm8324_vm1 = vcmask 1043456  }
 0xe5d   : > { %4249 = vmatmul.bf16.vlgmr.msrb.gmra.mxu0 %v4195_v57 }
 0xe5e   : > { %4856 = vmatpush.bf16.msk.msra.mxu1 %vm8280_vm14, %v4855_v31 }
 0xe62   : > { %4260 = vmatpush.bf16.msra.mxu1 %v8322_v41 }
 0xe66   : > { %4261 = vmatpush.bf16.msra.mxu1 %v8323_v55 }
 0xe69   : > { %4262 = vmatmul.bf16.vlgmr.msra.gmra.mxu1 %v7828_v38 }
 0xeb2   : > { %v4191_v26 = vpop.permute.xlu0 %4190 }
 0xec5   : > { %v4224_v11 = vpop.f32.mrf.mxu2 }
 0xec6   : > { %v4211_v12 = vpop.f32.mrf.mxu1 }
 0xec7   : > { %v4212_v10 = vadd.f32 %v4211_v12, %v4191_v26 }
 0xec9   : > { %v4225_v21 = vadd.f32 %v4224_v11, %v4212_v10 }
 0xecc   : > { %v4237_v25 = vpop.f32.mrf.mxu3 }
 0xecd   : > { %v4226_v56 = vpop.f32.mrf.mxu2  ;;  %v4238_v38 = vadd.f32 %v4237_v25, %v4225_v21 }
 0xece   : > { %v4213_v3 = vpop.f32.mrf.mxu1 }
 0xed4   : > { %v4239_v7 = vpop.f32.mrf.mxu3 }
 0xed5   : > { %v4276_v58 = vpop.f32.mrf.mxu2 }
 0xeda   : > { %v4250_v6 = vpop.f32.mrf.mxu0 }
 0xedb   : > { %v4251_v22 = vadd.f32 %v4250_v6, %v4191_v26 }
 0xedd   : > { %v4278_v15 = vpop.f32.mrf.mxu2 }
 0xee2   : > { %v4252_v32 = vpop.f32.mrf.mxu0 }
 0xee6   : > { %v4263_v48 = vpop.f32.mrf.mxu1 }
 0xee7   : > { %v4264_v49 = vadd.f32 %v4263_v48, %v4251_v22 }
 0xee9   : > { %v4277_v59 = vadd.f32 %v4276_v58, %v4264_v49 }
 0xeeb   : > { %v4282_v50 = vrot.slane %v4277_v59, 4 }
 0xeed   : > { %v4283_v28 = vsel %vm8324_vm1, %v4238_v38, %v4282_v50 }
 0xeee   : > { %4285 = vst [vmem:[%s443_s27] sm:$0xff] %v4283_v28  ;;  %v4265_v51 = vpop.f32.mrf.mxu1 }
 0xeef PF: > { %s21_s17 = sadd.s32 1, %s5625_s17  }
 0xef0   : > { %p18_p4 = scmp.ge.s32.totalorder %s21_s17, 4  }
 0xef2   :  { %20 = sbr.rel (!%p18_p4) target bundleno = 1 (0x1), region = 103 }

</bundles_post_ra>
